<compile_context>
chip_gen: v5e
topology: v5e:2x2
jax: 0.10.0
libtpu: 0.0.40
codegen_flags: <defaults>
</compile_context>

<pallas_src>
import jax
import jax.numpy as jnp
from jax.experimental import pallas as pl
from jax.experimental.pallas import tpu as pltpu


# ----------------------------- Pallas kernel --------------------------------
def _lstm_sentiment_kernel(words_ref,                     # SMEM (T*B,)  int32
                           emb_ref,                       # (V_pad, E_pad) f32
                           wih0_ref,                      # (E_pad, 4H)  bf16
                           b0_ref,                        # (1, 4H)      f32
                           whh0_ref,                      # (H, 4H)      bf16
                           wih1_ref,                      # (H, 4H)      bf16
                           whh1_ref,                      # (H, 4H)      bf16
                           b1_ref,                        # (1, 4H)      f32
                           wfc0_ref,                      # (1, H)       f32
                           wfc1_ref,                      # (1, H)       f32
                           bfc_ref,                       # (1, 1)       f32
                           out_ref,                       # (B, 1)       f32
                           x_scratch):                    # (T*B, E_pad) f32
    B = out_ref.shape[0]
    TB = x_scratch.shape[0]
    T = TB // B
    H = whh0_ref.shape[0]
    H4 = 4 * H

    # --- Fused embedding gather (time-major): x[r] = embedding[words[r]]. ---
    # Tiny dynamic-row copies; scratch is kept f32 so the dynamic sublane
    # stores are unpacked (the bf16 cast happens once, below, on the whole
    # tile).
    for r in range(TB):
        idx = words_ref[r]
        x_scratch[pl.ds(r, 1), :] = emb_ref[pl.ds(idx, 1), :]

    # --- Hoisted layer-0 input projection: single bf16 MXU matmul, wih0
    # streamed once; b0 folded in here (not per step). -----------------------
    xg0 = (jnp.dot(x_scratch[...].astype(jnp.bfloat16), wih0_ref[...],
                   preferred_element_type=jnp.float32)
           + b0_ref[...])                                    # (T*B, 4H) f32

    whh0 = whh0_ref[...]                                     # (H, 4H) bf16
    wih1 = wih1_ref[...]                                     # (H, 4H) bf16
    whh1 = whh1_ref[...]                                     # (H, 4H) bf16
    # Hoisted broadcast of b1 (JAX does not CSE broadcast_in_dim).
    b1 = jnp.broadcast_to(b1_ref[...], (B, H4))              # (B, 4H) f32

    def gates_to_hc(gates, c_prev):
        # Full-tile sigmoid (one EUP pass over the 128-lane tile); tanh only
        # on the 32-lane g slice (3/4 of a full-tile tanh would be wasted).
        sig = jax.nn.sigmoid(gates)
        i = sig[:, 0 * H:1 * H]
        f = sig[:, 1 * H:2 * H]
        o = sig[:, 3 * H:4 * H]
        g = jnp.tanh(gates[:, 2 * H:3 * H])
        c = f * c_prev + i * g
        h = o * jnp.tanh(c)
        return h, c

    h0 = jnp.zeros((B, H), jnp.float32)
    c0 = jnp.zeros((B, H), jnp.float32)
    h1 = jnp.zeros((B, H), jnp.float32)
    c1 = jnp.zeros((B, H), jnp.float32)

    # Sequential recurrence over time (static unroll; T is small & known).
    # TODO(synk): for large T switch to lax.fori_loop(..., unroll=2..4)
    #             reading the t-th xg0 slice from a VMEM scratch to bound
    #             vreg live ranges.
    for t in range(T):
        # Layer 0: only the tiny bf16 recurrent matmul is on the serial path.
        g0 = xg0[t * B:(t + 1) * B, :] + jnp.dot(
            h0.astype(jnp.bfloat16), whh0,
            preferred_element_type=jnp.float32)              # (B, 4H) f32
        h0, c0 = gates_to_hc(g0, c0)

        # Layer 1: split matmuls -> no per-step lane concat on the serial
        # critical path (the two dots pipeline / accumulate back-to-back).
        g1 = (jnp.dot(h0.astype(jnp.bfloat16), wih1,
                      preferred_element_type=jnp.float32)
              + jnp.dot(h1.astype(jnp.bfloat16), whh1,
                        preferred_element_type=jnp.float32)
              + b1)                                          # (B, 4H) f32
        h1, c1 = gates_to_hc(g1, c1)

    # torch.cat((hidden[-2], hidden[-1]), dim=1) @ wfc.T + bfc, with the FC
    # head split into its two 32-lane halves: VPU multiply + lane reduction,
    # no MXU N=1 matmul and no final concat.
    out_ref[...] = (jnp.sum(h0 * wfc0_ref[...], axis=-1, keepdims=True)
                    + jnp.sum(h1 * wfc1_ref[...], axis=-1, keepdims=True)
                    + bfc_ref[...])                          # (B, 1)


# --------------------------- one-time preprocessing ---------------------------
def preprocess_params(params):
    """One-time, cacheable weight/layout preprocessing (do NOT redo per call)."""
    V, E = params["embedding"].shape
    H = params["whh0"].shape[1]
    E_pad = ((E + 127) // 128) * 128
    V_pad = ((V + 7) // 8) * 8
    f32 = jnp.float32

    emb = jnp.pad(params["embedding"].astype(f32),
                  ((0, V_pad - V), (0, E_pad - E)))           # (V_pad, E_pad)
    wih0 = jnp.pad(params["wih0"].T.astype(f32),
                   ((0, E_pad - E), (0, 0))).astype(jnp.bfloat16)  # (E_pad,4H)
    b0 = (params["bih0"] + params["bhh0"]).reshape(1, -1).astype(f32)
    whh0 = params["whh0"].T.astype(jnp.bfloat16)              # (H, 4H)
    wih1 = params["wih1"].T.astype(jnp.bfloat16)              # (H, 4H)
    whh1 = params["whh1"].T.astype(jnp.bfloat16)              # (H, 4H)
    b1 = (params["bih1"] + params["bhh1"]).reshape(1, -1).astype(f32)
    wfc = params["wfc"].astype(f32).reshape(1, -1)            # (1, 2H)
    wfc0 = wfc[:, :H]                                         # (1, H) layer-0 half
    wfc1 = wfc[:, H:]                                         # (1, H) layer-1 half
    bfc = params["bfc"].reshape(1, 1).astype(f32)             # (1, 1)

    prep = {"emb": emb, "wih0": wih0, "b0": b0, "whh0": whh0, "wih1": wih1,
            "whh1": whh1, "b1": b1, "wfc0": wfc0, "wfc1": wfc1, "bfc": bfc}
    # Materialize once so repeated forward calls reuse device buffers.
    return jax.tree_util.tree_map(jax.block_until_ready, prep)


# ------------------------------ JAX wrapper -----------------------------------
def lstm_sentiment_forward(input_words, prep):
    """Forward pass matching LSTMSentiment.forward (eval mode).

    `prep` is the cached output of preprocess_params().
    """
    B, T = input_words.shape
    E_pad = prep["emb"].shape[1]

    # Time-major flat word indices: row r = t*B + b <-> input_words[b, t]
    # (tiny int op; all heavy layout work is fused into the kernel).
    words_tm = jnp.transpose(input_words, (1, 0)).reshape(T * B).astype(jnp.int32)

    vmem = pl.BlockSpec(memory_space=pltpu.MemorySpace.VMEM)
    # TODO(synk): if B scales up, add a batch grid axis with
    #             dimension_semantics=("parallel", ...) so both v7x
    #             TensorCores are used, size blocks for v7x's 64 MiB VMEM
    #             (set vmem_limit_bytes), and grow T*B toward 128 (v5e) /
    #             256 (v6e/v7x) rows to fill the MXU.
    out = pl.pallas_call(
        _lstm_sentiment_kernel,
        out_shape=jax.ShapeDtypeStruct((B, 1), jnp.float32),
        grid_spec=pltpu.PrefetchScalarGridSpec(
            num_scalar_prefetch=1,                 # word indices -> SMEM
            grid=(1,),
            in_specs=[vmem] * 10,
            out_specs=vmem,
            scratch_shapes=[pltpu.VMEM((T * B, E_pad), jnp.float32)],
        ),
        compiler_params=pltpu.CompilerParams(
            dimension_semantics=("arbitrary",)),
    )(words_tm, prep["emb"], prep["wih0"], prep["b0"], prep["whh0"],
      prep["wih1"], prep["whh1"], prep["b1"], prep["wfc0"], prep["wfc1"],
      prep["bfc"])
    return out[:, 0]                                          # (B,)


# --------------------------- pure-JAX reference -------------------------------
def _reference_forward(input_words, params):
    emb = jnp.take(params["embedding"], input_words, axis=0).astype(jnp.float32)
    B, T, _ = emb.shape
    H = params["whh0"].shape[1]

    def cell(x_t, h, c, wih, whh, bih, bhh):
        g = x_t @ wih.T + bih + h @ whh.T + bhh
        i = jax.nn.sigmoid(g[:, 0 * H:1 * H])
        f = jax.nn.sigmoid(g[:, 1 * H:2 * H])
        gg = jnp.tanh(g[:, 2 * H:3 * H])
        o = jax.nn.sigmoid(g[:, 3 * H:4 * H])
        c = f * c + i * gg
        h = o * jnp.tanh(c)
        return h, c

    h0 = c0 = h1 = c1 = jnp.zeros((B, H), jnp.float32)
    for t in range(T):
        x_t = emb[:, t, :]
        h0, c0 = cell(x_t, h0, c0, params["wih0"], params["whh0"],
                      params["bih0"], params["bhh0"])
        h1, c1 = cell(h0, h1, c1, params["wih1"], params["whh1"],
                      params["bih1"], params["bhh1"])
    feat = jnp.concatenate([h0, h1], axis=1)
    return (feat @ params["wfc"].T + params["bfc"]).squeeze(-1)


# --------------------------------- main ---------------------------------------
if __name__ == "__main__":
    VOCAB, EMB = 50, 300          # nn.LSTM(input_size=300) forces E = 300
    HIDDEN, NUM_LAYERS = 32, 2
    BATCH, SEQ = 8, 8

    key = jax.random.PRNGKey(0)
    ks = jax.random.split(key, 16)
    k = 1.0 / jnp.sqrt(HIDDEN)

    def u(kk, shape):
        return jax.random.uniform(kk, shape, jnp.float32, -k, k)

    params = {
        "embedding": jax.random.normal(ks[0], (VOCAB, EMB), jnp.float32),
        # layer 0
        "wih0": u(ks[1], (4 * HIDDEN, EMB)),
        "whh0": u(ks[2], (4 * HIDDEN, HIDDEN)),
        "bih0": u(ks[3], (4 * HIDDEN,)),
        "bhh0": u(ks[4], (4 * HIDDEN,)),
        # layer 1
        "wih1": u(ks[5], (4 * HIDDEN, HIDDEN)),
        "whh1": u(ks[6], (4 * HIDDEN, HIDDEN)),
        "bih1": u(ks[7], (4 * HIDDEN,)),
        "bhh1": u(ks[8], (4 * HIDDEN,)),
        # fc1: Linear(2H, 1)
        "wfc": u(ks[9], (1, 2 * HIDDEN)),
        "bfc": u(ks[10], (1,)),
    }

    input_words = jax.random.randint(ks[11], (BATCH, SEQ), 0, VOCAB, jnp.int32)

    prep = preprocess_params(params)   # one-time, cached across forward calls
    out = jax.block_until_ready(lstm_sentiment_forward(input_words, prep))
    ref = jax.block_until_ready(_reference_forward(input_words, params))

    assert out.shape == (BATCH,), out.shape
    # Tolerance loosened vs. the pure-f32 version: the input projection AND
    # the (K<=64) recurrent matmuls run in bf16 with f32 accumulation.
    assert jnp.allclose(out, ref, atol=5e-2, rtol=5e-2), (out, ref)
    print("KERNEL_OK")
</pallas_src>

<mosaic_0001>
module attributes {stable_mosaic.version = 11 : i64} {
  func.func @_lstm_sentiment_kernel(%arg0: i32, %arg1: memref<64xi32, #tpu.memory_space<smem>>, %arg2: memref<56x384xf32, #tpu.memory_space<vmem>>, %arg3: memref<384x128xbf16, #tpu.memory_space<vmem>>, %arg4: memref<1x128xf32, #tpu.memory_space<vmem>>, %arg5: memref<32x128xbf16, #tpu.memory_space<vmem>>, %arg6: memref<32x128xbf16, #tpu.memory_space<vmem>>, %arg7: memref<32x128xbf16, #tpu.memory_space<vmem>>, %arg8: memref<1x128xf32, #tpu.memory_space<vmem>>, %arg9: memref<1x32xf32, #tpu.memory_space<vmem>>, %arg10: memref<1x32xf32, #tpu.memory_space<vmem>>, %arg11: memref<1x1xf32, #tpu.memory_space<vmem>>, %arg12: memref<8x1xf32, #tpu.memory_space<vmem>>, %arg13: memref<64x384xf32, #tpu.memory_space<vmem>>) attributes {dimension_semantics = [#tpu.dimension_semantics<arbitrary>], iteration_bounds = array<i64: 1>, scalar_prefetch = 1 : i64, scratch_operands = 1 : i64, tpu.core_type = #tpu.core_type<tc>, window_params = [{pipeline_mode = #tpu.pipeline_mode<synchronous>, transform_indices = @transform_0, window_bounds = array<i64: 56, 384>}, {pipeline_mode = #tpu.pipeline_mode<synchronous>, transform_indices = @transform_1, window_bounds = array<i64: 384, 128>}, {pipeline_mode = #tpu.pipeline_mode<synchronous>, transform_indices = @transform_2, window_bounds = array<i64: 1, 128>}, {pipeline_mode = #tpu.pipeline_mode<synchronous>, transform_indices = @transform_3, window_bounds = array<i64: 32, 128>}, {pipeline_mode = #tpu.pipeline_mode<synchronous>, transform_indices = @transform_4, window_bounds = array<i64: 32, 128>}, {pipeline_mode = #tpu.pipeline_mode<synchronous>, transform_indices = @transform_5, window_bounds = array<i64: 32, 128>}, {pipeline_mode = #tpu.pipeline_mode<synchronous>, transform_indices = @transform_6, window_bounds = array<i64: 1, 128>}, {pipeline_mode = #tpu.pipeline_mode<synchronous>, transform_indices = @transform_7, window_bounds = array<i64: 1, 32>}, {pipeline_mode = #tpu.pipeline_mode<synchronous>, transform_indices = @transform_8, window_bounds = array<i64: 1, 32>}, {pipeline_mode = #tpu.pipeline_mode<synchronous>, transform_indices = @transform_9, window_bounds = array<i64: 1, 1>}, {pipeline_mode = #tpu.pipeline_mode<synchronous>, transform_indices = @transform_10, window_bounds = array<i64: 8, 1>}]} {
    %c0 = arith.constant 0 : index
    %0 = memref.load %arg1[%c0] : memref<64xi32, #tpu.memory_space<smem>>
    %1 = arith.index_cast %0 : i32 to index
    %c0_0 = arith.constant 0 : index
    %2 = vector.load %arg2[%1, %c0_0] : memref<56x384xf32, #tpu.memory_space<vmem>>, vector<1x384xf32>
    %c0_1 = arith.constant 0 : index
    %c0_2 = arith.constant 0 : index
    %3 = vector.load %arg13[%c0_1, %c0_2] : memref<64x384xf32, #tpu.memory_space<vmem>>, vector<1x384xf32>
    tpu.vector_store %arg13[%c0_1, %c0_2], %2 {strides = array<i32>} : memref<64x384xf32, #tpu.memory_space<vmem>>, vector<1x384xf32>,
    %c1 = arith.constant 1 : index
    %4 = memref.load %arg1[%c1] : memref<64xi32, #tpu.memory_space<smem>>
    %5 = arith.index_cast %4 : i32 to index
    %c0_3 = arith.constant 0 : index
    %6 = vector.load %arg2[%5, %c0_3] : memref<56x384xf32, #tpu.memory_space<vmem>>, vector<1x384xf32>
    %c1_4 = arith.constant 1 : index
    %c0_5 = arith.constant 0 : index
    %7 = vector.load %arg13[%c1_4, %c0_5] : memref<64x384xf32, #tpu.memory_space<vmem>>, vector<1x384xf32>
    tpu.vector_store %arg13[%c1_4, %c0_5], %6 {strides = array<i32>} : memref<64x384xf32, #tpu.memory_space<vmem>>, vector<1x384xf32>,
    %c2 = arith.constant 2 : index
    %8 = memref.load %arg1[%c2] : memref<64xi32, #tpu.memory_space<smem>>
    %9 = arith.index_cast %8 : i32 to index
    %c0_6 = arith.constant 0 : index
    %10 = vector.load %arg2[%9, %c0_6] : memref<56x384xf32, #tpu.memory_space<vmem>>, vector<1x384xf32>
    %c2_7 = arith.constant 2 : index
    %c0_8 = arith.constant 0 : index
    %11 = vector.load %arg13[%c2_7, %c0_8] : memref<64x384xf32, #tpu.memory_space<vmem>>, vector<1x384xf32>
    tpu.vector_store %arg13[%c2_7, %c0_8], %10 {strides = array<i32>} : memref<64x384xf32, #tpu.memory_space<vmem>>, vector<1x384xf32>,
    %c3 = arith.constant 3 : index
    %12 = memref.load %arg1[%c3] : memref<64xi32, #tpu.memory_space<smem>>
    %13 = arith.index_cast %12 : i32 to index
    %c0_9 = arith.constant 0 : index
    %14 = vector.load %arg2[%13, %c0_9] : memref<56x384xf32, #tpu.memory_space<vmem>>, vector<1x384xf32>
    %c3_10 = arith.constant 3 : index
    %c0_11 = arith.constant 0 : index
    %15 = vector.load %arg13[%c3_10, %c0_11] : memref<64x384xf32, #tpu.memory_space<vmem>>, vector<1x384xf32>
    tpu.vector_store %arg13[%c3_10, %c0_11], %14 {strides = array<i32>} : memref<64x384xf32, #tpu.memory_space<vmem>>, vector<1x384xf32>,
    %c4 = arith.constant 4 : index
    %16 = memref.load %arg1[%c4] : memref<64xi32, #tpu.memory_space<smem>>
    %17 = arith.index_cast %16 : i32 to index
    %c0_12 = arith.constant 0 : index
    %18 = vector.load %arg2[%17, %c0_12] : memref<56x384xf32, #tpu.memory_space<vmem>>, vector<1x384xf32>
    %c4_13 = arith.constant 4 : index
    %c0_14 = arith.constant 0 : index
    %19 = vector.load %arg13[%c4_13, %c0_14] : memref<64x384xf32, #tpu.memory_space<vmem>>, vector<1x384xf32>
    tpu.vector_store %arg13[%c4_13, %c0_14], %18 {strides = array<i32>} : memref<64x384xf32, #tpu.memory_space<vmem>>, vector<1x384xf32>,
    %c5 = arith.constant 5 : index
    %20 = memref.load %arg1[%c5] : memref<64xi32, #tpu.memory_space<smem>>
    %21 = arith.index_cast %20 : i32 to index
    %c0_15 = arith.constant 0 : index
    %22 = vector.load %arg2[%21, %c0_15] : memref<56x384xf32, #tpu.memory_space<vmem>>, vector<1x384xf32>
    %c5_16 = arith.constant 5 : index
    %c0_17 = arith.constant 0 : index
    %23 = vector.load %arg13[%c5_16, %c0_17] : memref<64x384xf32, #tpu.memory_space<vmem>>, vector<1x384xf32>
    tpu.vector_store %arg13[%c5_16, %c0_17], %22 {strides = array<i32>} : memref<64x384xf32, #tpu.memory_space<vmem>>, vector<1x384xf32>,
    %c6 = arith.constant 6 : index
    %24 = memref.load %arg1[%c6] : memref<64xi32, #tpu.memory_space<smem>>
    %25 = arith.index_cast %24 : i32 to index
    %c0_18 = arith.constant 0 : index
    %26 = vector.load %arg2[%25, %c0_18] : memref<56x384xf32, #tpu.memory_space<vmem>>, vector<1x384xf32>
    %c6_19 = arith.constant 6 : index
    %c0_20 = arith.constant 0 : index
    %27 = vector.load %arg13[%c6_19, %c0_20] : memref<64x384xf32, #tpu.memory_space<vmem>>, vector<1x384xf32>
    tpu.vector_store %arg13[%c6_19, %c0_20], %26 {strides = array<i32>} : memref<64x384xf32, #tpu.memory_space<vmem>>, vector<1x384xf32>,
    %c7 = arith.constant 7 : index
    %28 = memref.load %arg1[%c7] : memref<64xi32, #tpu.memory_space<smem>>
    %29 = arith.index_cast %28 : i32 to index
    %c0_21 = arith.constant 0 : index
    %30 = vector.load %arg2[%29, %c0_21] : memref<56x384xf32, #tpu.memory_space<vmem>>, vector<1x384xf32>
    %c7_22 = arith.constant 7 : index
    %c0_23 = arith.constant 0 : index
    %31 = vector.load %arg13[%c7_22, %c0_23] : memref<64x384xf32, #tpu.memory_space<vmem>>, vector<1x384xf32>
    tpu.vector_store %arg13[%c7_22, %c0_23], %30 {strides = array<i32>} : memref<64x384xf32, #tpu.memory_space<vmem>>, vector<1x384xf32>,
    %c8 = arith.constant 8 : index
    %32 = memref.load %arg1[%c8] : memref<64xi32, #tpu.memory_space<smem>>
    %33 = arith.index_cast %32 : i32 to index
    %c0_24 = arith.constant 0 : index
    %34 = vector.load %arg2[%33, %c0_24] : memref<56x384xf32, #tpu.memory_space<vmem>>, vector<1x384xf32>
    %c8_25 = arith.constant 8 : index
    %c0_26 = arith.constant 0 : index
    %35 = vector.load %arg13[%c8_25, %c0_26] : memref<64x384xf32, #tpu.memory_space<vmem>>, vector<1x384xf32>
    tpu.vector_store %arg13[%c8_25, %c0_26], %34 {strides = array<i32>} : memref<64x384xf32, #tpu.memory_space<vmem>>, vector<1x384xf32>,
    %c9 = arith.constant 9 : index
    %36 = memref.load %arg1[%c9] : memref<64xi32, #tpu.memory_space<smem>>
    %37 = arith.index_cast %36 : i32 to index
    %c0_27 = arith.constant 0 : index
    %38 = vector.load %arg2[%37, %c0_27] : memref<56x384xf32, #tpu.memory_space<vmem>>, vector<1x384xf32>
    %c9_28 = arith.constant 9 : index
    %c0_29 = arith.constant 0 : index
    %39 = vector.load %arg13[%c9_28, %c0_29] : memref<64x384xf32, #tpu.memory_space<vmem>>, vector<1x384xf32>
    tpu.vector_store %arg13[%c9_28, %c0_29], %38 {strides = array<i32>} : memref<64x384xf32, #tpu.memory_space<vmem>>, vector<1x384xf32>,
    %c10 = arith.constant 10 : index
    %40 = memref.load %arg1[%c10] : memref<64xi32, #tpu.memory_space<smem>>
    %41 = arith.index_cast %40 : i32 to index
    %c0_30 = arith.constant 0 : index
    %42 = vector.load %arg2[%41, %c0_30] : memref<56x384xf32, #tpu.memory_space<vmem>>, vector<1x384xf32>
    %c10_31 = arith.constant 10 : index
    %c0_32 = arith.constant 0 : index
    %43 = vector.load %arg13[%c10_31, %c0_32] : memref<64x384xf32, #tpu.memory_space<vmem>>, vector<1x384xf32>
    tpu.vector_store %arg13[%c10_31, %c0_32], %42 {strides = array<i32>} : memref<64x384xf32, #tpu.memory_space<vmem>>, vector<1x384xf32>,
    %c11 = arith.constant 11 : index
    %44 = memref.load %arg1[%c11] : memref<64xi32, #tpu.memory_space<smem>>
    %45 = arith.index_cast %44 : i32 to index
    %c0_33 = arith.constant 0 : index
    %46 = vector.load %arg2[%45, %c0_33] : memref<56x384xf32, #tpu.memory_space<vmem>>, vector<1x384xf32>
    %c11_34 = arith.constant 11 : index
    %c0_35 = arith.constant 0 : index
    %47 = vector.load %arg13[%c11_34, %c0_35] : memref<64x384xf32, #tpu.memory_space<vmem>>, vector<1x384xf32>
    tpu.vector_store %arg13[%c11_34, %c0_35], %46 {strides = array<i32>} : memref<64x384xf32, #tpu.memory_space<vmem>>, vector<1x384xf32>,
    %c12 = arith.constant 12 : index
    %48 = memref.load %arg1[%c12] : memref<64xi32, #tpu.memory_space<smem>>
    %49 = arith.index_cast %48 : i32 to index
    %c0_36 = arith.constant 0 : index
    %50 = vector.load %arg2[%49, %c0_36] : memref<56x384xf32, #tpu.memory_space<vmem>>, vector<1x384xf32>
    %c12_37 = arith.constant 12 : index
    %c0_38 = arith.constant 0 : index
    %51 = vector.load %arg13[%c12_37, %c0_38] : memref<64x384xf32, #tpu.memory_space<vmem>>, vector<1x384xf32>
    tpu.vector_store %arg13[%c12_37, %c0_38], %50 {strides = array<i32>} : memref<64x384xf32, #tpu.memory_space<vmem>>, vector<1x384xf32>,
    %c13 = arith.constant 13 : index
    %52 = memref.load %arg1[%c13] : memref<64xi32, #tpu.memory_space<smem>>
    %53 = arith.index_cast %52 : i32 to index
    %c0_39 = arith.constant 0 : index
    %54 = vector.load %arg2[%53, %c0_39] : memref<56x384xf32, #tpu.memory_space<vmem>>, vector<1x384xf32>
    %c13_40 = arith.constant 13 : index
    %c0_41 = arith.constant 0 : index
    %55 = vector.load %arg13[%c13_40, %c0_41] : memref<64x384xf32, #tpu.memory_space<vmem>>, vector<1x384xf32>
    tpu.vector_store %arg13[%c13_40, %c0_41], %54 {strides = array<i32>} : memref<64x384xf32, #tpu.memory_space<vmem>>, vector<1x384xf32>,
    %c14 = arith.constant 14 : index
    %56 = memref.load %arg1[%c14] : memref<64xi32, #tpu.memory_space<smem>>
    %57 = arith.index_cast %56 : i32 to index
    %c0_42 = arith.constant 0 : index
    %58 = vector.load %arg2[%57, %c0_42] : memref<56x384xf32, #tpu.memory_space<vmem>>, vector<1x384xf32>
    %c14_43 = arith.constant 14 : index
    %c0_44 = arith.constant 0 : index
    %59 = vector.load %arg13[%c14_43, %c0_44] : memref<64x384xf32, #tpu.memory_space<vmem>>, vector<1x384xf32>
    tpu.vector_store %arg13[%c14_43, %c0_44], %58 {strides = array<i32>} : memref<64x384xf32, #tpu.memory_space<vmem>>, vector<1x384xf32>,
    %c15 = arith.constant 15 : index
    %60 = memref.load %arg1[%c15] : memref<64xi32, #tpu.memory_space<smem>>
    %61 = arith.index_cast %60 : i32 to index
    %c0_45 = arith.constant 0 : index
    %62 = vector.load %arg2[%61, %c0_45] : memref<56x384xf32, #tpu.memory_space<vmem>>, vector<1x384xf32>
    %c15_46 = arith.constant 15 : index
    %c0_47 = arith.constant 0 : index
    %63 = vector.load %arg13[%c15_46, %c0_47] : memref<64x384xf32, #tpu.memory_space<vmem>>, vector<1x384xf32>
    tpu.vector_store %arg13[%c15_46, %c0_47], %62 {strides = array<i32>} : memref<64x384xf32, #tpu.memory_space<vmem>>, vector<1x384xf32>,
    %c16 = arith.constant 16 : index
    %64 = memref.load %arg1[%c16] : memref<64xi32, #tpu.memory_space<smem>>
    %65 = arith.index_cast %64 : i32 to index
    %c0_48 = arith.constant 0 : index
    %66 = vector.load %arg2[%65, %c0_48] : memref<56x384xf32, #tpu.memory_space<vmem>>, vector<1x384xf32>
    %c16_49 = arith.constant 16 : index
    %c0_50 = arith.constant 0 : index
    %67 = vector.load %arg13[%c16_49, %c0_50] : memref<64x384xf32, #tpu.memory_space<vmem>>, vector<1x384xf32>
    tpu.vector_store %arg13[%c16_49, %c0_50], %66 {strides = array<i32>} : memref<64x384xf32, #tpu.memory_space<vmem>>, vector<1x384xf32>,
    %c17 = arith.constant 17 : index
    %68 = memref.load %arg1[%c17] : memref<64xi32, #tpu.memory_space<smem>>
    %69 = arith.index_cast %68 : i32 to index
    %c0_51 = arith.constant 0 : index
    %70 = vector.load %arg2[%69, %c0_51] : memref<56x384xf32, #tpu.memory_space<vmem>>, vector<1x384xf32>
    %c17_52 = arith.constant 17 : index
    %c0_53 = arith.constant 0 : index
    %71 = vector.load %arg13[%c17_52, %c0_53] : memref<64x384xf32, #tpu.memory_space<vmem>>, vector<1x384xf32>
    tpu.vector_store %arg13[%c17_52, %c0_53], %70 {strides = array<i32>} : memref<64x384xf32, #tpu.memory_space<vmem>>, vector<1x384xf32>,
    %c18 = arith.constant 18 : index
    %72 = memref.load %arg1[%c18] : memref<64xi32, #tpu.memory_space<smem>>
    %73 = arith.index_cast %72 : i32 to index
    %c0_54 = arith.constant 0 : index
    %74 = vector.load %arg2[%73, %c0_54] : memref<56x384xf32, #tpu.memory_space<vmem>>, vector<1x384xf32>
    %c18_55 = arith.constant 18 : index
    %c0_56 = arith.constant 0 : index
    %75 = vector.load %arg13[%c18_55, %c0_56] : memref<64x384xf32, #tpu.memory_space<vmem>>, vector<1x384xf32>
    tpu.vector_store %arg13[%c18_55, %c0_56], %74 {strides = array<i32>} : memref<64x384xf32, #tpu.memory_space<vmem>>, vector<1x384xf32>,
    %c19 = arith.constant 19 : index
    %76 = memref.load %arg1[%c19] : memref<64xi32, #tpu.memory_space<smem>>
    %77 = arith.index_cast %76 : i32 to index
    %c0_57 = arith.constant 0 : index
    %78 = vector.load %arg2[%77, %c0_57] : memref<56x384xf32, #tpu.memory_space<vmem>>, vector<1x384xf32>
    %c19_58 = arith.constant 19 : index
    %c0_59 = arith.constant 0 : index
    %79 = vector.load %arg13[%c19_58, %c0_59] : memref<64x384xf32, #tpu.memory_space<vmem>>, vector<1x384xf32>
    tpu.vector_store %arg13[%c19_58, %c0_59], %78 {strides = array<i32>} : memref<64x384xf32, #tpu.memory_space<vmem>>, vector<1x384xf32>,
    %c20 = arith.constant 20 : index
    %80 = memref.load %arg1[%c20] : memref<64xi32, #tpu.memory_space<smem>>
    %81 = arith.index_cast %80 : i32 to index
    %c0_60 = arith.constant 0 : index
    %82 = vector.load %arg2[%81, %c0_60] : memref<56x384xf32, #tpu.memory_space<vmem>>, vector<1x384xf32>
    %c20_61 = arith.constant 20 : index
    %c0_62 = arith.constant 0 : index
    %83 = vector.load %arg13[%c20_61, %c0_62] : memref<64x384xf32, #tpu.memory_space<vmem>>, vector<1x384xf32>
    tpu.vector_store %arg13[%c20_61, %c0_62], %82 {strides = array<i32>} : memref<64x384xf32, #tpu.memory_space<vmem>>, vector<1x384xf32>,
    %c21 = arith.constant 21 : index
    %84 = memref.load %arg1[%c21] : memref<64xi32, #tpu.memory_space<smem>>
    %85 = arith.index_cast %84 : i32 to index
    %c0_63 = arith.constant 0 : index
    %86 = vector.load %arg2[%85, %c0_63] : memref<56x384xf32, #tpu.memory_space<vmem>>, vector<1x384xf32>
    %c21_64 = arith.constant 21 : index
    %c0_65 = arith.constant 0 : index
    %87 = vector.load %arg13[%c21_64, %c0_65] : memref<64x384xf32, #tpu.memory_space<vmem>>, vector<1x384xf32>
    tpu.vector_store %arg13[%c21_64, %c0_65], %86 {strides = array<i32>} : memref<64x384xf32, #tpu.memory_space<vmem>>, vector<1x384xf32>,
    %c22 = arith.constant 22 : index
    %88 = memref.load %arg1[%c22] : memref<64xi32, #tpu.memory_space<smem>>
    %89 = arith.index_cast %88 : i32 to index
    %c0_66 = arith.constant 0 : index
    %90 = vector.load %arg2[%89, %c0_66] : memref<56x384xf32, #tpu.memory_space<vmem>>, vector<1x384xf32>
    %c22_67 = arith.constant 22 : index
    %c0_68 = arith.constant 0 : index
    %91 = vector.load %arg13[%c22_67, %c0_68] : memref<64x384xf32, #tpu.memory_space<vmem>>, vector<1x384xf32>
    tpu.vector_store %arg13[%c22_67, %c0_68], %90 {strides = array<i32>} : memref<64x384xf32, #tpu.memory_space<vmem>>, vector<1x384xf32>,
    %c23 = arith.constant 23 : index
    %92 = memref.load %arg1[%c23] : memref<64xi32, #tpu.memory_space<smem>>
    %93 = arith.index_cast %92 : i32 to index
    %c0_69 = arith.constant 0 : index
    %94 = vector.load %arg2[%93, %c0_69] : memref<56x384xf32, #tpu.memory_space<vmem>>, vector<1x384xf32>
    %c23_70 = arith.constant 23 : index
    %c0_71 = arith.constant 0 : index
    %95 = vector.load %arg13[%c23_70, %c0_71] : memref<64x384xf32, #tpu.memory_space<vmem>>, vector<1x384xf32>
    tpu.vector_store %arg13[%c23_70, %c0_71], %94 {strides = array<i32>} : memref<64x384xf32, #tpu.memory_space<vmem>>, vector<1x384xf32>,
    %c24 = arith.constant 24 : index
    %96 = memref.load %arg1[%c24] : memref<64xi32, #tpu.memory_space<smem>>
    %97 = arith.index_cast %96 : i32 to index
    %c0_72 = arith.constant 0 : index
    %98 = vector.load %arg2[%97, %c0_72] : memref<56x384xf32, #tpu.memory_space<vmem>>, vector<1x384xf32>
    %c24_73 = arith.constant 24 : index
    %c0_74 = arith.constant 0 : index
    %99 = vector.load %arg13[%c24_73, %c0_74] : memref<64x384xf32, #tpu.memory_space<vmem>>, vector<1x384xf32>
    tpu.vector_store %arg13[%c24_73, %c0_74], %98 {strides = array<i32>} : memref<64x384xf32, #tpu.memory_space<vmem>>, vector<1x384xf32>,
    %c25 = arith.constant 25 : index
    %100 = memref.load %arg1[%c25] : memref<64xi32, #tpu.memory_space<smem>>
    %101 = arith.index_cast %100 : i32 to index
    %c0_75 = arith.constant 0 : index
    %102 = vector.load %arg2[%101, %c0_75] : memref<56x384xf32, #tpu.memory_space<vmem>>, vector<1x384xf32>
    %c25_76 = arith.constant 25 : index
    %c0_77 = arith.constant 0 : index
    %103 = vector.load %arg13[%c25_76, %c0_77] : memref<64x384xf32, #tpu.memory_space<vmem>>, vector<1x384xf32>
    tpu.vector_store %arg13[%c25_76, %c0_77], %102 {strides = array<i32>} : memref<64x384xf32, #tpu.memory_space<vmem>>, vector<1x384xf32>,
    %c26 = arith.constant 26 : index
    %104 = memref.load %arg1[%c26] : memref<64xi32, #tpu.memory_space<smem>>
    %105 = arith.index_cast %104 : i32 to index
    %c0_78 = arith.constant 0 : index
    %106 = vector.load %arg2[%105, %c0_78] : memref<56x384xf32, #tpu.memory_space<vmem>>, vector<1x384xf32>
    %c26_79 = arith.constant 26 : index
    %c0_80 = arith.constant 0 : index
    %107 = vector.load %arg13[%c26_79, %c0_80] : memref<64x384xf32, #tpu.memory_space<vmem>>, vector<1x384xf32>
    tpu.vector_store %arg13[%c26_79, %c0_80], %106 {strides = array<i32>} : memref<64x384xf32, #tpu.memory_space<vmem>>, vector<1x384xf32>,
    %c27 = arith.constant 27 : index
    %108 = memref.load %arg1[%c27] : memref<64xi32, #tpu.memory_space<smem>>
    %109 = arith.index_cast %108 : i32 to index
    %c0_81 = arith.constant 0 : index
    %110 = vector.load %arg2[%109, %c0_81] : memref<56x384xf32, #tpu.memory_space<vmem>>, vector<1x384xf32>
    %c27_82 = arith.constant 27 : index
    %c0_83 = arith.constant 0 : index
    %111 = vector.load %arg13[%c27_82, %c0_83] : memref<64x384xf32, #tpu.memory_space<vmem>>, vector<1x384xf32>
    tpu.vector_store %arg13[%c27_82, %c0_83], %110 {strides = array<i32>} : memref<64x384xf32, #tpu.memory_space<vmem>>, vector<1x384xf32>,
    %c28 = arith.constant 28 : index
    %112 = memref.load %arg1[%c28] : memref<64xi32, #tpu.memory_space<smem>>
    %113 = arith.index_cast %112 : i32 to index
    %c0_84 = arith.constant 0 : index
    %114 = vector.load %arg2[%113, %c0_84] : memref<56x384xf32, #tpu.memory_space<vmem>>, vector<1x384xf32>
    %c28_85 = arith.constant 28 : index
    %c0_86 = arith.constant 0 : index
    %115 = vector.load %arg13[%c28_85, %c0_86] : memref<64x384xf32, #tpu.memory_space<vmem>>, vector<1x384xf32>
    tpu.vector_store %arg13[%c28_85, %c0_86], %114 {strides = array<i32>} : memref<64x384xf32, #tpu.memory_space<vmem>>, vector<1x384xf32>,
    %c29 = arith.constant 29 : index
    %116 = memref.load %arg1[%c29] : memref<64xi32, #tpu.memory_space<smem>>
    %117 = arith.index_cast %116 : i32 to index
    %c0_87 = arith.constant 0 : index
    %118 = vector.load %arg2[%117, %c0_87] : memref<56x384xf32, #tpu.memory_space<vmem>>, vector<1x384xf32>
    %c29_88 = arith.constant 29 : index
    %c0_89 = arith.constant 0 : index
    %119 = vector.load %arg13[%c29_88, %c0_89] : memref<64x384xf32, #tpu.memory_space<vmem>>, vector<1x384xf32>
    tpu.vector_store %arg13[%c29_88, %c0_89], %118 {strides = array<i32>} : memref<64x384xf32, #tpu.memory_space<vmem>>, vector<1x384xf32>,
    %c30 = arith.constant 30 : index
    %120 = memref.load %arg1[%c30] : memref<64xi32, #tpu.memory_space<smem>>
    %121 = arith.index_cast %120 : i32 to index
    %c0_90 = arith.constant 0 : index
    %122 = vector.load %arg2[%121, %c0_90] : memref<56x384xf32, #tpu.memory_space<vmem>>, vector<1x384xf32>
    %c30_91 = arith.constant 30 : index
    %c0_92 = arith.constant 0 : index
    %123 = vector.load %arg13[%c30_91, %c0_92] : memref<64x384xf32, #tpu.memory_space<vmem>>, vector<1x384xf32>
    tpu.vector_store %arg13[%c30_91, %c0_92], %122 {strides = array<i32>} : memref<64x384xf32, #tpu.memory_space<vmem>>, vector<1x384xf32>,
    %c31 = arith.constant 31 : index
    %124 = memref.load %arg1[%c31] : memref<64xi32, #tpu.memory_space<smem>>
    %125 = arith.index_cast %124 : i32 to index
    %c0_93 = arith.constant 0 : index
    %126 = vector.load %arg2[%125, %c0_93] : memref<56x384xf32, #tpu.memory_space<vmem>>, vector<1x384xf32>
    %c31_94 = arith.constant 31 : index
    %c0_95 = arith.constant 0 : index
    %127 = vector.load %arg13[%c31_94, %c0_95] : memref<64x384xf32, #tpu.memory_space<vmem>>, vector<1x384xf32>
    tpu.vector_store %arg13[%c31_94, %c0_95], %126 {strides = array<i32>} : memref<64x384xf32, #tpu.memory_space<vmem>>, vector<1x384xf32>,
    %c32 = arith.constant 32 : index
    %128 = memref.load %arg1[%c32] : memref<64xi32, #tpu.memory_space<smem>>
    %129 = arith.index_cast %128 : i32 to index
    %c0_96 = arith.constant 0 : index
    %130 = vector.load %arg2[%129, %c0_96] : memref<56x384xf32, #tpu.memory_space<vmem>>, vector<1x384xf32>
    %c32_97 = arith.constant 32 : index
    %c0_98 = arith.constant 0 : index
    %131 = vector.load %arg13[%c32_97, %c0_98] : memref<64x384xf32, #tpu.memory_space<vmem>>, vector<1x384xf32>
    tpu.vector_store %arg13[%c32_97, %c0_98], %130 {strides = array<i32>} : memref<64x384xf32, #tpu.memory_space<vmem>>, vector<1x384xf32>,
    %c33 = arith.constant 33 : index
    %132 = memref.load %arg1[%c33] : memref<64xi32, #tpu.memory_space<smem>>
    %133 = arith.index_cast %132 : i32 to index
    %c0_99 = arith.constant 0 : index
    %134 = vector.load %arg2[%133, %c0_99] : memref<56x384xf32, #tpu.memory_space<vmem>>, vector<1x384xf32>
    %c33_100 = arith.constant 33 : index
    %c0_101 = arith.constant 0 : index
    %135 = vector.load %arg13[%c33_100, %c0_101] : memref<64x384xf32, #tpu.memory_space<vmem>>, vector<1x384xf32>
    tpu.vector_store %arg13[%c33_100, %c0_101], %134 {strides = array<i32>} : memref<64x384xf32, #tpu.memory_space<vmem>>, vector<1x384xf32>,
    %c34 = arith.constant 34 : index
    %136 = memref.load %arg1[%c34] : memref<64xi32, #tpu.memory_space<smem>>
    %137 = arith.index_cast %136 : i32 to index
    %c0_102 = arith.constant 0 : index
    %138 = vector.load %arg2[%137, %c0_102] : memref<56x384xf32, #tpu.memory_space<vmem>>, vector<1x384xf32>
    %c34_103 = arith.constant 34 : index
    %c0_104 = arith.constant 0 : index
    %139 = vector.load %arg13[%c34_103, %c0_104] : memref<64x384xf32, #tpu.memory_space<vmem>>, vector<1x384xf32>
    tpu.vector_store %arg13[%c34_103, %c0_104], %138 {strides = array<i32>} : memref<64x384xf32, #tpu.memory_space<vmem>>, vector<1x384xf32>,
    %c35 = arith.constant 35 : index
    %140 = memref.load %arg1[%c35] : memref<64xi32, #tpu.memory_space<smem>>
    %141 = arith.index_cast %140 : i32 to index
    %c0_105 = arith.constant 0 : index
    %142 = vector.load %arg2[%141, %c0_105] : memref<56x384xf32, #tpu.memory_space<vmem>>, vector<1x384xf32>
    %c35_106 = arith.constant 35 : index
    %c0_107 = arith.constant 0 : index
    %143 = vector.load %arg13[%c35_106, %c0_107] : memref<64x384xf32, #tpu.memory_space<vmem>>, vector<1x384xf32>
    tpu.vector_store %arg13[%c35_106, %c0_107], %142 {strides = array<i32>} : memref<64x384xf32, #tpu.memory_space<vmem>>, vector<1x384xf32>,
    %c36 = arith.constant 36 : index
    %144 = memref.load %arg1[%c36] : memref<64xi32, #tpu.memory_space<smem>>
    %145 = arith.index_cast %144 : i32 to index
    %c0_108 = arith.constant 0 : index
    %146 = vector.load %arg2[%145, %c0_108] : memref<56x384xf32, #tpu.memory_space<vmem>>, vector<1x384xf32>
    %c36_109 = arith.constant 36 : index
    %c0_110 = arith.constant 0 : index
    %147 = vector.load %arg13[%c36_109, %c0_110] : memref<64x384xf32, #tpu.memory_space<vmem>>, vector<1x384xf32>
    tpu.vector_store %arg13[%c36_109, %c0_110], %146 {strides = array<i32>} : memref<64x384xf32, #tpu.memory_space<vmem>>, vector<1x384xf32>,
    %c37 = arith.constant 37 : index
    %148 = memref.load %arg1[%c37] : memref<64xi32, #tpu.memory_space<smem>>
    %149 = arith.index_cast %148 : i32 to index
    %c0_111 = arith.constant 0 : index
    %150 = vector.load %arg2[%149, %c0_111] : memref<56x384xf32, #tpu.memory_space<vmem>>, vector<1x384xf32>
    %c37_112 = arith.constant 37 : index
    %c0_113 = arith.constant 0 : index
    %151 = vector.load %arg13[%c37_112, %c0_113] : memref<64x384xf32, #tpu.memory_space<vmem>>, vector<1x384xf32>
    tpu.vector_store %arg13[%c37_112, %c0_113], %150 {strides = array<i32>} : memref<64x384xf32, #tpu.memory_space<vmem>>, vector<1x384xf32>,
    %c38 = arith.constant 38 : index
    %152 = memref.load %arg1[%c38] : memref<64xi32, #tpu.memory_space<smem>>
    %153 = arith.index_cast %152 : i32 to index
    %c0_114 = arith.constant 0 : index
    %154 = vector.load %arg2[%153, %c0_114] : memref<56x384xf32, #tpu.memory_space<vmem>>, vector<1x384xf32>
    %c38_115 = arith.constant 38 : index
    %c0_116 = arith.constant 0 : index
    %155 = vector.load %arg13[%c38_115, %c0_116] : memref<64x384xf32, #tpu.memory_space<vmem>>, vector<1x384xf32>
    tpu.vector_store %arg13[%c38_115, %c0_116], %154 {strides = array<i32>} : memref<64x384xf32, #tpu.memory_space<vmem>>, vector<1x384xf32>,
    %c39 = arith.constant 39 : index
    %156 = memref.load %arg1[%c39] : memref<64xi32, #tpu.memory_space<smem>>
    %157 = arith.index_cast %156 : i32 to index
    %c0_117 = arith.constant 0 : index
    %158 = vector.load %arg2[%157, %c0_117] : memref<56x384xf32, #tpu.memory_space<vmem>>, vector<1x384xf32>
    %c39_118 = arith.constant 39 : index
    %c0_119 = arith.constant 0 : index
    %159 = vector.load %arg13[%c39_118, %c0_119] : memref<64x384xf32, #tpu.memory_space<vmem>>, vector<1x384xf32>
    tpu.vector_store %arg13[%c39_118, %c0_119], %158 {strides = array<i32>} : memref<64x384xf32, #tpu.memory_space<vmem>>, vector<1x384xf32>,
    %c40 = arith.constant 40 : index
    %160 = memref.load %arg1[%c40] : memref<64xi32, #tpu.memory_space<smem>>
    %161 = arith.index_cast %160 : i32 to index
    %c0_120 = arith.constant 0 : index
    %162 = vector.load %arg2[%161, %c0_120] : memref<56x384xf32, #tpu.memory_space<vmem>>, vector<1x384xf32>
    %c40_121 = arith.constant 40 : index
    %c0_122 = arith.constant 0 : index
    %163 = vector.load %arg13[%c40_121, %c0_122] : memref<64x384xf32, #tpu.memory_space<vmem>>, vector<1x384xf32>
    tpu.vector_store %arg13[%c40_121, %c0_122], %162 {strides = array<i32>} : memref<64x384xf32, #tpu.memory_space<vmem>>, vector<1x384xf32>,
    %c41 = arith.constant 41 : index
    %164 = memref.load %arg1[%c41] : memref<64xi32, #tpu.memory_space<smem>>
    %165 = arith.index_cast %164 : i32 to index
    %c0_123 = arith.constant 0 : index
    %166 = vector.load %arg2[%165, %c0_123] : memref<56x384xf32, #tpu.memory_space<vmem>>, vector<1x384xf32>
    %c41_124 = arith.constant 41 : index
    %c0_125 = arith.constant 0 : index
    %167 = vector.load %arg13[%c41_124, %c0_125] : memref<64x384xf32, #tpu.memory_space<vmem>>, vector<1x384xf32>
    tpu.vector_store %arg13[%c41_124, %c0_125], %166 {strides = array<i32>} : memref<64x384xf32, #tpu.memory_space<vmem>>, vector<1x384xf32>,
    %c42 = arith.constant 42 : index
    %168 = memref.load %arg1[%c42] : memref<64xi32, #tpu.memory_space<smem>>
    %169 = arith.index_cast %168 : i32 to index
    %c0_126 = arith.constant 0 : index
    %170 = vector.load %arg2[%169, %c0_126] : memref<56x384xf32, #tpu.memory_space<vmem>>, vector<1x384xf32>
    %c42_127 = arith.constant 42 : index
    %c0_128 = arith.constant 0 : index
    %171 = vector.load %arg13[%c42_127, %c0_128] : memref<64x384xf32, #tpu.memory_space<vmem>>, vector<1x384xf32>
    tpu.vector_store %arg13[%c42_127, %c0_128], %170 {strides = array<i32>} : memref<64x384xf32, #tpu.memory_space<vmem>>, vector<1x384xf32>,
    %c43 = arith.constant 43 : index
    %172 = memref.load %arg1[%c43] : memref<64xi32, #tpu.memory_space<smem>>
    %173 = arith.index_cast %172 : i32 to index
    %c0_129 = arith.constant 0 : index
    %174 = vector.load %arg2[%173, %c0_129] : memref<56x384xf32, #tpu.memory_space<vmem>>, vector<1x384xf32>
    %c43_130 = arith.constant 43 : index
    %c0_131 = arith.constant 0 : index
    %175 = vector.load %arg13[%c43_130, %c0_131] : memref<64x384xf32, #tpu.memory_space<vmem>>, vector<1x384xf32>
    tpu.vector_store %arg13[%c43_130, %c0_131], %174 {strides = array<i32>} : memref<64x384xf32, #tpu.memory_space<vmem>>, vector<1x384xf32>,
    %c44 = arith.constant 44 : index
    %176 = memref.load %arg1[%c44] : memref<64xi32, #tpu.memory_space<smem>>
    %177 = arith.index_cast %176 : i32 to index
    %c0_132 = arith.constant 0 : index
    %178 = vector.load %arg2[%177, %c0_132] : memref<56x384xf32, #tpu.memory_space<vmem>>, vector<1x384xf32>
    %c44_133 = arith.constant 44 : index
    %c0_134 = arith.constant 0 : index
    %179 = vector.load %arg13[%c44_133, %c0_134] : memref<64x384xf32, #tpu.memory_space<vmem>>, vector<1x384xf32>
    tpu.vector_store %arg13[%c44_133, %c0_134], %178 {strides = array<i32>} : memref<64x384xf32, #tpu.memory_space<vmem>>, vector<1x384xf32>,
    %c45 = arith.constant 45 : index
    %180 = memref.load %arg1[%c45] : memref<64xi32, #tpu.memory_space<smem>>
    %181 = arith.index_cast %180 : i32 to index
    %c0_135 = arith.constant 0 : index
    %182 = vector.load %arg2[%181, %c0_135] : memref<56x384xf32, #tpu.memory_space<vmem>>, vector<1x384xf32>
    %c45_136 = arith.constant 45 : index
    %c0_137 = arith.constant 0 : index
    %183 = vector.load %arg13[%c45_136, %c0_137] : memref<64x384xf32, #tpu.memory_space<vmem>>, vector<1x384xf32>
    tpu.vector_store %arg13[%c45_136, %c0_137], %182 {strides = array<i32>} : memref<64x384xf32, #tpu.memory_space<vmem>>, vector<1x384xf32>,
    %c46 = arith.constant 46 : index
    %184 = memref.load %arg1[%c46] : memref<64xi32, #tpu.memory_space<smem>>
    %185 = arith.index_cast %184 : i32 to index
    %c0_138 = arith.constant 0 : index
    %186 = vector.load %arg2[%185, %c0_138] : memref<56x384xf32, #tpu.memory_space<vmem>>, vector<1x384xf32>
    %c46_139 = arith.constant 46 : index
    %c0_140 = arith.constant 0 : index
    %187 = vector.load %arg13[%c46_139, %c0_140] : memref<64x384xf32, #tpu.memory_space<vmem>>, vector<1x384xf32>
    tpu.vector_store %arg13[%c46_139, %c0_140], %186 {strides = array<i32>} : memref<64x384xf32, #tpu.memory_space<vmem>>, vector<1x384xf32>,
    %c47 = arith.constant 47 : index
    %188 = memref.load %arg1[%c47] : memref<64xi32, #tpu.memory_space<smem>>
    %189 = arith.index_cast %188 : i32 to index
    %c0_141 = arith.constant 0 : index
    %190 = vector.load %arg2[%189, %c0_141] : memref<56x384xf32, #tpu.memory_space<vmem>>, vector<1x384xf32>
    %c47_142 = arith.constant 47 : index
    %c0_143 = arith.constant 0 : index
    %191 = vector.load %arg13[%c47_142, %c0_143] : memref<64x384xf32, #tpu.memory_space<vmem>>, vector<1x384xf32>
    tpu.vector_store %arg13[%c47_142, %c0_143], %190 {strides = array<i32>} : memref<64x384xf32, #tpu.memory_space<vmem>>, vector<1x384xf32>,
    %c48 = arith.constant 48 : index
    %192 = memref.load %arg1[%c48] : memref<64xi32, #tpu.memory_space<smem>>
    %193 = arith.index_cast %192 : i32 to index
    %c0_144 = arith.constant 0 : index
    %194 = vector.load %arg2[%193, %c0_144] : memref<56x384xf32, #tpu.memory_space<vmem>>, vector<1x384xf32>
    %c48_145 = arith.constant 48 : index
    %c0_146 = arith.constant 0 : index
    %195 = vector.load %arg13[%c48_145, %c0_146] : memref<64x384xf32, #tpu.memory_space<vmem>>, vector<1x384xf32>
    tpu.vector_store %arg13[%c48_145, %c0_146], %194 {strides = array<i32>} : memref<64x384xf32, #tpu.memory_space<vmem>>, vector<1x384xf32>,
    %c49 = arith.constant 49 : index
    %196 = memref.load %arg1[%c49] : memref<64xi32, #tpu.memory_space<smem>>
    %197 = arith.index_cast %196 : i32 to index
    %c0_147 = arith.constant 0 : index
    %198 = vector.load %arg2[%197, %c0_147] : memref<56x384xf32, #tpu.memory_space<vmem>>, vector<1x384xf32>
    %c49_148 = arith.constant 49 : index
    %c0_149 = arith.constant 0 : index
    %199 = vector.load %arg13[%c49_148, %c0_149] : memref<64x384xf32, #tpu.memory_space<vmem>>, vector<1x384xf32>
    tpu.vector_store %arg13[%c49_148, %c0_149], %198 {strides = array<i32>} : memref<64x384xf32, #tpu.memory_space<vmem>>, vector<1x384xf32>,
    %c50 = arith.constant 50 : index
    %200 = memref.load %arg1[%c50] : memref<64xi32, #tpu.memory_space<smem>>
    %201 = arith.index_cast %200 : i32 to index
    %c0_150 = arith.constant 0 : index
    %202 = vector.load %arg2[%201, %c0_150] : memref<56x384xf32, #tpu.memory_space<vmem>>, vector<1x384xf32>
    %c50_151 = arith.constant 50 : index
    %c0_152 = arith.constant 0 : index
    %203 = vector.load %arg13[%c50_151, %c0_152] : memref<64x384xf32, #tpu.memory_space<vmem>>, vector<1x384xf32>
    tpu.vector_store %arg13[%c50_151, %c0_152], %202 {strides = array<i32>} : memref<64x384xf32, #tpu.memory_space<vmem>>, vector<1x384xf32>,
    %c51 = arith.constant 51 : index
    %204 = memref.load %arg1[%c51] : memref<64xi32, #tpu.memory_space<smem>>
    %205 = arith.index_cast %204 : i32 to index
    %c0_153 = arith.constant 0 : index
    %206 = vector.load %arg2[%205, %c0_153] : memref<56x384xf32, #tpu.memory_space<vmem>>, vector<1x384xf32>
    %c51_154 = arith.constant 51 : index
    %c0_155 = arith.constant 0 : index
    %207 = vector.load %arg13[%c51_154, %c0_155] : memref<64x384xf32, #tpu.memory_space<vmem>>, vector<1x384xf32>
    tpu.vector_store %arg13[%c51_154, %c0_155], %206 {strides = array<i32>} : memref<64x384xf32, #tpu.memory_space<vmem>>, vector<1x384xf32>,
    %c52 = arith.constant 52 : index
    %208 = memref.load %arg1[%c52] : memref<64xi32, #tpu.memory_space<smem>>
    %209 = arith.index_cast %208 : i32 to index
    %c0_156 = arith.constant 0 : index
    %210 = vector.load %arg2[%209, %c0_156] : memref<56x384xf32, #tpu.memory_space<vmem>>, vector<1x384xf32>
    %c52_157 = arith.constant 52 : index
    %c0_158 = arith.constant 0 : index
    %211 = vector.load %arg13[%c52_157, %c0_158] : memref<64x384xf32, #tpu.memory_space<vmem>>, vector<1x384xf32>
    tpu.vector_store %arg13[%c52_157, %c0_158], %210 {strides = array<i32>} : memref<64x384xf32, #tpu.memory_space<vmem>>, vector<1x384xf32>,
    %c53 = arith.constant 53 : index
    %212 = memref.load %arg1[%c53] : memref<64xi32, #tpu.memory_space<smem>>
    %213 = arith.index_cast %212 : i32 to index
    %c0_159 = arith.constant 0 : index
    %214 = vector.load %arg2[%213, %c0_159] : memref<56x384xf32, #tpu.memory_space<vmem>>, vector<1x384xf32>
    %c53_160 = arith.constant 53 : index
    %c0_161 = arith.constant 0 : index
    %215 = vector.load %arg13[%c53_160, %c0_161] : memref<64x384xf32, #tpu.memory_space<vmem>>, vector<1x384xf32>
    tpu.vector_store %arg13[%c53_160, %c0_161], %214 {strides = array<i32>} : memref<64x384xf32, #tpu.memory_space<vmem>>, vector<1x384xf32>,
    %c54 = arith.constant 54 : index
    %216 = memref.load %arg1[%c54] : memref<64xi32, #tpu.memory_space<smem>>
    %217 = arith.index_cast %216 : i32 to index
    %c0_162 = arith.constant 0 : index
    %218 = vector.load %arg2[%217, %c0_162] : memref<56x384xf32, #tpu.memory_space<vmem>>, vector<1x384xf32>
    %c54_163 = arith.constant 54 : index
    %c0_164 = arith.constant 0 : index
    %219 = vector.load %arg13[%c54_163, %c0_164] : memref<64x384xf32, #tpu.memory_space<vmem>>, vector<1x384xf32>
    tpu.vector_store %arg13[%c54_163, %c0_164], %218 {strides = array<i32>} : memref<64x384xf32, #tpu.memory_space<vmem>>, vector<1x384xf32>,
    %c55 = arith.constant 55 : index
    %220 = memref.load %arg1[%c55] : memref<64xi32, #tpu.memory_space<smem>>
    %221 = arith.index_cast %220 : i32 to index
    %c0_165 = arith.constant 0 : index
    %222 = vector.load %arg2[%221, %c0_165] : memref<56x384xf32, #tpu.memory_space<vmem>>, vector<1x384xf32>
    %c55_166 = arith.constant 55 : index
    %c0_167 = arith.constant 0 : index
    %223 = vector.load %arg13[%c55_166, %c0_167] : memref<64x384xf32, #tpu.memory_space<vmem>>, vector<1x384xf32>
    tpu.vector_store %arg13[%c55_166, %c0_167], %222 {strides = array<i32>} : memref<64x384xf32, #tpu.memory_space<vmem>>, vector<1x384xf32>,
    %c56 = arith.constant 56 : index
    %224 = memref.load %arg1[%c56] : memref<64xi32, #tpu.memory_space<smem>>
    %225 = arith.index_cast %224 : i32 to index
    %c0_168 = arith.constant 0 : index
    %226 = vector.load %arg2[%225, %c0_168] : memref<56x384xf32, #tpu.memory_space<vmem>>, vector<1x384xf32>
    %c56_169 = arith.constant 56 : index
    %c0_170 = arith.constant 0 : index
    %227 = vector.load %arg13[%c56_169, %c0_170] : memref<64x384xf32, #tpu.memory_space<vmem>>, vector<1x384xf32>
    tpu.vector_store %arg13[%c56_169, %c0_170], %226 {strides = array<i32>} : memref<64x384xf32, #tpu.memory_space<vmem>>, vector<1x384xf32>,
    %c57 = arith.constant 57 : index
    %228 = memref.load %arg1[%c57] : memref<64xi32, #tpu.memory_space<smem>>
    %229 = arith.index_cast %228 : i32 to index
    %c0_171 = arith.constant 0 : index
    %230 = vector.load %arg2[%229, %c0_171] : memref<56x384xf32, #tpu.memory_space<vmem>>, vector<1x384xf32>
    %c57_172 = arith.constant 57 : index
    %c0_173 = arith.constant 0 : index
    %231 = vector.load %arg13[%c57_172, %c0_173] : memref<64x384xf32, #tpu.memory_space<vmem>>, vector<1x384xf32>
    tpu.vector_store %arg13[%c57_172, %c0_173], %230 {strides = array<i32>} : memref<64x384xf32, #tpu.memory_space<vmem>>, vector<1x384xf32>,
    %c58 = arith.constant 58 : index
    %232 = memref.load %arg1[%c58] : memref<64xi32, #tpu.memory_space<smem>>
    %233 = arith.index_cast %232 : i32 to index
    %c0_174 = arith.constant 0 : index
    %234 = vector.load %arg2[%233, %c0_174] : memref<56x384xf32, #tpu.memory_space<vmem>>, vector<1x384xf32>
    %c58_175 = arith.constant 58 : index
    %c0_176 = arith.constant 0 : index
    %235 = vector.load %arg13[%c58_175, %c0_176] : memref<64x384xf32, #tpu.memory_space<vmem>>, vector<1x384xf32>
    tpu.vector_store %arg13[%c58_175, %c0_176], %234 {strides = array<i32>} : memref<64x384xf32, #tpu.memory_space<vmem>>, vector<1x384xf32>,
    %c59 = arith.constant 59 : index
    %236 = memref.load %arg1[%c59] : memref<64xi32, #tpu.memory_space<smem>>
    %237 = arith.index_cast %236 : i32 to index
    %c0_177 = arith.constant 0 : index
    %238 = vector.load %arg2[%237, %c0_177] : memref<56x384xf32, #tpu.memory_space<vmem>>, vector<1x384xf32>
    %c59_178 = arith.constant 59 : index
    %c0_179 = arith.constant 0 : index
    %239 = vector.load %arg13[%c59_178, %c0_179] : memref<64x384xf32, #tpu.memory_space<vmem>>, vector<1x384xf32>
    tpu.vector_store %arg13[%c59_178, %c0_179], %238 {strides = array<i32>} : memref<64x384xf32, #tpu.memory_space<vmem>>, vector<1x384xf32>,
    %c60 = arith.constant 60 : index
    %240 = memref.load %arg1[%c60] : memref<64xi32, #tpu.memory_space<smem>>
    %241 = arith.index_cast %240 : i32 to index
    %c0_180 = arith.constant 0 : index
    %242 = vector.load %arg2[%241, %c0_180] : memref<56x384xf32, #tpu.memory_space<vmem>>, vector<1x384xf32>
    %c60_181 = arith.constant 60 : index
    %c0_182 = arith.constant 0 : index
    %243 = vector.load %arg13[%c60_181, %c0_182] : memref<64x384xf32, #tpu.memory_space<vmem>>, vector<1x384xf32>
    tpu.vector_store %arg13[%c60_181, %c0_182], %242 {strides = array<i32>} : memref<64x384xf32, #tpu.memory_space<vmem>>, vector<1x384xf32>,
    %c61 = arith.constant 61 : index
    %244 = memref.load %arg1[%c61] : memref<64xi32, #tpu.memory_space<smem>>
    %245 = arith.index_cast %244 : i32 to index
    %c0_183 = arith.constant 0 : index
    %246 = vector.load %arg2[%245, %c0_183] : memref<56x384xf32, #tpu.memory_space<vmem>>, vector<1x384xf32>
    %c61_184 = arith.constant 61 : index
    %c0_185 = arith.constant 0 : index
    %247 = vector.load %arg13[%c61_184, %c0_185] : memref<64x384xf32, #tpu.memory_space<vmem>>, vector<1x384xf32>
    tpu.vector_store %arg13[%c61_184, %c0_185], %246 {strides = array<i32>} : memref<64x384xf32, #tpu.memory_space<vmem>>, vector<1x384xf32>,
    %c62 = arith.constant 62 : index
    %248 = memref.load %arg1[%c62] : memref<64xi32, #tpu.memory_space<smem>>
    %249 = arith.index_cast %248 : i32 to index
    %c0_186 = arith.constant 0 : index
    %250 = vector.load %arg2[%249, %c0_186] : memref<56x384xf32, #tpu.memory_space<vmem>>, vector<1x384xf32>
    %c62_187 = arith.constant 62 : index
    %c0_188 = arith.constant 0 : index
    %251 = vector.load %arg13[%c62_187, %c0_188] : memref<64x384xf32, #tpu.memory_space<vmem>>, vector<1x384xf32>
    tpu.vector_store %arg13[%c62_187, %c0_188], %250 {strides = array<i32>} : memref<64x384xf32, #tpu.memory_space<vmem>>, vector<1x384xf32>,
    %c63 = arith.constant 63 : index
    %252 = memref.load %arg1[%c63] : memref<64xi32, #tpu.memory_space<smem>>
    %253 = arith.index_cast %252 : i32 to index
    %c0_189 = arith.constant 0 : index
    %254 = vector.load %arg2[%253, %c0_189] : memref<56x384xf32, #tpu.memory_space<vmem>>, vector<1x384xf32>
    %c63_190 = arith.constant 63 : index
    %c0_191 = arith.constant 0 : index
    %255 = vector.load %arg13[%c63_190, %c0_191] : memref<64x384xf32, #tpu.memory_space<vmem>>, vector<1x384xf32>
    tpu.vector_store %arg13[%c63_190, %c0_191], %254 {strides = array<i32>} : memref<64x384xf32, #tpu.memory_space<vmem>>, vector<1x384xf32>,
    %c0_192 = arith.constant 0 : index
    %c0_193 = arith.constant 0 : index
    %256 = vector.load %arg13[%c0_192, %c0_193] : memref<64x384xf32, #tpu.memory_space<vmem>>, vector<64x384xf32>
    %257 = arith.truncf %256 : vector<64x384xf32> to vector<64x384xbf16>
    %c0_194 = arith.constant 0 : index
    %c0_195 = arith.constant 0 : index
    %258 = vector.load %arg3[%c0_194, %c0_195] : memref<384x128xbf16, #tpu.memory_space<vmem>>, vector<384x128xbf16>
    %cst = arith.constant dense<0.000000e+00> : vector<64x128xf32>
    %259 = tpu.matmul %257, %258, %cst {dimension_numbers = #tpu.dot_dimension_numbers<[1], [0], [0], [1], [0, 0, 1, 1], [], []>} : vector<64x384xbf16>, vector<384x128xbf16>, vector<64x128xf32> -> vector<64x128xf32>
    %c0_196 = arith.constant 0 : index
    %c0_197 = arith.constant 0 : index
    %260 = vector.load %arg4[%c0_196, %c0_197] : memref<1x128xf32, #tpu.memory_space<vmem>>, vector<1x128xf32>
    %261 = vector.broadcast %260 : vector<1x128xf32> to vector<64x128xf32>
    %262 = arith.addf %259, %261 : vector<64x128xf32>
    %c0_198 = arith.constant 0 : index
    %c0_199 = arith.constant 0 : index
    %263 = vector.load %arg5[%c0_198, %c0_199] : memref<32x128xbf16, #tpu.memory_space<vmem>>, vector<32x128xbf16>
    %c0_200 = arith.constant 0 : index
    %c0_201 = arith.constant 0 : index
    %264 = vector.load %arg6[%c0_200, %c0_201] : memref<32x128xbf16, #tpu.memory_space<vmem>>, vector<32x128xbf16>
    %c0_202 = arith.constant 0 : index
    %c0_203 = arith.constant 0 : index
    %265 = vector.load %arg7[%c0_202, %c0_203] : memref<32x128xbf16, #tpu.memory_space<vmem>>, vector<32x128xbf16>
    %c0_204 = arith.constant 0 : index
    %c0_205 = arith.constant 0 : index
    %266 = vector.load %arg8[%c0_204, %c0_205] : memref<1x128xf32, #tpu.memory_space<vmem>>, vector<1x128xf32>
    %267 = vector.shape_cast %266 : vector<1x128xf32> to vector<1x128xf32>
    %268 = vector.broadcast %267 : vector<1x128xf32> to vector<8x128xf32>
    %cst_206 = arith.constant 0.000000e+00 : f32
    %269 = vector.broadcast %cst_206 : f32 to vector<8x32xf32>
    %cst_207 = arith.constant 0.000000e+00 : f32
    %270 = vector.broadcast %cst_207 : f32 to vector<8x32xf32>
    %cst_208 = arith.constant 0.000000e+00 : f32
    %271 = vector.broadcast %cst_208 : f32 to vector<8x32xf32>
    %cst_209 = arith.constant 0.000000e+00 : f32
    %272 = vector.broadcast %cst_209 : f32 to vector<8x32xf32>
    %273 = vector.extract_strided_slice %262 {offsets = [0, 0], sizes = [8, 128], strides = [1, 1]} : vector<64x128xf32> to vector<8x128xf32>
    %274 = arith.truncf %269 : vector<8x32xf32> to vector<8x32xbf16>
    %cst_210 = arith.constant dense<0.000000e+00> : vector<8x128xf32>
    %275 = tpu.matmul %274, %263, %cst_210 {dimension_numbers = #tpu.dot_dimension_numbers<[1], [0], [0], [1], [0, 0, 1, 1], [], []>} : vector<8x32xbf16>, vector<32x128xbf16>, vector<8x128xf32> -> vector<8x128xf32>
    %276 = arith.addf %273, %275 : vector<8x128xf32>
    %277 = arith.negf %276 : vector<8x128xf32>
    %278 = math.exp %277 : vector<8x128xf32>
    %cst_211 = arith.constant 1.000000e+00 : f32
    %279 = vector.broadcast %cst_211 : f32 to vector<8x128xf32>
    %280 = arith.addf %279, %278 : vector<8x128xf32>
    %281 = arith.divf %279, %280 : vector<8x128xf32>
    %282 = vector.extract_strided_slice %281 {offsets = [0, 0], sizes = [8, 32], strides = [1, 1]} : vector<8x128xf32> to vector<8x32xf32>
    %283 = vector.extract_strided_slice %281 {offsets = [0, 32], sizes = [8, 32], strides = [1, 1]} : vector<8x128xf32> to vector<8x32xf32>
    %284 = vector.extract_strided_slice %281 {offsets = [0, 96], sizes = [8, 32], strides = [1, 1]} : vector<8x128xf32> to vector<8x32xf32>
    %285 = vector.extract_strided_slice %276 {offsets = [0, 64], sizes = [8, 32], strides = [1, 1]} : vector<8x128xf32> to vector<8x32xf32>
    %286 = math.tanh %285 : vector<8x32xf32>
    %287 = arith.mulf %283, %270 : vector<8x32xf32>
    %288 = arith.mulf %282, %286 : vector<8x32xf32>
    %289 = arith.addf %287, %288 : vector<8x32xf32>
    %290 = math.tanh %289 : vector<8x32xf32>
    %291 = arith.mulf %284, %290 : vector<8x32xf32>
    %292 = arith.truncf %291 : vector<8x32xf32> to vector<8x32xbf16>
    %cst_212 = arith.constant dense<0.000000e+00> : vector<8x128xf32>
    %293 = tpu.matmul %292, %264, %cst_212 {dimension_numbers = #tpu.dot_dimension_numbers<[1], [0], [0], [1], [0, 0, 1, 1], [], []>} : vector<8x32xbf16>, vector<32x128xbf16>, vector<8x128xf32> -> vector<8x128xf32>
    %294 = arith.truncf %271 : vector<8x32xf32> to vector<8x32xbf16>
    %cst_213 = arith.constant dense<0.000000e+00> : vector<8x128xf32>
    %295 = tpu.matmul %294, %265, %cst_213 {dimension_numbers = #tpu.dot_dimension_numbers<[1], [0], [0], [1], [0, 0, 1, 1], [], []>} : vector<8x32xbf16>, vector<32x128xbf16>, vector<8x128xf32> -> vector<8x128xf32>
    %296 = arith.addf %293, %295 : vector<8x128xf32>
    %297 = arith.addf %296, %268 : vector<8x128xf32>
    %298 = arith.negf %297 : vector<8x128xf32>
    %299 = math.exp %298 : vector<8x128xf32>
    %cst_214 = arith.constant 1.000000e+00 : f32
    %300 = vector.broadcast %cst_214 : f32 to vector<8x128xf32>
    %301 = arith.addf %300, %299 : vector<8x128xf32>
    %302 = arith.divf %300, %301 : vector<8x128xf32>
    %303 = vector.extract_strided_slice %302 {offsets = [0, 0], sizes = [8, 32], strides = [1, 1]} : vector<8x128xf32> to vector<8x32xf32>
    %304 = vector.extract_strided_slice %302 {offsets = [0, 32], sizes = [8, 32], strides = [1, 1]} : vector<8x128xf32> to vector<8x32xf32>
    %305 = vector.extract_strided_slice %302 {offsets = [0, 96], sizes = [8, 32], strides = [1, 1]} : vector<8x128xf32> to vector<8x32xf32>
    %306 = vector.extract_strided_slice %297 {offsets = [0, 64], sizes = [8, 32], strides = [1, 1]} : vector<8x128xf32> to vector<8x32xf32>
    %307 = math.tanh %306 : vector<8x32xf32>
    %308 = arith.mulf %304, %272 : vector<8x32xf32>
    %309 = arith.mulf %303, %307 : vector<8x32xf32>
    %310 = arith.addf %308, %309 : vector<8x32xf32>
    %311 = math.tanh %310 : vector<8x32xf32>
    %312 = arith.mulf %305, %311 : vector<8x32xf32>
    %313 = vector.extract_strided_slice %262 {offsets = [8, 0], sizes = [8, 128], strides = [1, 1]} : vector<64x128xf32> to vector<8x128xf32>
    %314 = arith.truncf %291 : vector<8x32xf32> to vector<8x32xbf16>
    %cst_215 = arith.constant dense<0.000000e+00> : vector<8x128xf32>
    %315 = tpu.matmul %314, %263, %cst_215 {dimension_numbers = #tpu.dot_dimension_numbers<[1], [0], [0], [1], [0, 0, 1, 1], [], []>} : vector<8x32xbf16>, vector<32x128xbf16>, vector<8x128xf32> -> vector<8x128xf32>
    %316 = arith.addf %313, %315 : vector<8x128xf32>
    %317 = arith.negf %316 : vector<8x128xf32>
    %318 = math.exp %317 : vector<8x128xf32>
    %cst_216 = arith.constant 1.000000e+00 : f32
    %319 = vector.broadcast %cst_216 : f32 to vector<8x128xf32>
    %320 = arith.addf %319, %318 : vector<8x128xf32>
    %321 = arith.divf %319, %320 : vector<8x128xf32>
    %322 = vector.extract_strided_slice %321 {offsets = [0, 0], sizes = [8, 32], strides = [1, 1]} : vector<8x128xf32> to vector<8x32xf32>
    %323 = vector.extract_strided_slice %321 {offsets = [0, 32], sizes = [8, 32], strides = [1, 1]} : vector<8x128xf32> to vector<8x32xf32>
    %324 = vector.extract_strided_slice %321 {offsets = [0, 96], sizes = [8, 32], strides = [1, 1]} : vector<8x128xf32> to vector<8x32xf32>
    %325 = vector.extract_strided_slice %316 {offsets = [0, 64], sizes = [8, 32], strides = [1, 1]} : vector<8x128xf32> to vector<8x32xf32>
    %326 = math.tanh %325 : vector<8x32xf32>
    %327 = arith.mulf %323, %289 : vector<8x32xf32>
    %328 = arith.mulf %322, %326 : vector<8x32xf32>
    %329 = arith.addf %327, %328 : vector<8x32xf32>
    %330 = math.tanh %329 : vector<8x32xf32>
    %331 = arith.mulf %324, %330 : vector<8x32xf32>
    %332 = arith.truncf %331 : vector<8x32xf32> to vector<8x32xbf16>
    %cst_217 = arith.constant dense<0.000000e+00> : vector<8x128xf32>
    %333 = tpu.matmul %332, %264, %cst_217 {dimension_numbers = #tpu.dot_dimension_numbers<[1], [0], [0], [1], [0, 0, 1, 1], [], []>} : vector<8x32xbf16>, vector<32x128xbf16>, vector<8x128xf32> -> vector<8x128xf32>
    %334 = arith.truncf %312 : vector<8x32xf32> to vector<8x32xbf16>
    %cst_218 = arith.constant dense<0.000000e+00> : vector<8x128xf32>
    %335 = tpu.matmul %334, %265, %cst_218 {dimension_numbers = #tpu.dot_dimension_numbers<[1], [0], [0], [1], [0, 0, 1, 1], [], []>} : vector<8x32xbf16>, vector<32x128xbf16>, vector<8x128xf32> -> vector<8x128xf32>
    %336 = arith.addf %333, %335 : vector<8x128xf32>
    %337 = arith.addf %336, %268 : vector<8x128xf32>
    %338 = arith.negf %337 : vector<8x128xf32>
    %339 = math.exp %338 : vector<8x128xf32>
    %cst_219 = arith.constant 1.000000e+00 : f32
    %340 = vector.broadcast %cst_219 : f32 to vector<8x128xf32>
    %341 = arith.addf %340, %339 : vector<8x128xf32>
    %342 = arith.divf %340, %341 : vector<8x128xf32>
    %343 = vector.extract_strided_slice %342 {offsets = [0, 0], sizes = [8, 32], strides = [1, 1]} : vector<8x128xf32> to vector<8x32xf32>
    %344 = vector.extract_strided_slice %342 {offsets = [0, 32], sizes = [8, 32], strides = [1, 1]} : vector<8x128xf32> to vector<8x32xf32>
    %345 = vector.extract_strided_slice %342 {offsets = [0, 96], sizes = [8, 32], strides = [1, 1]} : vector<8x128xf32> to vector<8x32xf32>
    %346 = vector.extract_strided_slice %337 {offsets = [0, 64], sizes = [8, 32], strides = [1, 1]} : vector<8x128xf32> to vector<8x32xf32>
    %347 = math.tanh %346 : vector<8x32xf32>
    %348 = arith.mulf %344, %310 : vector<8x32xf32>
    %349 = arith.mulf %343, %347 : vector<8x32xf32>
    %350 = arith.addf %348, %349 : vector<8x32xf32>
    %351 = math.tanh %350 : vector<8x32xf32>
    %352 = arith.mulf %345, %351 : vector<8x32xf32>
    %353 = vector.extract_strided_slice %262 {offsets = [16, 0], sizes = [8, 128], strides = [1, 1]} : vector<64x128xf32> to vector<8x128xf32>
    %354 = arith.truncf %331 : vector<8x32xf32> to vector<8x32xbf16>
    %cst_220 = arith.constant dense<0.000000e+00> : vector<8x128xf32>
    %355 = tpu.matmul %354, %263, %cst_220 {dimension_numbers = #tpu.dot_dimension_numbers<[1], [0], [0], [1], [0, 0, 1, 1], [], []>} : vector<8x32xbf16>, vector<32x128xbf16>, vector<8x128xf32> -> vector<8x128xf32>
    %356 = arith.addf %353, %355 : vector<8x128xf32>
    %357 = arith.negf %356 : vector<8x128xf32>
    %358 = math.exp %357 : vector<8x128xf32>
    %cst_221 = arith.constant 1.000000e+00 : f32
    %359 = vector.broadcast %cst_221 : f32 to vector<8x128xf32>
    %360 = arith.addf %359, %358 : vector<8x128xf32>
    %361 = arith.divf %359, %360 : vector<8x128xf32>
    %362 = vector.extract_strided_slice %361 {offsets = [0, 0], sizes = [8, 32], strides = [1, 1]} : vector<8x128xf32> to vector<8x32xf32>
    %363 = vector.extract_strided_slice %361 {offsets = [0, 32], sizes = [8, 32], strides = [1, 1]} : vector<8x128xf32> to vector<8x32xf32>
    %364 = vector.extract_strided_slice %361 {offsets = [0, 96], sizes = [8, 32], strides = [1, 1]} : vector<8x128xf32> to vector<8x32xf32>
    %365 = vector.extract_strided_slice %356 {offsets = [0, 64], sizes = [8, 32], strides = [1, 1]} : vector<8x128xf32> to vector<8x32xf32>
    %366 = math.tanh %365 : vector<8x32xf32>
    %367 = arith.mulf %363, %329 : vector<8x32xf32>
    %368 = arith.mulf %362, %366 : vector<8x32xf32>
    %369 = arith.addf %367, %368 : vector<8x32xf32>
    %370 = math.tanh %369 : vector<8x32xf32>
    %371 = arith.mulf %364, %370 : vector<8x32xf32>
    %372 = arith.truncf %371 : vector<8x32xf32> to vector<8x32xbf16>
    %cst_222 = arith.constant dense<0.000000e+00> : vector<8x128xf32>
    %373 = tpu.matmul %372, %264, %cst_222 {dimension_numbers = #tpu.dot_dimension_numbers<[1], [0], [0], [1], [0, 0, 1, 1], [], []>} : vector<8x32xbf16>, vector<32x128xbf16>, vector<8x128xf32> -> vector<8x128xf32>
    %374 = arith.truncf %352 : vector<8x32xf32> to vector<8x32xbf16>
    %cst_223 = arith.constant dense<0.000000e+00> : vector<8x128xf32>
    %375 = tpu.matmul %374, %265, %cst_223 {dimension_numbers = #tpu.dot_dimension_numbers<[1], [0], [0], [1], [0, 0, 1, 1], [], []>} : vector<8x32xbf16>, vector<32x128xbf16>, vector<8x128xf32> -> vector<8x128xf32>
    %376 = arith.addf %373, %375 : vector<8x128xf32>
    %377 = arith.addf %376, %268 : vector<8x128xf32>
    %378 = arith.negf %377 : vector<8x128xf32>
    %379 = math.exp %378 : vector<8x128xf32>
    %cst_224 = arith.constant 1.000000e+00 : f32
    %380 = vector.broadcast %cst_224 : f32 to vector<8x128xf32>
    %381 = arith.addf %380, %379 : vector<8x128xf32>
    %382 = arith.divf %380, %381 : vector<8x128xf32>
    %383 = vector.extract_strided_slice %382 {offsets = [0, 0], sizes = [8, 32], strides = [1, 1]} : vector<8x128xf32> to vector<8x32xf32>
    %384 = vector.extract_strided_slice %382 {offsets = [0, 32], sizes = [8, 32], strides = [1, 1]} : vector<8x128xf32> to vector<8x32xf32>
    %385 = vector.extract_strided_slice %382 {offsets = [0, 96], sizes = [8, 32], strides = [1, 1]} : vector<8x128xf32> to vector<8x32xf32>
    %386 = vector.extract_strided_slice %377 {offsets = [0, 64], sizes = [8, 32], strides = [1, 1]} : vector<8x128xf32> to vector<8x32xf32>
    %387 = math.tanh %386 : vector<8x32xf32>
    %388 = arith.mulf %384, %350 : vector<8x32xf32>
    %389 = arith.mulf %383, %387 : vector<8x32xf32>
    %390 = arith.addf %388, %389 : vector<8x32xf32>
    %391 = math.tanh %390 : vector<8x32xf32>
    %392 = arith.mulf %385, %391 : vector<8x32xf32>
    %393 = vector.extract_strided_slice %262 {offsets = [24, 0], sizes = [8, 128], strides = [1, 1]} : vector<64x128xf32> to vector<8x128xf32>
    %394 = arith.truncf %371 : vector<8x32xf32> to vector<8x32xbf16>
    %cst_225 = arith.constant dense<0.000000e+00> : vector<8x128xf32>
    %395 = tpu.matmul %394, %263, %cst_225 {dimension_numbers = #tpu.dot_dimension_numbers<[1], [0], [0], [1], [0, 0, 1, 1], [], []>} : vector<8x32xbf16>, vector<32x128xbf16>, vector<8x128xf32> -> vector<8x128xf32>
    %396 = arith.addf %393, %395 : vector<8x128xf32>
    %397 = arith.negf %396 : vector<8x128xf32>
    %398 = math.exp %397 : vector<8x128xf32>
    %cst_226 = arith.constant 1.000000e+00 : f32
    %399 = vector.broadcast %cst_226 : f32 to vector<8x128xf32>
    %400 = arith.addf %399, %398 : vector<8x128xf32>
    %401 = arith.divf %399, %400 : vector<8x128xf32>
    %402 = vector.extract_strided_slice %401 {offsets = [0, 0], sizes = [8, 32], strides = [1, 1]} : vector<8x128xf32> to vector<8x32xf32>
    %403 = vector.extract_strided_slice %401 {offsets = [0, 32], sizes = [8, 32], strides = [1, 1]} : vector<8x128xf32> to vector<8x32xf32>
    %404 = vector.extract_strided_slice %401 {offsets = [0, 96], sizes = [8, 32], strides = [1, 1]} : vector<8x128xf32> to vector<8x32xf32>
    %405 = vector.extract_strided_slice %396 {offsets = [0, 64], sizes = [8, 32], strides = [1, 1]} : vector<8x128xf32> to vector<8x32xf32>
    %406 = math.tanh %405 : vector<8x32xf32>
    %407 = arith.mulf %403, %369 : vector<8x32xf32>
    %408 = arith.mulf %402, %406 : vector<8x32xf32>
    %409 = arith.addf %407, %408 : vector<8x32xf32>
    %410 = math.tanh %409 : vector<8x32xf32>
    %411 = arith.mulf %404, %410 : vector<8x32xf32>
    %412 = arith.truncf %411 : vector<8x32xf32> to vector<8x32xbf16>
    %cst_227 = arith.constant dense<0.000000e+00> : vector<8x128xf32>
    %413 = tpu.matmul %412, %264, %cst_227 {dimension_numbers = #tpu.dot_dimension_numbers<[1], [0], [0], [1], [0, 0, 1, 1], [], []>} : vector<8x32xbf16>, vector<32x128xbf16>, vector<8x128xf32> -> vector<8x128xf32>
    %414 = arith.truncf %392 : vector<8x32xf32> to vector<8x32xbf16>
    %cst_228 = arith.constant dense<0.000000e+00> : vector<8x128xf32>
    %415 = tpu.matmul %414, %265, %cst_228 {dimension_numbers = #tpu.dot_dimension_numbers<[1], [0], [0], [1], [0, 0, 1, 1], [], []>} : vector<8x32xbf16>, vector<32x128xbf16>, vector<8x128xf32> -> vector<8x128xf32>
    %416 = arith.addf %413, %415 : vector<8x128xf32>
    %417 = arith.addf %416, %268 : vector<8x128xf32>
    %418 = arith.negf %417 : vector<8x128xf32>
    %419 = math.exp %418 : vector<8x128xf32>
    %cst_229 = arith.constant 1.000000e+00 : f32
    %420 = vector.broadcast %cst_229 : f32 to vector<8x128xf32>
    %421 = arith.addf %420, %419 : vector<8x128xf32>
    %422 = arith.divf %420, %421 : vector<8x128xf32>
    %423 = vector.extract_strided_slice %422 {offsets = [0, 0], sizes = [8, 32], strides = [1, 1]} : vector<8x128xf32> to vector<8x32xf32>
    %424 = vector.extract_strided_slice %422 {offsets = [0, 32], sizes = [8, 32], strides = [1, 1]} : vector<8x128xf32> to vector<8x32xf32>
    %425 = vector.extract_strided_slice %422 {offsets = [0, 96], sizes = [8, 32], strides = [1, 1]} : vector<8x128xf32> to vector<8x32xf32>
    %426 = vector.extract_strided_slice %417 {offsets = [0, 64], sizes = [8, 32], strides = [1, 1]} : vector<8x128xf32> to vector<8x32xf32>
    %427 = math.tanh %426 : vector<8x32xf32>
    %428 = arith.mulf %424, %390 : vector<8x32xf32>
    %429 = arith.mulf %423, %427 : vector<8x32xf32>
    %430 = arith.addf %428, %429 : vector<8x32xf32>
    %431 = math.tanh %430 : vector<8x32xf32>
    %432 = arith.mulf %425, %431 : vector<8x32xf32>
    %433 = vector.extract_strided_slice %262 {offsets = [32, 0], sizes = [8, 128], strides = [1, 1]} : vector<64x128xf32> to vector<8x128xf32>
    %434 = arith.truncf %411 : vector<8x32xf32> to vector<8x32xbf16>
    %cst_230 = arith.constant dense<0.000000e+00> : vector<8x128xf32>
    %435 = tpu.matmul %434, %263, %cst_230 {dimension_numbers = #tpu.dot_dimension_numbers<[1], [0], [0], [1], [0, 0, 1, 1], [], []>} : vector<8x32xbf16>, vector<32x128xbf16>, vector<8x128xf32> -> vector<8x128xf32>
    %436 = arith.addf %433, %435 : vector<8x128xf32>
    %437 = arith.negf %436 : vector<8x128xf32>
    %438 = math.exp %437 : vector<8x128xf32>
    %cst_231 = arith.constant 1.000000e+00 : f32
    %439 = vector.broadcast %cst_231 : f32 to vector<8x128xf32>
    %440 = arith.addf %439, %438 : vector<8x128xf32>
    %441 = arith.divf %439, %440 : vector<8x128xf32>
    %442 = vector.extract_strided_slice %441 {offsets = [0, 0], sizes = [8, 32], strides = [1, 1]} : vector<8x128xf32> to vector<8x32xf32>
    %443 = vector.extract_strided_slice %441 {offsets = [0, 32], sizes = [8, 32], strides = [1, 1]} : vector<8x128xf32> to vector<8x32xf32>
    %444 = vector.extract_strided_slice %441 {offsets = [0, 96], sizes = [8, 32], strides = [1, 1]} : vector<8x128xf32> to vector<8x32xf32>
    %445 = vector.extract_strided_slice %436 {offsets = [0, 64], sizes = [8, 32], strides = [1, 1]} : vector<8x128xf32> to vector<8x32xf32>
    %446 = math.tanh %445 : vector<8x32xf32>
    %447 = arith.mulf %443, %409 : vector<8x32xf32>
    %448 = arith.mulf %442, %446 : vector<8x32xf32>
    %449 = arith.addf %447, %448 : vector<8x32xf32>
    %450 = math.tanh %449 : vector<8x32xf32>
    %451 = arith.mulf %444, %450 : vector<8x32xf32>
    %452 = arith.truncf %451 : vector<8x32xf32> to vector<8x32xbf16>
    %cst_232 = arith.constant dense<0.000000e+00> : vector<8x128xf32>
    %453 = tpu.matmul %452, %264, %cst_232 {dimension_numbers = #tpu.dot_dimension_numbers<[1], [0], [0], [1], [0, 0, 1, 1], [], []>} : vector<8x32xbf16>, vector<32x128xbf16>, vector<8x128xf32> -> vector<8x128xf32>
    %454 = arith.truncf %432 : vector<8x32xf32> to vector<8x32xbf16>
    %cst_233 = arith.constant dense<0.000000e+00> : vector<8x128xf32>
    %455 = tpu.matmul %454, %265, %cst_233 {dimension_numbers = #tpu.dot_dimension_numbers<[1], [0], [0], [1], [0, 0, 1, 1], [], []>} : vector<8x32xbf16>, vector<32x128xbf16>, vector<8x128xf32> -> vector<8x128xf32>
    %456 = arith.addf %453, %455 : vector<8x128xf32>
    %457 = arith.addf %456, %268 : vector<8x128xf32>
    %458 = arith.negf %457 : vector<8x128xf32>
    %459 = math.exp %458 : vector<8x128xf32>
    %cst_234 = arith.constant 1.000000e+00 : f32
    %460 = vector.broadcast %cst_234 : f32 to vector<8x128xf32>
    %461 = arith.addf %460, %459 : vector<8x128xf32>
    %462 = arith.divf %460, %461 : vector<8x128xf32>
    %463 = vector.extract_strided_slice %462 {offsets = [0, 0], sizes = [8, 32], strides = [1, 1]} : vector<8x128xf32> to vector<8x32xf32>
    %464 = vector.extract_strided_slice %462 {offsets = [0, 32], sizes = [8, 32], strides = [1, 1]} : vector<8x128xf32> to vector<8x32xf32>
    %465 = vector.extract_strided_slice %462 {offsets = [0, 96], sizes = [8, 32], strides = [1, 1]} : vector<8x128xf32> to vector<8x32xf32>
    %466 = vector.extract_strided_slice %457 {offsets = [0, 64], sizes = [8, 32], strides = [1, 1]} : vector<8x128xf32> to vector<8x32xf32>
    %467 = math.tanh %466 : vector<8x32xf32>
    %468 = arith.mulf %464, %430 : vector<8x32xf32>
    %469 = arith.mulf %463, %467 : vector<8x32xf32>
    %470 = arith.addf %468, %469 : vector<8x32xf32>
    %471 = math.tanh %470 : vector<8x32xf32>
    %472 = arith.mulf %465, %471 : vector<8x32xf32>
    %473 = vector.extract_strided_slice %262 {offsets = [40, 0], sizes = [8, 128], strides = [1, 1]} : vector<64x128xf32> to vector<8x128xf32>
    %474 = arith.truncf %451 : vector<8x32xf32> to vector<8x32xbf16>
    %cst_235 = arith.constant dense<0.000000e+00> : vector<8x128xf32>
    %475 = tpu.matmul %474, %263, %cst_235 {dimension_numbers = #tpu.dot_dimension_numbers<[1], [0], [0], [1], [0, 0, 1, 1], [], []>} : vector<8x32xbf16>, vector<32x128xbf16>, vector<8x128xf32> -> vector<8x128xf32>
    %476 = arith.addf %473, %475 : vector<8x128xf32>
    %477 = arith.negf %476 : vector<8x128xf32>
    %478 = math.exp %477 : vector<8x128xf32>
    %cst_236 = arith.constant 1.000000e+00 : f32
    %479 = vector.broadcast %cst_236 : f32 to vector<8x128xf32>
    %480 = arith.addf %479, %478 : vector<8x128xf32>
    %481 = arith.divf %479, %480 : vector<8x128xf32>
    %482 = vector.extract_strided_slice %481 {offsets = [0, 0], sizes = [8, 32], strides = [1, 1]} : vector<8x128xf32> to vector<8x32xf32>
    %483 = vector.extract_strided_slice %481 {offsets = [0, 32], sizes = [8, 32], strides = [1, 1]} : vector<8x128xf32> to vector<8x32xf32>
    %484 = vector.extract_strided_slice %481 {offsets = [0, 96], sizes = [8, 32], strides = [1, 1]} : vector<8x128xf32> to vector<8x32xf32>
    %485 = vector.extract_strided_slice %476 {offsets = [0, 64], sizes = [8, 32], strides = [1, 1]} : vector<8x128xf32> to vector<8x32xf32>
    %486 = math.tanh %485 : vector<8x32xf32>
    %487 = arith.mulf %483, %449 : vector<8x32xf32>
    %488 = arith.mulf %482, %486 : vector<8x32xf32>
    %489 = arith.addf %487, %488 : vector<8x32xf32>
    %490 = math.tanh %489 : vector<8x32xf32>
    %491 = arith.mulf %484, %490 : vector<8x32xf32>
    %492 = arith.truncf %491 : vector<8x32xf32> to vector<8x32xbf16>
    %cst_237 = arith.constant dense<0.000000e+00> : vector<8x128xf32>
    %493 = tpu.matmul %492, %264, %cst_237 {dimension_numbers = #tpu.dot_dimension_numbers<[1], [0], [0], [1], [0, 0, 1, 1], [], []>} : vector<8x32xbf16>, vector<32x128xbf16>, vector<8x128xf32> -> vector<8x128xf32>
    %494 = arith.truncf %472 : vector<8x32xf32> to vector<8x32xbf16>
    %cst_238 = arith.constant dense<0.000000e+00> : vector<8x128xf32>
    %495 = tpu.matmul %494, %265, %cst_238 {dimension_numbers = #tpu.dot_dimension_numbers<[1], [0], [0], [1], [0, 0, 1, 1], [], []>} : vector<8x32xbf16>, vector<32x128xbf16>, vector<8x128xf32> -> vector<8x128xf32>
    %496 = arith.addf %493, %495 : vector<8x128xf32>
    %497 = arith.addf %496, %268 : vector<8x128xf32>
    %498 = arith.negf %497 : vector<8x128xf32>
    %499 = math.exp %498 : vector<8x128xf32>
    %cst_239 = arith.constant 1.000000e+00 : f32
    %500 = vector.broadcast %cst_239 : f32 to vector<8x128xf32>
    %501 = arith.addf %500, %499 : vector<8x128xf32>
    %502 = arith.divf %500, %501 : vector<8x128xf32>
    %503 = vector.extract_strided_slice %502 {offsets = [0, 0], sizes = [8, 32], strides = [1, 1]} : vector<8x128xf32> to vector<8x32xf32>
    %504 = vector.extract_strided_slice %502 {offsets = [0, 32], sizes = [8, 32], strides = [1, 1]} : vector<8x128xf32> to vector<8x32xf32>
    %505 = vector.extract_strided_slice %502 {offsets = [0, 96], sizes = [8, 32], strides = [1, 1]} : vector<8x128xf32> to vector<8x32xf32>
    %506 = vector.extract_strided_slice %497 {offsets = [0, 64], sizes = [8, 32], strides = [1, 1]} : vector<8x128xf32> to vector<8x32xf32>
    %507 = math.tanh %506 : vector<8x32xf32>
    %508 = arith.mulf %504, %470 : vector<8x32xf32>
    %509 = arith.mulf %503, %507 : vector<8x32xf32>
    %510 = arith.addf %508, %509 : vector<8x32xf32>
    %511 = math.tanh %510 : vector<8x32xf32>
    %512 = arith.mulf %505, %511 : vector<8x32xf32>
    %513 = vector.extract_strided_slice %262 {offsets = [48, 0], sizes = [8, 128], strides = [1, 1]} : vector<64x128xf32> to vector<8x128xf32>
    %514 = arith.truncf %491 : vector<8x32xf32> to vector<8x32xbf16>
    %cst_240 = arith.constant dense<0.000000e+00> : vector<8x128xf32>
    %515 = tpu.matmul %514, %263, %cst_240 {dimension_numbers = #tpu.dot_dimension_numbers<[1], [0], [0], [1], [0, 0, 1, 1], [], []>} : vector<8x32xbf16>, vector<32x128xbf16>, vector<8x128xf32> -> vector<8x128xf32>
    %516 = arith.addf %513, %515 : vector<8x128xf32>
    %517 = arith.negf %516 : vector<8x128xf32>
    %518 = math.exp %517 : vector<8x128xf32>
    %cst_241 = arith.constant 1.000000e+00 : f32
    %519 = vector.broadcast %cst_241 : f32 to vector<8x128xf32>
    %520 = arith.addf %519, %518 : vector<8x128xf32>
    %521 = arith.divf %519, %520 : vector<8x128xf32>
    %522 = vector.extract_strided_slice %521 {offsets = [0, 0], sizes = [8, 32], strides = [1, 1]} : vector<8x128xf32> to vector<8x32xf32>
    %523 = vector.extract_strided_slice %521 {offsets = [0, 32], sizes = [8, 32], strides = [1, 1]} : vector<8x128xf32> to vector<8x32xf32>
    %524 = vector.extract_strided_slice %521 {offsets = [0, 96], sizes = [8, 32], strides = [1, 1]} : vector<8x128xf32> to vector<8x32xf32>
    %525 = vector.extract_strided_slice %516 {offsets = [0, 64], sizes = [8, 32], strides = [1, 1]} : vector<8x128xf32> to vector<8x32xf32>
    %526 = math.tanh %525 : vector<8x32xf32>
    %527 = arith.mulf %523, %489 : vector<8x32xf32>
    %528 = arith.mulf %522, %526 : vector<8x32xf32>
    %529 = arith.addf %527, %528 : vector<8x32xf32>
    %530 = math.tanh %529 : vector<8x32xf32>
    %531 = arith.mulf %524, %530 : vector<8x32xf32>
    %532 = arith.truncf %531 : vector<8x32xf32> to vector<8x32xbf16>
    %cst_242 = arith.constant dense<0.000000e+00> : vector<8x128xf32>
    %533 = tpu.matmul %532, %264, %cst_242 {dimension_numbers = #tpu.dot_dimension_numbers<[1], [0], [0], [1], [0, 0, 1, 1], [], []>} : vector<8x32xbf16>, vector<32x128xbf16>, vector<8x128xf32> -> vector<8x128xf32>
    %534 = arith.truncf %512 : vector<8x32xf32> to vector<8x32xbf16>
    %cst_243 = arith.constant dense<0.000000e+00> : vector<8x128xf32>
    %535 = tpu.matmul %534, %265, %cst_243 {dimension_numbers = #tpu.dot_dimension_numbers<[1], [0], [0], [1], [0, 0, 1, 1], [], []>} : vector<8x32xbf16>, vector<32x128xbf16>, vector<8x128xf32> -> vector<8x128xf32>
    %536 = arith.addf %533, %535 : vector<8x128xf32>
    %537 = arith.addf %536, %268 : vector<8x128xf32>
    %538 = arith.negf %537 : vector<8x128xf32>
    %539 = math.exp %538 : vector<8x128xf32>
    %cst_244 = arith.constant 1.000000e+00 : f32
    %540 = vector.broadcast %cst_244 : f32 to vector<8x128xf32>
    %541 = arith.addf %540, %539 : vector<8x128xf32>
    %542 = arith.divf %540, %541 : vector<8x128xf32>
    %543 = vector.extract_strided_slice %542 {offsets = [0, 0], sizes = [8, 32], strides = [1, 1]} : vector<8x128xf32> to vector<8x32xf32>
    %544 = vector.extract_strided_slice %542 {offsets = [0, 32], sizes = [8, 32], strides = [1, 1]} : vector<8x128xf32> to vector<8x32xf32>
    %545 = vector.extract_strided_slice %542 {offsets = [0, 96], sizes = [8, 32], strides = [1, 1]} : vector<8x128xf32> to vector<8x32xf32>
    %546 = vector.extract_strided_slice %537 {offsets = [0, 64], sizes = [8, 32], strides = [1, 1]} : vector<8x128xf32> to vector<8x32xf32>
    %547 = math.tanh %546 : vector<8x32xf32>
    %548 = arith.mulf %544, %510 : vector<8x32xf32>
    %549 = arith.mulf %543, %547 : vector<8x32xf32>
    %550 = arith.addf %548, %549 : vector<8x32xf32>
    %551 = math.tanh %550 : vector<8x32xf32>
    %552 = arith.mulf %545, %551 : vector<8x32xf32>
    %553 = vector.extract_strided_slice %262 {offsets = [56, 0], sizes = [8, 128], strides = [1, 1]} : vector<64x128xf32> to vector<8x128xf32>
    %554 = arith.truncf %531 : vector<8x32xf32> to vector<8x32xbf16>
    %cst_245 = arith.constant dense<0.000000e+00> : vector<8x128xf32>
    %555 = tpu.matmul %554, %263, %cst_245 {dimension_numbers = #tpu.dot_dimension_numbers<[1], [0], [0], [1], [0, 0, 1, 1], [], []>} : vector<8x32xbf16>, vector<32x128xbf16>, vector<8x128xf32> -> vector<8x128xf32>
    %556 = arith.addf %553, %555 : vector<8x128xf32>
    %557 = arith.negf %556 : vector<8x128xf32>
    %558 = math.exp %557 : vector<8x128xf32>
    %cst_246 = arith.constant 1.000000e+00 : f32
    %559 = vector.broadcast %cst_246 : f32 to vector<8x128xf32>
    %560 = arith.addf %559, %558 : vector<8x128xf32>
    %561 = arith.divf %559, %560 : vector<8x128xf32>
    %562 = vector.extract_strided_slice %561 {offsets = [0, 0], sizes = [8, 32], strides = [1, 1]} : vector<8x128xf32> to vector<8x32xf32>
    %563 = vector.extract_strided_slice %561 {offsets = [0, 32], sizes = [8, 32], strides = [1, 1]} : vector<8x128xf32> to vector<8x32xf32>
    %564 = vector.extract_strided_slice %561 {offsets = [0, 96], sizes = [8, 32], strides = [1, 1]} : vector<8x128xf32> to vector<8x32xf32>
    %565 = vector.extract_strided_slice %556 {offsets = [0, 64], sizes = [8, 32], strides = [1, 1]} : vector<8x128xf32> to vector<8x32xf32>
    %566 = math.tanh %565 : vector<8x32xf32>
    %567 = arith.mulf %563, %529 : vector<8x32xf32>
    %568 = arith.mulf %562, %566 : vector<8x32xf32>
    %569 = arith.addf %567, %568 : vector<8x32xf32>
    %570 = math.tanh %569 : vector<8x32xf32>
    %571 = arith.mulf %564, %570 : vector<8x32xf32>
    %572 = arith.truncf %571 : vector<8x32xf32> to vector<8x32xbf16>
    %cst_247 = arith.constant dense<0.000000e+00> : vector<8x128xf32>
    %573 = tpu.matmul %572, %264, %cst_247 {dimension_numbers = #tpu.dot_dimension_numbers<[1], [0], [0], [1], [0, 0, 1, 1], [], []>} : vector<8x32xbf16>, vector<32x128xbf16>, vector<8x128xf32> -> vector<8x128xf32>
    %574 = arith.truncf %552 : vector<8x32xf32> to vector<8x32xbf16>
    %cst_248 = arith.constant dense<0.000000e+00> : vector<8x128xf32>
    %575 = tpu.matmul %574, %265, %cst_248 {dimension_numbers = #tpu.dot_dimension_numbers<[1], [0], [0], [1], [0, 0, 1, 1], [], []>} : vector<8x32xbf16>, vector<32x128xbf16>, vector<8x128xf32> -> vector<8x128xf32>
    %576 = arith.addf %573, %575 : vector<8x128xf32>
    %577 = arith.addf %576, %268 : vector<8x128xf32>
    %578 = arith.negf %577 : vector<8x128xf32>
    %579 = math.exp %578 : vector<8x128xf32>
    %cst_249 = arith.constant 1.000000e+00 : f32
    %580 = vector.broadcast %cst_249 : f32 to vector<8x128xf32>
    %581 = arith.addf %580, %579 : vector<8x128xf32>
    %582 = arith.divf %580, %581 : vector<8x128xf32>
    %583 = vector.extract_strided_slice %582 {offsets = [0, 0], sizes = [8, 32], strides = [1, 1]} : vector<8x128xf32> to vector<8x32xf32>
    %584 = vector.extract_strided_slice %582 {offsets = [0, 32], sizes = [8, 32], strides = [1, 1]} : vector<8x128xf32> to vector<8x32xf32>
    %585 = vector.extract_strided_slice %582 {offsets = [0, 96], sizes = [8, 32], strides = [1, 1]} : vector<8x128xf32> to vector<8x32xf32>
    %586 = vector.extract_strided_slice %577 {offsets = [0, 64], sizes = [8, 32], strides = [1, 1]} : vector<8x128xf32> to vector<8x32xf32>
    %587 = math.tanh %586 : vector<8x32xf32>
    %588 = arith.mulf %584, %550 : vector<8x32xf32>
    %589 = arith.mulf %583, %587 : vector<8x32xf32>
    %590 = arith.addf %588, %589 : vector<8x32xf32>
    %591 = math.tanh %590 : vector<8x32xf32>
    %592 = arith.mulf %585, %591 : vector<8x32xf32>
    %c0_250 = arith.constant 0 : index
    %c0_251 = arith.constant 0 : index
    %593 = vector.load %arg9[%c0_250, %c0_251] : memref<1x32xf32, #tpu.memory_space<vmem>>, vector<1x32xf32>
    %594 = vector.broadcast %593 : vector<1x32xf32> to vector<8x32xf32>
    %595 = arith.mulf %571, %594 : vector<8x32xf32>
    %cst_252 = arith.constant dense<0.000000e+00> : vector<8xf32>
    %596 = vector.multi_reduction <add>, %595, %cst_252 [1] : vector<8x32xf32> to vector<8xf32>
    %597 = vector.shape_cast %596 : vector<8xf32> to vector<8x1xf32>
    %c0_253 = arith.constant 0 : index
    %c0_254 = arith.constant 0 : index
    %598 = vector.load %arg10[%c0_253, %c0_254] : memref<1x32xf32, #tpu.memory_space<vmem>>, vector<1x32xf32>
    %599 = vector.broadcast %598 : vector<1x32xf32> to vector<8x32xf32>
    %600 = arith.mulf %592, %599 : vector<8x32xf32>
    %cst_255 = arith.constant dense<0.000000e+00> : vector<8xf32>
    %601 = vector.multi_reduction <add>, %600, %cst_255 [1] : vector<8x32xf32> to vector<8xf32>
    %602 = vector.shape_cast %601 : vector<8xf32> to vector<8x1xf32>
    %603 = arith.addf %597, %602 : vector<8x1xf32>
    %c0_256 = arith.constant 0 : index
    %c0_257 = arith.constant 0 : index
    %604 = vector.load %arg11[%c0_256, %c0_257] : memref<1x1xf32, #tpu.memory_space<vmem>>, vector<1x1xf32>
    %605 = vector.broadcast %604 : vector<1x1xf32> to vector<8x1xf32>
    %606 = arith.addf %603, %605 : vector<8x1xf32>
    %c0_258 = arith.constant 0 : index
    %c0_259 = arith.constant 0 : index
    %607 = vector.load %arg12[%c0_258, %c0_259] : memref<8x1xf32, #tpu.memory_space<vmem>>, vector<8x1xf32>
    tpu.vector_store %arg12[%c0_258, %c0_259], %606 {strides = array<i32>} : memref<8x1xf32, #tpu.memory_space<vmem>>, vector<8x1xf32>,
    return
  }
  func.func @transform_0(%arg0: i32, %arg1: memref<64xi32, #tpu.memory_space<smem>>) -> (i32, i32) {
    %c0_i32 = arith.constant 0 : i32
    %c0_i32_0 = arith.constant 0 : i32
    %c0_i32_1 = arith.constant 0 : i32
    return %c0_i32, %c0_i32_0 : i32, i32
  }
  func.func @transform_1(%arg0: i32, %arg1: memref<64xi32, #tpu.memory_space<smem>>) -> (i32, i32) {
    %c0_i32 = arith.constant 0 : i32
    %c0_i32_0 = arith.constant 0 : i32
    %c0_i32_1 = arith.constant 0 : i32
    return %c0_i32, %c0_i32_0 : i32, i32
  }
  func.func @transform_2(%arg0: i32, %arg1: memref<64xi32, #tpu.memory_space<smem>>) -> (i32, i32) {
    %c0_i32 = arith.constant 0 : i32
    %c0_i32_0 = arith.constant 0 : i32
    %c0_i32_1 = arith.constant 0 : i32
    return %c0_i32, %c0_i32_0 : i32, i32
  }
  func.func @transform_3(%arg0: i32, %arg1: memref<64xi32, #tpu.memory_space<smem>>) -> (i32, i32) {
    %c0_i32 = arith.constant 0 : i32
    %c0_i32_0 = arith.constant 0 : i32
    %c0_i32_1 = arith.constant 0 : i32
    return %c0_i32, %c0_i32_0 : i32, i32
  }
  func.func @transform_4(%arg0: i32, %arg1: memref<64xi32, #tpu.memory_space<smem>>) -> (i32, i32) {
    %c0_i32 = arith.constant 0 : i32
    %c0_i32_0 = arith.constant 0 : i32
    %c0_i32_1 = arith.constant 0 : i32
    return %c0_i32, %c0_i32_0 : i32, i32
  }
  func.func @transform_5(%arg0: i32, %arg1: memref<64xi32, #tpu.memory_space<smem>>) -> (i32, i32) {
    %c0_i32 = arith.constant 0 : i32
    %c0_i32_0 = arith.constant 0 : i32
    %c0_i32_1 = arith.constant 0 : i32
    return %c0_i32, %c0_i32_0 : i32, i32
  }
  func.func @transform_6(%arg0: i32, %arg1: memref<64xi32, #tpu.memory_space<smem>>) -> (i32, i32) {
    %c0_i32 = arith.constant 0 : i32
    %c0_i32_0 = arith.constant 0 : i32
    %c0_i32_1 = arith.constant 0 : i32
    return %c0_i32, %c0_i32_0 : i32, i32
  }
  func.func @transform_7(%arg0: i32, %arg1: memref<64xi32, #tpu.memory_space<smem>>) -> (i32, i32) {
    %c0_i32 = arith.constant 0 : i32
    %c0_i32_0 = arith.constant 0 : i32
    %c0_i32_1 = arith.constant 0 : i32
    return %c0_i32, %c0_i32_0 : i32, i32
  }
  func.func @transform_8(%arg0: i32, %arg1: memref<64xi32, #tpu.memory_space<smem>>) -> (i32, i32) {
    %c0_i32 = arith.constant 0 : i32
    %c0_i32_0 = arith.constant 0 : i32
    %c0_i32_1 = arith.constant 0 : i32
    return %c0_i32, %c0_i32_0 : i32, i32
  }
  func.func @transform_9(%arg0: i32, %arg1: memref<64xi32, #tpu.memory_space<smem>>) -> (i32, i32) {
    %c0_i32 = arith.constant 0 : i32
    %c0_i32_0 = arith.constant 0 : i32
    %c0_i32_1 = arith.constant 0 : i32
    return %c0_i32, %c0_i32_0 : i32, i32
  }
  func.func @transform_10(%arg0: i32, %arg1: memref<64xi32, #tpu.memory_space<smem>>) -> (i32, i32) {
    %c0_i32 = arith.constant 0 : i32
    %c0_i32_0 = arith.constant 0 : i32
    %c0_i32_1 = arith.constant 0 : i32
    return %c0_i32, %c0_i32_0 : i32, i32
  }
}

</mosaic_0001>

<bundles_post_ra>
// kernel: tpu_custom_call.1
= control target key start
LH: loop header
LB: loop body
LE: loop exit
PB: predicated region body
PF: predicated region fallthrough
CT: control target
= control target key end

     0   :  { %s3205_s22 = smov [#allocation4]   ;;  %s3884_s0 = inlined_call_operand.vmem [shape: s32[64], index: 0, kind: input, shape index: {}]   ;;  %s3885_s1 = inlined_call_operand.hbm [shape: f32[56,384], index: 1, kind: input, shape index: {}]   ;;  %s3886_s2 = inlined_call_operand.hbm [shape: bf16[384,128], index: 2, kind: input, shape index: {}]   ;;  %s3887_s3 = inlined_call_operand.vmem [shape: f32[1,128], index: 3, kind: input, shape index: {}]   ;;  %s3888_s4 = inlined_call_operand.hbm [shape: bf16[32,128], index: 4, kind: input, shape index: {}]   ;;  %s3889_s5 = inlined_call_operand.hbm [shape: bf16[32,128], index: 5, kind: input, shape index: {}]   ;;  %s3890_s6 = inlined_call_operand.hbm [shape: bf16[32,128], index: 6, kind: input, shape index: {}]   ;;  %s3891_s7 = inlined_call_operand.vmem [shape: f32[1,128], index: 7, kind: input, shape index: {}]   ;;  %s3892_s8 = inlined_call_operand.vmem [shape: f32[1,32], index: 8, kind: input, shape index: {}]   ;;  %s3893_s9 = inlined_call_operand.vmem [shape: f32[1,32], index: 9, kind: input, shape index: {}]   ;;  %s3894_s11 = inlined_call_operand.vmem [shape: f32[8,1], index: 11, kind: output, shape index: {}]   ;;  %s3895_s10 = inlined_call_operand.<no memory space> [shape: f32[1,1], index: 10, kind: input, shape index: {}]  }
   0x1   :  { %3903 = sst [smem:[#allocation32_spill]] %s3887_s3  ;;  %s17_s19 = sshll.u32 %s3884_s0, 4  ;;  %v21_v0 = vstv %s3895_s10  ;;  %s18_s19 = int_to_ptr.vmem [resolvable:$true] %s17_s19 }
   0x2   :  { %3904 = sst [smem:[#allocation33_spill]] %s3891_s7  ;;  %22 = vst [vmem:[#allocation5] sm:$0x1] %v21_v0 }
   0x3   :  { %3905 = sst [smem:[#allocation34_spill]] %s3892_s8 }
   0x4   :  { %3906 = sst [smem:[#allocation35_spill]] %s3893_s9 }
   0x5   :  { %3907 = sst [smem:[#allocation36_spill]] %s3894_s11 }
   0x6   :  { %20 = dma.vmem_to_smem %s18_s19, 16, %s3205_s22, [#allocation3] }
   0x7   :  { %3197 = dma.done.wait [#allocation3], 16 }
   0x8   :  { %3198 = vsyncadd [#allocation3], 4294967280 }
   0x9   :  { %25 = sfence }
   0xa   :  { %26 = vsyncpa [#allocation7], 0 }
   0xb   :  { %27 = vsyncpa [#allocation9], 0  ;;  %s46_s25 = sshll.u32 %s3886_s2, 4  ;;  %s47_s25 = int_to_ptr.hbm [resolvable:$true] %s46_s25 }
   0xc   :  { %28 = vsyncpa [#allocation12], 0  ;;  %s3206_s0 = smov [#allocation8]   ;;  %s74_s28 = sshll.u32 %s3889_s5, 4  ;;  %s75_s28 = int_to_ptr.hbm [resolvable:$true] %s74_s28 }
   0xd   :  { %s48_s26 = sshll.u32 %s3206_s0, 4  ;;  %s3896_s29 = smov 64   ;;  %s49_s26 = int_to_ptr.vmem [resolvable:$true] %s48_s26 }
   0xe   :  { %s3208_s30 = smov 4   ;;  %s3209_s12 = smov [#allocation11]  }
   0xf   :  { %54 = dma.hbm_to_vmem [thread:$0]  %s47_s25, 3072, %s49_s26, [#allocation9], %s3896_s29, %s3896_s29, %s3208_s30  }
  0x10   :  { %s76_s13 = sshll.u32 %s3209_s12, 4  ;;  %s33_s15 = sshll.u32 %s3885_s1, 4  ;;  %s77_s13 = int_to_ptr.vmem [resolvable:$true] %s76_s13  ;;  %s34_s15 = int_to_ptr.hbm [resolvable:$true] %s33_s15 }
  0x11   :  { %82 = dma.hbm_to_vmem [thread:$0]  %s75_s28, 256, %s77_s13, [#allocation12], %s3896_s29, %s3896_s29, %s3208_s30  }
  0x12   :  { %s3210_s5 = smov [#allocation6]   ;;  %s61_s19 = sshll.u32 %s3888_s4, 4  ;;  %s62_s19 = int_to_ptr.hbm [resolvable:$true] %s61_s19 }
  0x13   :  { %s35_s16 = sshll.u32 %s3210_s5, 4  ;;  %s3211_s20 = smov 384   ;;  %s36_s16 = int_to_ptr.vmem [resolvable:$true] %s35_s16 }
  0x14   :  { %s3212_s21 = smov 24   ;;  %s3213_s22 = smov [#allocation10]  }
  0x15   :  { %41 = dma.hbm_to_vmem [thread:$0]  %s34_s15, 2688, %s36_s16, [#allocation7], %s3211_s20, %s3211_s20, %s3212_s21  }
  0x16   :  { %s63_s23 = sshll.u32 %s3213_s22, 4  ;;  %s87_s25 = sshll.u32 %s3890_s6, 4  ;;  %s64_s23 = int_to_ptr.vmem [resolvable:$true] %s63_s23  ;;  %s88_s25 = int_to_ptr.hbm [resolvable:$true] %s87_s25 }
  0x17   :  { %69 = dma.hbm_to_vmem [thread:$0]  %s62_s19, 256, %s64_s23, [#allocation9], %s3896_s29, %s3896_s29, %s3208_s30  }
  0x18   :  { %s3214_s0 = smov [#allocation13]  }
  0x19   :  { %s89_s26 = sshll.u32 %s3214_s0, 4  ;;  %s90_s26 = int_to_ptr.vmem [resolvable:$true] %s89_s26 }
  0x1a   :  { %95 = dma.hbm_to_vmem [thread:$0]  %s88_s25, 256, %s90_s26, [#allocation12], %s3896_s29, %s3896_s29, %s3208_s30  }
  0x1b   :  { %3199 = dma.done.wait [#allocation7], 2688  }
  0x1c   :  { %3200 = vsyncadd [#allocation7], 4294964608 }
  0x1d   :  { %3201 = dma.done.wait [#allocation9], 3328  }
  0x1e   :  { %3202 = vsyncadd [#allocation9], 4294963968 }
  0x1f   :  { %3203 = dma.done.wait [#allocation12], 512  }
  0x20   :  { %3204 = vsyncadd [#allocation12], 4294966784  ;;  %s125_s4 = sld [smem:[#allocation4]]  ;;  %v2887_v1 = vld [vmem:[#allocation8 + $0x38] sm:$0xff]  ;;  %v2886_v4 = vld [vmem:[#allocation8 + $0x30] sm:$0xff]  ;;  %v135_v6 = vlaneseq  ;;  %v3215_v24 = vmov 0  }
  0x21   :  { %s2596_s6 = sld [smem:[#allocation4 + $0x1]]  ;;  %v2895_v2 = vld [vmem:[#allocation8 + $0x78] sm:$0xff]  ;;  %1192 = vmatpush.bf16.msra.mxu0 %v2887_v1  ;;  %v2894_v5 = vld [vmem:[#allocation8 + $0x70] sm:$0xff]  ;;  %v3320_v8 = vld [vmem:[#allocation10 + $0x8] sm:$0xff]  ;;  %vm1307_vm5 = vcmask 261120  }
  0x22   :  { %s3311_s27 = sld [smem:[#allocation4 + $0x2]]  ;;  %v2903_v3 = vld [vmem:[#allocation8 + $0xb8] sm:$0xff]  ;;  %1221 = vmatpush.bf16.msra.mxu1 %v2895_v2  ;;  %v2902_v7 = vld [vmem:[#allocation8 + $0xb0] sm:$0xff]  ;;  %v2885_v9 = vld [vmem:[#allocation8 + $0x28] sm:$0xff]  ;;  %vm3323_vm0 = vcmp.lt.s32.totalorder %v135_v6, 384  ;;  %1317 = vmatpush.bf16.msra.mxu3 %v3320_v8 }
  0x23   :  { %s3313_s10 = sld [smem:[#allocation4 + $0x3]]  ;;  %1250 = vmatpush.bf16.msra.mxu2 %v2903_v3  ;;  %v2893_v10 = vld [vmem:[#allocation8 + $0x68] sm:$0xff]  ;;  %v3329_v13 = vld [vmem:[#allocation10] sm:$0xff]  ;;  %v2883_v21 = vld [vmem:[#allocation8 + $0x18] sm:$0xff] }
  0x24   :  { %s3315_s28 = sld [smem:[#allocation4 + $0x4]]  ;;  %v2901_v12 = vld [vmem:[#allocation8 + $0xa8] sm:$0xff]  ;;  %v2884_v14 = vld [vmem:[#allocation8 + $0x20] sm:$0xff]  ;;  %v2891_v22 = vld [vmem:[#allocation8 + $0x58] sm:$0xff] }
  0x25   :  { %s3317_s12 = sld [smem:[#allocation4 + $0x5]]  ;;  %1193 = vmatpush.bf16.msra.mxu0 %v2886_v4  ;;  %v2892_v15 = vld [vmem:[#allocation8 + $0x60] sm:$0xff]  ;;  %v2899_v23 = vld [vmem:[#allocation8 + $0x98] sm:$0xff]  ;;  %v2882_v25 = vld [vmem:[#allocation8 + $0x10] sm:$0xff] }
  0x26   :  { %s126_s30 = sshra.s32 %s125_s4, 3  ;;  %s129_s13 = sand.u32 7, %s125_s4  ;;  %1222 = vmatpush.bf16.msra.mxu1 %v2894_v5  ;;  %v2900_v18 = vld [vmem:[#allocation8 + $0xa0] sm:$0xff]  ;;  %1318 = vmatpush.bf16.msra.mxu3 %v3329_v13  ;;  %v2890_v27 = vld [vmem:[#allocation8 + $0x50] sm:$0xff]  ;;  %v2881_v30 = vld [vmem:[#allocation8 + $0x8] sm:$0xff] }
  0x27   :  { %s2595_s14 = smul.u32 24, %s126_s30  ;;  %s142_s2 = sshra.s32 %s2596_s6, 3  ;;  %1251 = vmatpush.bf16.msra.mxu2 %v2902_v7  ;;  %v2898_v29 = vld [vmem:[#allocation8 + $0x90] sm:$0xff]  ;;  %v2889_v31 = vld [vmem:[#allocation8 + $0x48] sm:$0xff]  ;;  %v2880_v33 = vld [vmem:[#allocation8] sm:$0xff] }
  0x28   :  { %s145_s15 = sand.u32 7, %s2596_s6  ;;  %s2597_s5 = smul.u32 24, %s142_s2  ;;  %v2897_v32 = vld [vmem:[#allocation8 + $0x88] sm:$0xff]  ;;  %v2888_v34 = vld [vmem:[#allocation8 + $0x40] sm:$0xff]  ;;  %v3399_v57 = vld [vmem:[%s3887_s3] ss:$0 sm:$0xff] }
  0x29   :  { %s132_s16 = sadd.s32 %s2595_s14, %s129_s13  ;;  %s155_s17 = sshra.s32 %s3311_s27, 3  ;;  %1194 = vmatpush.bf16.msra.mxu0 %v2885_v9  ;;  %1319 = vmatmul.bf16.vlgmr.msra.gmra.mxu3 %v3215_v24  ;;  %v2896_v35 = vld [vmem:[#allocation8 + $0x80] sm:$0xff] }
  0x2a   :  { %s148_s18 = sadd.s32 %s2597_s5, %s145_s15  ;;  %s158_s19 = sand.u32 7, %s3311_s27  ;;  %1223 = vmatpush.bf16.msra.mxu1 %v2893_v10  ;;  %v3674_v11 = vld [vmem:[#allocation10] sm:$0xff] }
  0x2b   :  { %s2599_s20 = smul.u32 24, %s155_s17  ;;  %s168_s21 = sshra.s32 %s3313_s10, 3  ;;  %1252 = vmatpush.bf16.msra.mxu2 %v2901_v12 }
  0x2c   :  { %s171_s22 = sand.u32 7, %s3313_s10  ;;  %s2601_s23 = smul.u32 24, %s168_s21 }
  0x2d   :  { %s133_s1 = scalar_lea.vmem [#allocation6], %s132_s16  ;;  %s161_s24 = sadd.s32 %s2599_s20, %s158_s19  ;;  %1195 = vmatpush.bf16.msra.mxu0 %v2884_v14 }
  0x2e   :  { %v134_v16 = vld [vmem:[%s133_s1] ss:$8 sm:$0x7]  ;;  %s181_s25 = sshra.s32 %s3315_s28, 3  ;;  %s149_s0 = scalar_lea.vmem [#allocation6], %s148_s18  ;;  %1224 = vmatpush.bf16.msra.mxu1 %v2892_v15 }
  0x2f   :  { %139 = vst.msk [vmem:[#allocation2] ss:$8 sm:$0x7] %vm3323_vm0, %v134_v16  ;;  %v150_v17 = vld [vmem:[%s149_s0] ss:$8 sm:$0x7]  ;;  %s174_s26 = sadd.s32 %s2601_s23, %s171_s22  ;;  %1253 = vmatpush.bf16.msra.mxu2 %v2900_v18 }
  0x30   :  { %152 = vst.msk [vmem:[#allocation2 + $0x1] ss:$8 sm:$0x7] %vm3323_vm0, %v150_v17  ;;  %s162_s4 = scalar_lea.vmem [#allocation6], %s161_s24  ;;  %s175_s6 = scalar_lea.vmem [#allocation6], %s174_s26 }
  0x31   :  { %v163_v19 = vld [vmem:[%s162_s4] ss:$8 sm:$0x7]  ;;  %s184_s27 = sand.u32 7, %s3315_s28  ;;  %s2603_s10 = smul.u32 24, %s181_s25  ;;  %1196 = vmatpush.bf16.msra.mxu0 %v2883_v21 }
  0x32   :  { %v176_v20 = vld [vmem:[%s175_s6] ss:$8 sm:$0x7]  ;;  %165 = vst.msk [vmem:[#allocation2 + $0x2] ss:$8 sm:$0x7] %vm3323_vm0, %v163_v19  ;;  %1225 = vmatpush.bf16.msra.mxu1 %v2891_v22 }
  0x33   :  { %178 = vst.msk [vmem:[#allocation2 + $0x3] ss:$8 sm:$0x7] %vm3323_vm0, %v176_v20  ;;  %s194_s30 = sshra.s32 %s3317_s12, 3  ;;  %s197_s13 = sand.u32 7, %s3317_s12  ;;  %1254 = vmatpush.bf16.msra.mxu2 %v2899_v23 }
  0x34   :  { %s187_s14 = sadd.s32 %s2603_s10, %s184_s27  ;;  %s2605_s2 = smul.u32 24, %s194_s30 }
  0x35   :  { %s3346_s15 = sld [smem:[#allocation4 + $0x6]]  ;;  %s188_s28 = scalar_lea.vmem [#allocation6], %s187_s14  ;;  %1197 = vmatpush.bf16.msra.mxu0 %v2882_v25  ;;  %v2909_v25 = vld [vmem:[#allocation13 + $0x8] sm:$0xff] }
  0x36   :  { %v189_v26 = vld [vmem:[%s188_s28] ss:$8 sm:$0x7]  ;;  %s200_s5 = sadd.s32 %s2605_s2, %s197_s13  ;;  %s3348_s16 = sld [smem:[#allocation4 + $0x7]]  ;;  %1226 = vmatpush.bf16.msra.mxu1 %v2890_v27  ;;  %1381 = vmatpush.bf16.msrb.mxu3 %v2909_v25 }
  0x37   :  { %191 = vst.msk [vmem:[#allocation2 + $0x4] ss:$8 sm:$0x7] %vm3323_vm0, %v189_v26  ;;  %s3352_s12 = sld [smem:[#allocation4 + $0x8]]  ;;  %s201_s17 = scalar_lea.vmem [#allocation6], %s200_s5  ;;  %1255 = vmatpush.bf16.msra.mxu2 %v2898_v29  ;;  %v2907_v26 = vld [vmem:[#allocation11 + $0x8] sm:$0xff] }
  0x38   :  { %v202_v28 = vld [vmem:[%s201_s17] ss:$8 sm:$0x7]  ;;  %s3354_s18 = sld [smem:[#allocation4 + $0x9]] }
  0x39   :  { %204 = vst.msk [vmem:[#allocation2 + $0x5] ss:$8 sm:$0x7] %vm3323_vm0, %v202_v28  ;;  %s3358_s19 = sld [smem:[#allocation4 + $0xa]]  ;;  %1198 = vmatpush.bf16.msra.mxu0 %v2881_v30  ;;  %v2908_v27 = vld [vmem:[#allocation13] sm:$0xff]  ;;  %v2906_v28 = vld [vmem:[#allocation11] sm:$0xff] }
  0x3a   :  { %s3360_s20 = sld [smem:[#allocation4 + $0xb]]  ;;  %1227 = vmatpush.bf16.msra.mxu1 %v2889_v31  ;;  %1382 = vmatpush.bf16.msrb.mxu3 %v2908_v27 }
  0x3b   :  { %s207_s21 = sshra.s32 %s3346_s15, 3  ;;  %s210_s22 = sand.u32 7, %s3346_s15  ;;  %1256 = vmatpush.bf16.msra.mxu2 %v2897_v32 }
  0x3c   :  { %s2607_s23 = smul.u32 24, %s207_s21  ;;  %s220_s1 = sshra.s32 %s3348_s16, 3 }
  0x3d   :  { %s223_s24 = sand.u32 7, %s3348_s16  ;;  %s2609_s25 = smul.u32 24, %s220_s1  ;;  %1199 = vmatpush.bf16.msra.mxu0 %v2880_v33  ;;  %1383 = vmatmul.bf16.vlgmr.msrb.gmra.mxu3 %v3215_v24 }
  0x3e   :  { %s213_s0 = sadd.s32 %s2607_s23, %s210_s22  ;;  %s233_s26 = sshra.s32 %s3352_s12, 3  ;;  %1228 = vmatpush.bf16.msra.mxu1 %v2888_v34  ;;  %1412 = vmatpush.bf16.msra.mxu3 %v2907_v26 }
  0x3f   :  { %s226_s4 = sadd.s32 %s2609_s25, %s223_s24  ;;  %s214_s6 = scalar_lea.vmem [#allocation6], %s213_s0  ;;  %1257 = vmatpush.bf16.msra.mxu2 %v2896_v35 }
  0x40   :  { %v215_v36 = vld [vmem:[%s214_s6] ss:$8 sm:$0x7]  ;;  %s236_s27 = sand.u32 7, %s3352_s12  ;;  %s227_s10 = scalar_lea.vmem [#allocation6], %s226_s4 }
  0x41   :  { %217 = vst.msk [vmem:[#allocation2 + $0x6] ss:$8 sm:$0x7] %vm3323_vm0, %v215_v36  ;;  %v228_v37 = vld [vmem:[%s227_s10] ss:$8 sm:$0x7]  ;;  %1592 = vmatpush.bf16.msrb.mxu0 %v3320_v8 }
  0x42   :  { %230 = vst.msk [vmem:[#allocation2 + $0x7] ss:$8 sm:$0x7] %vm3323_vm0, %v228_v37  ;;  %s2611_s30 = smul.u32 24, %s233_s26  ;;  %s246_s13 = sshra.s32 %s3354_s18, 3  ;;  %1651 = vmatpush.bf16.msrb.mxu1 %v2909_v25  ;;  %1413 = vmatpush.bf16.msra.mxu3 %v2906_v28 }
  0x43   :  { %s249_s14 = sand.u32 7, %s3354_s18  ;;  %s2613_s2 = smul.u32 24, %s246_s13  ;;  %1670 = vmatpush.bf16.msrb.mxu2 %v2907_v26 }
  0x44   :  { %s239_s15 = sadd.s32 %s2611_s30, %s236_s27  ;;  %s259_s28 = sshra.s32 %s3358_s19, 3 }
  0x45   :  { %s252_s5 = sadd.s32 %s2613_s2, %s249_s14  ;;  %s240_s16 = scalar_lea.vmem [#allocation6], %s239_s15  ;;  %1593 = vmatpush.bf16.msrb.mxu0 %v3329_v13 }
  0x46   :  { %v241_v38 = vld [vmem:[%s240_s16] ss:$8 sm:$0x7]  ;;  %s262_s12 = sand.u32 7, %s3358_s19  ;;  %s253_s17 = scalar_lea.vmem [#allocation6], %s252_s5  ;;  %1652 = vmatpush.bf16.msrb.mxu1 %v2908_v27  ;;  %1463 = vmatpush.bf16.msrb.mxu3 %v3320_v8 }
  0x47   :  { %243 = vst.msk [vmem:[#allocation2 + $0x18] ss:$8 sm:$0x7] %vm3323_vm0, %v241_v38  ;;  %v254_v39 = vld [vmem:[%s253_s17] ss:$8 sm:$0x7]  ;;  %1671 = vmatpush.bf16.msrb.mxu2 %v2906_v28 }
  0x48   :  { %256 = vst.msk [vmem:[#allocation2 + $0x19] ss:$8 sm:$0x7] %vm3323_vm0, %v254_v39  ;;  %s2615_s18 = smul.u32 24, %s259_s28  ;;  %s272_s21 = sshra.s32 %s3360_s20, 3 }
  0x49   :  { %s275_s22 = sand.u32 7, %s3360_s20  ;;  %s2617_s23 = smul.u32 24, %s272_s21  ;;  %v960_v46 = vld [vmem:[#allocation2] sm:$0xff]  ;;  %v961_v47 = vld [vmem:[#allocation2 + $0x8] sm:$0xff]  ;;  %v962_v48 = vld [vmem:[#allocation2 + $0x10] sm:$0xff] }
  0x4a   :  { %s265_s1 = sadd.s32 %s2615_s18, %s262_s12  ;;  %s2618_s24 = sld [smem:[#allocation4 + $0xc]]  ;;  %1464 = vmatpush.bf16.msrb.mxu3 %v3329_v13 }
  0x4b   :  { %s278_s25 = sadd.s32 %s2617_s23, %s275_s22  ;;  %s266_s0 = scalar_lea.vmem [#allocation6], %s265_s1 }
  0x4c   :  { %v267_v40 = vld [vmem:[%s266_s0] ss:$8 sm:$0x7]  ;;  %s2620_s19 = sld [smem:[#allocation4 + $0xd]]  ;;  %s279_s26 = scalar_lea.vmem [#allocation6], %s278_s25 }
  0x4d   :  { %269 = vst.msk [vmem:[#allocation2 + $0x1a] ss:$8 sm:$0x7] %vm3323_vm0, %v267_v40  ;;  %v280_v41 = vld [vmem:[%s279_s26] ss:$8 sm:$0x7] }
  0x4e   :  { %282 = vst.msk [vmem:[#allocation2 + $0x1b] ss:$8 sm:$0x7] %vm3323_vm0, %v280_v41  ;;  %s2622_s4 = sld [smem:[#allocation4 + $0xe]]  ;;  %s3898_s26 = smov 32  }
  0x4f   :  { %s2624_s6 = sld [smem:[#allocation4 + $0xf]] }
  0x50   :  { %s285_s20 = sshra.s32 %s2618_s24, 3  ;;  %s288_s27 = sand.u32 7, %s2618_s24 }
  0x51   :  { %s2619_s10 = smul.u32 24, %s285_s20  ;;  %s2626_s20 = sld [smem:[#allocation4 + $0x10]] }
  0x52   :  { %s298_s30 = sshra.s32 %s2620_s19, 3  ;;  %s301_s13 = sand.u32 7, %s2620_s19 }
  0x53   :  { %s291_s14 = sadd.s32 %s2619_s10, %s288_s27  ;;  %s2621_s2 = smul.u32 24, %s298_s30 }
  0x54   :  { %s311_s15 = sshra.s32 %s2622_s4, 3  ;;  %s292_s28 = scalar_lea.vmem [#allocation6], %s291_s14 }
  0x55   :  { %v293_v42 = vld [vmem:[%s292_s28] ss:$8 sm:$0x7]  ;;  %s304_s5 = sadd.s32 %s2621_s2, %s301_s13  ;;  %s314_s16 = sand.u32 7, %s2622_s4 }
  0x56   :  { %295 = vst.msk [vmem:[#allocation2 + $0x1c] ss:$8 sm:$0x7] %vm3323_vm0, %v293_v42  ;;  %s2623_s12 = smul.u32 24, %s311_s15  ;;  %s305_s17 = scalar_lea.vmem [#allocation6], %s304_s5 }
  0x57   :  { %v306_v43 = vld [vmem:[%s305_s17] ss:$8 sm:$0x7]  ;;  %s324_s18 = sshra.s32 %s2624_s6, 3  ;;  %s327_s21 = sand.u32 7, %s2624_s6 }
  0x58   :  { %308 = vst.msk [vmem:[#allocation2 + $0x1d] ss:$8 sm:$0x7] %vm3323_vm0, %v306_v43  ;;  %s317_s22 = sadd.s32 %s2623_s12, %s314_s16  ;;  %s2625_s23 = smul.u32 24, %s324_s18 }
  0x59   :  { %s318_s1 = scalar_lea.vmem [#allocation6], %s317_s22  ;;  %s2628_s27 = sld [smem:[#allocation4 + $0x11]] }
  0x5a   :  { %v319_v44 = vld [vmem:[%s318_s1] ss:$8 sm:$0x7]  ;;  %s330_s24 = sadd.s32 %s2625_s23, %s327_s21  ;;  %s2630_s10 = sld [smem:[#allocation4 + $0x12]] }
  0x5b   :  { %321 = vst.msk [vmem:[#allocation2 + $0x1e] ss:$8 sm:$0x7] %vm3323_vm0, %v319_v44  ;;  %s331_s25 = scalar_lea.vmem [#allocation6], %s330_s24  ;;  %s337_s30 = sshra.s32 %s2626_s20, 3 }
  0x5c   :  { %v332_v45 = vld [vmem:[%s331_s25] ss:$8 sm:$0x7]  ;;  %s2632_s13 = sld [smem:[#allocation4 + $0x13]]  ;;  %s2627_s14 = smul.u32 24, %s337_s30 }
  0x5d   :  { %334 = vst.msk [vmem:[#allocation2 + $0x1f] ss:$8 sm:$0x7] %vm3323_vm0, %v332_v45  ;;  %s340_s2 = sand.u32 7, %s2626_s20  ;;  %s2634_s28 = sld [smem:[#allocation4 + $0x14]] }
  0x5e   :  { %s2636_s16 = sld [smem:[#allocation4 + $0x15]]  ;;  %s3441_s12 = sadd.s32 %s2627_s14, %s340_s2 }
  0x5f   :  { %s350_s15 = sshra.s32 %s2628_s27, 3  ;;  %s353_s21 = sand.u32 7, %s2628_s27 }
  0x60   :  { %s363_s5 = sshra.s32 %s2630_s10, 3  ;;  %s2629_s17 = smul.u32 24, %s350_s15 }
  0x61   :  { %s2631_s22 = smul.u32 24, %s363_s5  ;;  %s366_s23 = sand.u32 7, %s2630_s10 }
  0x62   :  { %s376_s18 = sshra.s32 %s2632_s13, 3  ;;  %s2638_s24 = sld [smem:[#allocation4 + $0x16]] }
  0x63   :  { %s2633_s1 = smul.u32 24, %s376_s18  ;;  %s3443_s25 = sadd.s32 %s2629_s17, %s353_s21 }
  0x64   :  { %v963_v49 = vld [vmem:[#allocation2 + $0x18] sm:$0xff]  ;;  %v964_v50 = vld [vmem:[#allocation2 + $0x20] sm:$0xff]  ;;  %v965_v51 = vld [vmem:[#allocation2 + $0x28] sm:$0xff]  ;;  %s379_s0 = sand.u32 7, %s2632_s13  ;;  %s3445_s19 = sadd.s32 %s2631_s22, %s366_s23 }
  0x65   :  { %v984_v52 = vpack.c.bf16 %v963_v49, %v960_v46  ;;  %v985_v53 = vpack.c.bf16 %v964_v50, %v961_v47  ;;  %v986_v54 = vpack.c.bf16 %v965_v51, %v962_v48  ;;  %s389_s4 = sshra.s32 %s2634_s28, 3  ;;  %s402_s6 = sshra.s32 %s2636_s16, 3 }
  0x66   :  { %s2640_s20 = sld [smem:[#allocation4 + $0x17]]  ;;  %s3447_s30 = sadd.s32 %s2633_s1, %s379_s0 }
  0x67   :  { %1200 = vmatmul.bf16.vlgmr.msra.gmra.mxu0 %v984_v52  ;;  %1229 = vmatmul.bf16.vlgmr.msra.gmra.mxu1 %v985_v53  ;;  %s392_s14 = sand.u32 7, %s2634_s28  ;;  %s2635_s2 = smul.u32 24, %s389_s4 }
  0x68   :  { %1258 = vmatmul.bf16.vlgmr.msra.gmra.mxu2 %v986_v54  ;;  %1780 = vmatpush.bf16.msra.mxu0 %v2909_v25  ;;  %s405_s15 = sand.u32 7, %s2636_s16  ;;  %s415_s27 = sshra.s32 %s2638_s24, 3 }
  0x69   :  { %1799 = vmatpush.bf16.msra.mxu1 %v2907_v26  ;;  %1850 = vmatpush.bf16.msra.mxu2 %v3320_v8  ;;  %v2924_v8 = vld [vmem:[%s3891_s7] ss:$0 sm:$0xff]  ;;  %s2644_s5 = sld [smem:[#allocation4 + $0x19]]  ;;  %s3449_s10 = sadd.s32 %s2635_s2, %s392_s14 }
  0x6a   :  { %s2639_s17 = smul.u32 24, %s415_s27  ;;  %s418_s13 = sand.u32 7, %s2638_s24 }
  0x6b   :  { %s2646_s23 = sld [smem:[#allocation4 + $0x1a]] }
  0x6c   :  { %1781 = vmatpush.bf16.msra.mxu0 %v2908_v27  ;;  %s428_s21 = sshra.s32 %s2640_s20, 3  ;;  %s431_s11 = sand.u32 7, %s2640_s20 }
  0x6d   :  { %1800 = vmatpush.bf16.msra.mxu1 %v2906_v28  ;;  %1851 = vmatpush.bf16.msra.mxu2 %v3329_v13  ;;  %s2648_s9 = sld [smem:[#allocation4 + $0x1b]]  ;;  %s3453_s1 = sadd.s32 %s2639_s17, %s418_s13 }
  0x6e   :  { %3911 = sst [smem:[#allocation19_spill]] %s3453_s1  ;;  %s2641_s0 = smul.u32 24, %s428_s21 }
  0x6f   :  { %s454_s4 = sshra.s32 %s2644_s5, 3  ;;  %s2652_s27 = sld [smem:[#allocation4 + $0x1d]] }
  0x70   :  { %s2645_s8 = smul.u32 24, %s454_s4  ;;  %s2654_s20 = sld [smem:[#allocation4 + $0x1e]] }
  0x71   :  { %s467_s2 = sshra.s32 %s2646_s23, 3  ;;  %s470_s3 = sand.u32 7, %s2646_s23 }
  0x72   :  { %s2647_s17 = smul.u32 24, %s467_s2  ;;  %s2656_s21 = sld [smem:[#allocation4 + $0x1f]] }
  0x73   :  { %s480_s24 = sshra.s32 %s2648_s9, 3 }
  0x74   :  { %s2649_s13 = smul.u32 24, %s480_s24  ;;  %s3461_s1 = sadd.s32 %s2647_s17, %s470_s3 }
  0x75   :  { %3915 = sst [smem:[#allocation23_spill]] %s3461_s1 }
  0x78   :  { %s532_s2 = sshra.s32 %s2656_s21, 3  ;;  %s535_s3 = sand.u32 7, %s2656_s21 }
  0x79   :  { %s2657_s24 = smul.u32 24, %s532_s2  ;;  %s2670_s21 = sld [smem:[#allocation4 + $0x26]] }
  0xac   :  { %v1320_v55 = vpop.f32.mrf.mxu3 }
  0xb4   :  { %v1322_v56 = vpop.f32.mrf.mxu3 }
  0xc0   :  { %v1384_v32 = vpop.f32.mrf.mxu3 }
  0xc8   :  { %v1386_v24 = vpop.f32.mrf.mxu3 }
  0xe4   :  { %v1201_v58 = vpop.f32.mrf.mxu0  ;;  %v1230_v60 = vpop.f32.mrf.mxu1 }
  0xe5   :  { %v1202_v59 = vadd.f32 %v3399_v57, %v1201_v58 }
  0xe7   :  { %v1231_v61 = vadd.f32 %v1230_v60, %v1202_v59 }
  0xeb   :  { %v1259_v62 = vpop.f32.mrf.mxu2 }
  0xec   :  { %v1260_v63 = vadd.f32 %v1259_v62, %v1231_v61  ;;  %v1203_v36 = vpop.f32.mrf.mxu0  ;;  %v1232_v40 = vpop.f32.mrf.mxu1 }
  0xed   :  { %v1204_v38 = vadd.f32 %v3399_v57, %v1203_v36 }
  0xee   :  { %v1324_v0 = vadd.f32 %v1320_v55, %v1260_v63 }
  0xef   :  { %v1233_v42 = vadd.f32 %v1232_v40, %v1204_v38 }
  0xf0   :  { %2928 = vtanh.f32 %v1324_v0  ;;  %v2826_v2 = vmul.f32 -1.442695, %v1324_v0 }
  0xf2   :  { %2930 = vpow2.f32 %v2826_v2 }
  0xf3   :  { %v1261_v41 = vpop.f32.mrf.mxu2 }
  0xf4   :  { %v1262_v43 = vadd.f32 %v1261_v41, %v1233_v42 }
  0xf6   :  { %v2929_v1 = vpop.eup %2928 }
  0xf7   :  { %1347 = vrot.lane.b32.xlu0 %v2929_v1, %s3896_s29 }
  0xf8   :  { %v2931_v3 = vpop.eup %2930 }
  0xf9   :  { %v1328_v4 = vadd.f32 1.0, %v2931_v3 }
  0xfb   :  { %2932 = vrcp.f32 %v1328_v4  ;;  %v1340_v12 = vand.u32 2147483648, %v1328_v4  ;;  %vm1334_vm2 = vweird.f32 %v1328_v4  ;;  %v1338_v14 = vand.u32 2147483647, %v1328_v4 }
  0xfd   :  { %v1341_v16 = vor.u32 1.1754944e-38, %v1340_v12  ;;  %vm1339_vm4 = vcmp.eq.f32.partialorder %v1338_v14, 8.507059e+37 }
 0x101   :  { %v2933_v5 = vpop.eup %2932 }
 0x102   :  { %v1330_v6 = vmul.f32 %v2933_v5, %v1328_v4  ;;  %vm1335_vm1 = vweird.f32 %v2933_v5 }
 0x103   :  { %vm1336_vm3 = vmor %vm1334_vm2, %vm1335_vm1 }
 0x104   :  { %v1331_v7 = vsub.f32 1.0, %v1330_v6 }
 0x106   :  { %v1332_v9 = vmul.f32 %v2933_v5, %v1331_v7 }
 0x108   :  { %v1333_v10 = vadd.f32 %v2933_v5, %v1332_v9 }
 0x10a   :  { %v1337_v15 = vsel %vm1336_vm3, %v2933_v5, %v1333_v10 }
 0x10b   :  { %v1342_v18 = vsel %vm1339_vm4, %v1341_v16, %v1337_v15 }
 0x10c   :  { %v1345_v20 = vmul.f32 0.0, %v1342_v18 }
 0x169   :  { %v1348_v17 = vpop.permute.xlu0 %1347 }
 0x16a   :  { %v1350_v19 = vmul.f32 %v1348_v17, %v1342_v18 }
 0x16c   :  { %1352 = vrot.lane.b32.xlu0 %v1350_v19, %s3898_s26 }
 0x1de   :  { %v1353_v21 = vpop.permute.xlu0 %1352 }
 0x1df   :  { %v3404_v22 = vadd.f32 %v1353_v21, %v1345_v20 }
 0x1e1   :  { %2934 = vtanh.f32 %v3404_v22 }
 0x1e7   :  { %v2935_v23 = vpop.eup %2934 }
 0x1e8   :  { %1358 = vrot.lane.b32.xlu1 %v2935_v23, %s3896_s29 }
 0x25a   :  { %v1359_v29 = vpop.permute.xlu1 %1358 }
 0x25b   :  { %v1361_v30 = vmul.f32 %v1359_v29, %v1342_v18 }
 0x25d   :  { %v1362_v31 = vpack.c.bf16 %v1361_v30, %v1361_v30 }
 0x25f   :  { %1389 = vrot.lane.b32.xlu1 %v1362_v31, %s3898_s26 }
 0x2d1   :  { %v1390_v33 = vpop.permute.xlu1 %1389 }
 0x2d2   :  { %2843 = vmatmul.msk.bf16.vlgmr.msra.gmra.mxu3 %vm1307_vm5, %v1390_v33 }
 0x2d3   :  { %1522 = vmatpush.bf16.msra.mxu3 %v2909_v25 }
 0x2d7   :  { %1523 = vmatpush.bf16.msra.mxu3 %v2908_v27 }
 0x2e2   :  { %2845 = vmatmul.msk.bf16.vlgmr.msrb.gmra.mxu3 %vm1307_vm5, %v1390_v33 }
 0x2e3   :  { %1541 = vmatpush.bf16.msrb.mxu3 %v2907_v26 }
 0x2e7   :  { %1542 = vmatpush.bf16.msrb.mxu3 %v2906_v28 }
 0x355   :  { %v1415_v13 = vpop.f32.mrf.mxu3 }
 0x356   :  { %v1416_v34 = vadd.f32 %v1415_v13, %v1384_v32 }
 0x358   :  { %v1419_v35 = vadd.f32 %v2924_v8, %v1416_v34 }
 0x35a   :  { %2936 = vtanh.f32 %v1419_v35  ;;  %v2844_v48 = vmul.f32 -1.442695, %v1419_v35 }
 0x35d   :  { %v1417_v37 = vpop.f32.mrf.mxu3 }
 0x360   :  { %v2937_v39 = vpop.eup %2936 }
 0x361   :  { %1442 = vrot.lane.b32.xlu2 %v2937_v39, %s3896_s29 }
 0x365   :  { %v1466_v44 = vpop.f32.mrf.mxu3 }
 0x366   :  { %v1470_v45 = vadd.f32 %v1466_v44, %v1262_v43 }
 0x368   :  { %2938 = vtanh.f32 %v1470_v45  ;;  %v2846_v51 = vmul.f32 -1.442695, %v1470_v45 }
 0x369   :  { %2940 = vpow2.f32 %v2844_v48 }
 0x36d   :  { %v1468_v46 = vpop.f32.mrf.mxu3 }
 0x36e   :  { %v2939_v47 = vpop.eup %2938 }
 0x36f   :  { %1493 = vrot.lane.b32.xlu2 %v2939_v47, %s3896_s29  ;;  %v2941_v49 = vpop.eup %2940 }
 0x370   :  { %v1423_v50 = vadd.f32 1.0, %v2941_v49 }
 0x372   :  { %2942 = vrcp.f32 %v1423_v50  ;;  %v1435_v60 = vand.u32 2147483648, %v1423_v50  ;;  %vm1429_vm7 = vweird.f32 %v1423_v50  ;;  %v1433_v61 = vand.u32 2147483647, %v1423_v50 }
 0x373   :  { %2944 = vpow2.f32 %v2846_v51 }
 0x374   :  { %v1436_v0 = vor.u32 1.1754944e-38, %v1435_v60  ;;  %vm1434_vm9 = vcmp.eq.f32.partialorder %v1433_v61, 8.507059e+37 }
 0x378   :  { %v2943_v52 = vpop.eup %2942 }
 0x379   :  { %v2945_v53 = vpop.eup %2944  ;;  %v1425_v54 = vmul.f32 %v2943_v52, %v1423_v50  ;;  %vm1430_vm6 = vweird.f32 %v2943_v52 }
 0x37a   :  { %v1474_v55 = vadd.f32 1.0, %v2945_v53  ;;  %vm1431_vm8 = vmor %vm1429_vm7, %vm1430_vm6 }
 0x37b   :  { %v1426_v56 = vsub.f32 1.0, %v1425_v54 }
 0x37c   :  { %2946 = vrcp.f32 %v1474_v55  ;;  %v1486_v7 = vand.u32 2147483648, %v1474_v55  ;;  %vm1480_vm11 = vweird.f32 %v1474_v55  ;;  %v1484_v9 = vand.u32 2147483647, %v1474_v55 }
 0x37d   :  { %v1427_v57 = vmul.f32 %v2943_v52, %v1426_v56 }
 0x37e   :  { %v1487_v12 = vor.u32 1.1754944e-38, %v1486_v7  ;;  %vm1485_vm13 = vcmp.eq.f32.partialorder %v1484_v9, 8.507059e+37 }
 0x37f   :  { %v1428_v59 = vadd.f32 %v2943_v52, %v1427_v57 }
 0x381   :  { %v1432_v63 = vsel %vm1431_vm8, %v2943_v52, %v1428_v59 }
 0x382   :  { %v2947_v58 = vpop.eup %2946  ;;  %v3422_v3 = vsel %vm1434_vm9, %v1436_v0, %v1432_v63 }
 0x383   :  { %v1476_v62 = vmul.f32 %v2947_v58, %v1474_v55  ;;  %vm1481_vm10 = vweird.f32 %v2947_v58  ;;  %v1440_v17 = vmul.f32 0.0, %v3422_v3 }
 0x384   :  { %vm1482_vm12 = vmor %vm1480_vm11, %vm1481_vm10 }
 0x385   :  { %v1477_v1 = vsub.f32 1.0, %v1476_v62 }
 0x387   :  { %v1478_v5 = vmul.f32 %v2947_v58, %v1477_v1 }
 0x389   :  { %v1479_v6 = vadd.f32 %v2947_v58, %v1478_v5 }
 0x38b   :  { %v1483_v10 = vsel %vm1482_vm12, %v2947_v58, %v1479_v6 }
 0x38c   :  { %v3426_v14 = vsel %vm1485_vm13, %v1487_v12, %v1483_v10 }
 0x38d   :  { %v1491_v21 = vmul.f32 %v3426_v14, %v3404_v22 }
 0x3bb   :  { %v1443_v2 = vpop.permute.xlu2 %1442 }
 0x3bc   :  { %v1445_v4 = vmul.f32 %v1443_v2, %v3422_v3 }
 0x3be   :  { %1447 = vrot.lane.b32.xlu0 %v1445_v4, %s3898_s26 }
 0x3c9   :  { %v1494_v15 = vpop.permute.xlu2 %1493 }
 0x3ca   :  { %v1496_v16 = vmul.f32 %v1494_v15, %v3426_v14 }
 0x3cc   :  { %1498 = vrot.lane.b32.xlu1 %v1496_v16, %s3898_s26  ;;  %s2637_s26 = smul.u32 24, %s402_s6  ;;  %s3455_s6 = sadd.s32 %s2641_s0, %s431_s11 }
 0x3cd   :  { %3912 = sst [smem:[#allocation20_spill]] %s3455_s6  ;;  %s506_s0 = sshra.s32 %s2652_s27, 3 }
 0x3ce   :  { %s3451_s18 = sadd.s32 %s2637_s26, %s405_s15  ;;  %s457_s26 = sand.u32 7, %s2644_s5 }
 0x3cf   :  { %3910 = sst [smem:[#allocation18_spill]] %s3451_s18  ;;  %s3459_s7 = sadd.s32 %s2645_s8, %s457_s26 }
 0x3d0   :  { %s2650_s15 = sld [smem:[#allocation4 + $0x1c]]  ;;  %s509_s8 = sand.u32 7, %s2652_s27 }
 0x3d1   :  { %3914 = sst [smem:[#allocation22_spill]] %s3459_s7  ;;  %s2653_s26 = smul.u32 24, %s506_s0 }
 0x3d2   :  { %s3465_s5 = sld [smem:[#allocation4 + $0x20]] }
 0x3d3   :  { %s2660_s7 = sld [smem:[#allocation4 + $0x21]] }
 0x3d4   :  { %s2664_s27 = sld [smem:[#allocation4 + $0x23]] }
 0x3d5   :  { %s2666_s0 = sld [smem:[#allocation4 + $0x24]] }
 0x3d6   :  { %s493_s11 = sshra.s32 %s2650_s15, 3  ;;  %s496_s4 = sand.u32 7, %s2650_s15 }
 0x3d7   :  { %s2662_s15 = sld [smem:[#allocation4 + $0x22]] }
 0x3d8   :  { %s545_s1 = sshra.s32 %s3465_s5, 3  ;;  %s2668_s18 = sld [smem:[#allocation4 + $0x25]] }
 0x3d9   :  { %s561_s6 = sand.u32 7, %s2660_s7 }
 0x430   :  { %v1448_v18 = vpop.permute.xlu0 %1447 }
 0x431   :  { %v3431_v19 = vadd.f32 %v1448_v18, %v1440_v17 }
 0x433   :  { %2948 = vtanh.f32 %v3431_v19 }
 0x439   :  { %v2949_v20 = vpop.eup %2948 }
 0x43a   :  { %1453 = vrot.lane.b32.xlu2 %v2949_v20, %s3896_s29 }
 0x43e   :  { %v1499_v23 = vpop.permute.xlu1 %1498 }
 0x43f   :  { %v3437_v25 = vadd.f32 %v1499_v23, %v1491_v21 }
 0x441   :  { %2950 = vtanh.f32 %v3437_v25 }
 0x447   :  { %v2951_v26 = vpop.eup %2950 }
 0x448   :  { %1504 = vrot.lane.b32.xlu0 %v2951_v26, %s3896_s29  ;;  %s2642_s29 = sld [smem:[#allocation4 + $0x18]] }
 0x44e   :  { %s441_s22 = sshra.s32 %s2642_s29, 3  ;;  %s444_s16 = sand.u32 7, %s2642_s29 }
 0x44f   :  { %s2643_s28 = smul.u32 24, %s441_s22  ;;  %s483_s22 = sand.u32 7, %s2648_s9 }
 0x450   :  { %s3463_s29 = sadd.s32 %s2649_s13, %s483_s22  ;;  %s522_s9 = sand.u32 7, %s2654_s20 }
 0x451   :  { %s3457_s14 = sadd.s32 %s2643_s28, %s444_s16  ;;  %3916 = sst [smem:[#allocation24_spill]] %s3463_s29 }
 0x452   :  { %3913 = sst [smem:[#allocation21_spill]] %s3457_s14  ;;  %s519_s28 = sshra.s32 %s2654_s20, 3 }
 0x453   :  { %s2651_s16 = smul.u32 24, %s493_s11  ;;  %s3469_s13 = sadd.s32 %s2653_s26, %s509_s8 }
 0x454   :  { %s2655_s23 = smul.u32 24, %s519_s28  ;;  %3918 = sst [smem:[#allocation26_spill]] %s3469_s13 }
 0x455   :  { %s3467_s17 = sadd.s32 %s2651_s16, %s496_s4  ;;  %s3473_s29 = sadd.s32 %s2657_s24, %s535_s3 }
 0x456   :  { %3917 = sst [smem:[#allocation25_spill]] %s3467_s17  ;;  %s3471_s22 = sadd.s32 %s2655_s23, %s522_s9 }
 0x457   :  { %3919 = sst [smem:[#allocation27_spill]] %s3471_s22  ;;  %s558_s11 = sshra.s32 %s2660_s7, 3 }
 0x458   :  { %3920 = sst [smem:[#allocation28_spill]] %s3473_s29  ;;  %s548_s14 = sand.u32 7, %s3465_s5 }
 0x459   :  { %s2659_s28 = smul.u32 24, %s545_s1  ;;  %s571_s20 = sshra.s32 %s2662_s15, 3 }
 0x45a   :  { %s2661_s2 = smul.u32 24, %s558_s11  ;;  %s574_s4 = sand.u32 7, %s2662_s15 }
 0x45b   :  { %s2663_s16 = smul.u32 24, %s571_s20  ;;  %s3477_s8 = sadd.s32 %s2659_s28, %s548_s14 }
 0x45c   :  { %3921 = sst [smem:[#allocation29_spill]] %s3477_s8  ;;  %s584_s26 = sshra.s32 %s2664_s27, 3 }
 0x45d   :  { %s3479_s23 = sadd.s32 %s2661_s2, %s561_s6  ;;  %s2672_s24 = sld [smem:[#allocation4 + $0x27]] }
 0x45e   :  { %s3481_s9 = sadd.s32 %s2663_s16, %s574_s4  ;;  %s2665_s3 = smul.u32 24, %s584_s26 }
 0x45f   :  { %s587_s29 = sand.u32 7, %s2664_s27  ;;  %s597_s5 = sshra.s32 %s2666_s0, 3 }
 0x460   :  { %s610_s22 = sshra.s32 %s2668_s18, 3  ;;  %s3483_s1 = sadd.s32 %s2665_s3, %s587_s29 }
 0x461   :  { %s2667_s7 = smul.u32 24, %s597_s5  ;;  %s623_s13 = sshra.s32 %s2670_s21, 3 }
 0x462   :  { %s2669_s11 = smul.u32 24, %s610_s22  ;;  %s600_s17 = sand.u32 7, %s2666_s0 }
 0x463   :  { %s613_s15 = sand.u32 7, %s2668_s18  ;;  %s626_s20 = sand.u32 7, %s2670_s21 }
 0x464   :  { %s2671_s14 = smul.u32 24, %s623_s13  ;;  %s636_s28 = sshra.s32 %s2672_s24, 3 }
 0x465   :  { %s3485_s8 = sadd.s32 %s2667_s7, %s600_s17  ;;  %s3487_s6 = sadd.s32 %s2669_s11, %s613_s15 }
 0x466   :  { %s3489_s2 = sadd.s32 %s2671_s14, %s626_s20  ;;  %s2674_s4 = sld [smem:[#allocation4 + $0x28]] }
 0x467   :  { %s2673_s27 = smul.u32 24, %s636_s28  ;;  %s2676_s16 = sld [smem:[#allocation4 + $0x29]] }
 0x468   :  { %s639_s26 = sand.u32 7, %s2672_s24  ;;  %s2678_s29 = sld [smem:[#allocation4 + $0x2a]] }
 0x469   :  { %s2680_s3 = sld [smem:[#allocation4 + $0x2b]]  ;;  %s3491_s5 = sadd.s32 %s2673_s27, %s639_s26 }
 0x46a   :  { %3922 = sst [smem:[#allocation30_spill]] %s3491_s5  ;;  %s3924_s28 = smov 32  }
 0x46b   :  { %s3493_s22 = sld [smem:[#allocation4 + $0x2c]]  ;;  %s344_s5 = scalar_lea.vmem [#allocation6], %s3441_s12 }
 0x46c   :  { %s649_s18 = sshra.s32 %s2674_s4, 3  ;;  %s652_s0 = sand.u32 7, %s2674_s4  ;;  %v345_v29 = vld [vmem:[%s344_s5] ss:$8 sm:$0x7] }
 0x46d   :  { %s2675_s13 = smul.u32 24, %s649_s18  ;;  %s662_s17 = sshra.s32 %s2676_s16, 3  ;;  %347 = vst.msk [vmem:[#allocation2 + $0x30] ss:$8 sm:$0x7] %vm3323_vm0, %v345_v29 }
 0x46e   :  { %s665_s21 = sand.u32 7, %s2676_s16  ;;  %s2677_s7 = smul.u32 24, %s662_s17 }
 0x46f   :  { %s675_s11 = sshra.s32 %s2678_s29, 3  ;;  %s3496_s24 = sadd.s32 %s2675_s13, %s652_s0 }
 0x470   :  { %3923 = sst [smem:[#allocation31_spill]] %s3496_s24  ;;  %s3500_s20 = sadd.s32 %s2677_s7, %s665_s21 }
 0x471   :  { %s3498_s15 = sld [smem:[#allocation4 + $0x2d]]  ;;  %s678_s14 = sand.u32 7, %s2678_s29 }
 0x472   :  { %s2679_s4 = smul.u32 24, %s675_s11  ;;  %s688_s27 = sshra.s32 %s2680_s3, 3 }
 0x473   :  { %s691_s16 = sand.u32 7, %s2680_s3  ;;  %s2681_s26 = smul.u32 24, %s688_s27 }
 0x474   :  { %s3503_s18 = sadd.s32 %s2679_s4, %s678_s14  ;;  %s701_s0 = sshra.s32 %s3493_s22, 3 }
 0x475   :  { %s3505_s17 = sadd.s32 %s2681_s26, %s691_s16  ;;  %s3925_s13 = sld [smem:[#allocation18_spill]] }
 0x476   :  { %s704_s24 = sand.u32 7, %s3493_s22  ;;  %s3926_s21 = sld [smem:[#allocation19_spill]] }
 0x477   :  { %s357_s7 = scalar_lea.vmem [#allocation6], %s3443_s25  ;;  %s3927_s29 = sld [smem:[#allocation20_spill]] }
 0x478   :  { %v358_v30 = vld [vmem:[%s357_s7] ss:$8 sm:$0x7]  ;;  %s370_s11 = scalar_lea.vmem [#allocation6], %s3445_s19  ;;  %s3928_s3 = sld [smem:[#allocation21_spill]] }
 0x479   :  { %v371_v31 = vld [vmem:[%s370_s11] ss:$8 sm:$0x7]  ;;  %360 = vst.msk [vmem:[#allocation2 + $0x31] ss:$8 sm:$0x7] %vm3323_vm0, %v358_v30 }
 0x47a   :  { %s383_s14 = scalar_lea.vmem [#allocation6], %s3447_s30  ;;  %373 = vst.msk [vmem:[#allocation2 + $0x32] ss:$8 sm:$0x7] %vm3323_vm0, %v371_v31  ;;  %s3929_s12 = sld [smem:[#allocation22_spill]] }
 0x47b   :  { %v384_v32 = vld [vmem:[%s383_s14] ss:$8 sm:$0x7]  ;;  %s396_s5 = scalar_lea.vmem [#allocation6], %s3449_s10  ;;  %s3930_s25 = sld [smem:[#allocation23_spill]] }
 0x47c   :  { %v397_v33 = vld [vmem:[%s396_s5] ss:$8 sm:$0x7]  ;;  %386 = vst.msk [vmem:[#allocation2 + $0x33] ss:$8 sm:$0x7] %vm3323_vm0, %v384_v32 }
 0x47d   :  { %s409_s4 = scalar_lea.vmem [#allocation6], %s3925_s13  ;;  %399 = vst.msk [vmem:[#allocation2 + $0x34] ss:$8 sm:$0x7] %vm3323_vm0, %v397_v33  ;;  %s3931_s19 = sld [smem:[#allocation24_spill]] }
 0x47e   :  { %v410_v24 = vld [vmem:[%s409_s4] ss:$8 sm:$0x7]  ;;  %s422_s27 = scalar_lea.vmem [#allocation6], %s3926_s21  ;;  %s3932_s30 = sld [smem:[#allocation25_spill]] }
 0x47f   :  { %v423_v8 = vld [vmem:[%s422_s27] ss:$8 sm:$0x7]  ;;  %412 = vst.msk [vmem:[#allocation2 + $0x35] ss:$8 sm:$0x7] %vm3323_vm0, %v410_v24 }
 0x480   :  { %s435_s16 = scalar_lea.vmem [#allocation6], %s3927_s29  ;;  %425 = vst.msk [vmem:[#allocation2 + $0x36] ss:$8 sm:$0x7] %vm3323_vm0, %v423_v8  ;;  %s3933_s10 = sld [smem:[#allocation26_spill]] }
 0x481   :  { %v436_v13 = vld [vmem:[%s435_s16] ss:$8 sm:$0x7]  ;;  %s448_s26 = scalar_lea.vmem [#allocation6], %s3928_s3  ;;  %s3934_s13 = sld [smem:[#allocation27_spill]] }
 0x482   :  { %v449_v34 = vld [vmem:[%s448_s26] ss:$8 sm:$0x7]  ;;  %438 = vst.msk [vmem:[#allocation2 + $0x37] ss:$8 sm:$0x7] %vm3323_vm0, %v436_v13 }
 0x483   :  { %s461_s7 = scalar_lea.vmem [#allocation6], %s3929_s12  ;;  %451 = vst.msk [vmem:[#allocation2 + $0x48] ss:$8 sm:$0x7] %vm3323_vm0, %v449_v34  ;;  %s3935_s21 = sld [smem:[#allocation28_spill]] }
 0x484   :  { %v462_v35 = vld [vmem:[%s461_s7] ss:$8 sm:$0x7]  ;;  %s474_s11 = scalar_lea.vmem [#allocation6], %s3930_s25  ;;  %s487_s29 = scalar_lea.vmem [#allocation6], %s3931_s19 }
 0x485   :  { %v475_v36 = vld [vmem:[%s474_s11] ss:$8 sm:$0x7]  ;;  %464 = vst.msk [vmem:[#allocation2 + $0x49] ss:$8 sm:$0x7] %vm3323_vm0, %v462_v35 }
 0x486   :  { %v488_v37 = vld [vmem:[%s487_s29] ss:$8 sm:$0x7]  ;;  %477 = vst.msk [vmem:[#allocation2 + $0x4a] ss:$8 sm:$0x7] %vm3323_vm0, %v475_v36 }
 0x487   :  { %s3936_s3 = sld [smem:[#allocation29_spill]]  ;;  %s500_s14 = scalar_lea.vmem [#allocation6], %s3932_s30  ;;  %490 = vst.msk [vmem:[#allocation2 + $0x4b] ss:$8 sm:$0x7] %vm3323_vm0, %v488_v37 }
 0x488   :  { %v501_v38 = vld [vmem:[%s500_s14] ss:$8 sm:$0x7]  ;;  %s513_s12 = scalar_lea.vmem [#allocation6], %s3933_s10  ;;  %s526_s5 = scalar_lea.vmem [#allocation6], %s3934_s13 }
 0x489   :  { %v514_v39 = vld [vmem:[%s513_s12] ss:$8 sm:$0x7]  ;;  %503 = vst.msk [vmem:[#allocation2 + $0x4c] ss:$8 sm:$0x7] %vm3323_vm0, %v501_v38 }
 0x48a   :  { %v527_v40 = vld [vmem:[%s526_s5] ss:$8 sm:$0x7]  ;;  %516 = vst.msk [vmem:[#allocation2 + $0x4d] ss:$8 sm:$0x7] %vm3323_vm0, %v514_v39 }
 0x48b   :  { %s539_s25 = scalar_lea.vmem [#allocation6], %s3935_s21  ;;  %529 = vst.msk [vmem:[#allocation2 + $0x4e] ss:$8 sm:$0x7] %vm3323_vm0, %v527_v40  ;;  %s3557_s4 = smul.u32 24, %s701_s0  ;;  %v968_v45 = vld [vmem:[#allocation2 + $0x40] sm:$0xff] }
 0x48c   :  { %v540_v41 = vld [vmem:[%s539_s25] ss:$8 sm:$0x7]  ;;  %s714_s19 = sshra.s32 %s3498_s15, 3  ;;  %s565_s30 = scalar_lea.vmem [#allocation6], %s3479_s23  ;;  %v967_v47 = vld [vmem:[#allocation2 + $0x38] sm:$0xff] }
 0x48d   :  { %542 = vst.msk [vmem:[#allocation2 + $0x4f] ss:$8 sm:$0x7] %vm3323_vm0, %v540_v41  ;;  %s552_s27 = scalar_lea.vmem [#allocation6], %s3936_s3  ;;  %s578_s16 = scalar_lea.vmem [#allocation6], %s3481_s9  ;;  %v966_v46 = vld [vmem:[#allocation2 + $0x30] sm:$0xff] }
 0x48e   :  { %v553_v42 = vld [vmem:[%s552_s27] ss:$8 sm:$0x7]  ;;  %s591_s0 = scalar_lea.vmem [#allocation6], %s3483_s1  ;;  %s3937_s10 = sld [smem:[#allocation30_spill]] }
 0x48f   :  { %555 = vst.msk [vmem:[#allocation2 + $0x60] ss:$8 sm:$0x7] %vm3323_vm0, %v553_v42  ;;  %v566_v43 = vld [vmem:[%s565_s30] ss:$8 sm:$0x7] }
 0x490   :  { %568 = vst.msk [vmem:[#allocation2 + $0x61] ss:$8 sm:$0x7] %vm3323_vm0, %v566_v43  ;;  %v579_v44 = vld [vmem:[%s578_s16] ss:$8 sm:$0x7] }
 0x491   :  { %581 = vst.msk [vmem:[#allocation2 + $0x62] ss:$8 sm:$0x7] %vm3323_vm0, %v579_v44  ;;  %v592_v48 = vld [vmem:[%s591_s0] ss:$8 sm:$0x7] }
 0x492   :  { %594 = vst.msk [vmem:[#allocation2 + $0x63] ss:$8 sm:$0x7] %vm3323_vm0, %v592_v48  ;;  %s604_s23 = scalar_lea.vmem [#allocation6], %s3485_s8  ;;  %s3938_s26 = sld [smem:[#allocation31_spill]]  ;;  %v3671_v44 = vld [vmem:[#allocation10 + $0x8] sm:$0xff] }
 0x493   :  { %v605_v49 = vld [vmem:[%s604_s23] ss:$8 sm:$0x7]  ;;  %s617_s9 = scalar_lea.vmem [#allocation6], %s3487_s6  ;;  %s630_s13 = scalar_lea.vmem [#allocation6], %s3489_s2 }
 0x494   :  { %v1454_v22 = vpop.permute.xlu2 %1453  ;;  %607 = vst.msk [vmem:[#allocation2 + $0x64] ss:$8 sm:$0x7] %vm3323_vm0, %v605_v49  ;;  %v618_v50 = vld [vmem:[%s617_s9] ss:$8 sm:$0x7]  ;;  %s707_s2 = sadd.s32 %s3557_s4, %s704_s24 }
 0x495   :  { %v1456_v27 = vmul.f32 %v1454_v22, %v3422_v3  ;;  %620 = vst.msk [vmem:[#allocation2 + $0x65] ss:$8 sm:$0x7] %vm3323_vm0, %v618_v50  ;;  %v631_v51 = vld [vmem:[%s630_s13] ss:$8 sm:$0x7] }
 0x496   :  { %v971_v52 = vld [vmem:[#allocation2 + $0x58] sm:$0xff]  ;;  %v969_v53 = vld [vmem:[#allocation2 + $0x48] sm:$0xff]  ;;  %v970_v54 = vld [vmem:[#allocation2 + $0x50] sm:$0xff]  ;;  %633 = vst.msk [vmem:[#allocation2 + $0x66] ss:$8 sm:$0x7] %vm3323_vm0, %v631_v51 }
 0x497   :  { %v1509_v28 = vpack.c.bf16 %v1456_v27, %v1456_v27  ;;  %v989_v55 = vpack.c.bf16 %v971_v52, %v968_v45  ;;  %v987_v56 = vpack.c.bf16 %v969_v53, %v966_v46  ;;  %v988_v57 = vpack.c.bf16 %v970_v54, %v967_v47  ;;  %s643_s8 = scalar_lea.vmem [#allocation6], %s3937_s10  ;;  %s669_s6 = scalar_lea.vmem [#allocation6], %s3500_s20  ;;  %v3678_v46 = vld [vmem:[#allocation13 + $0x8] sm:$0xff]  ;;  %v3682_v47 = vld [vmem:[#allocation11 + $0x8] sm:$0xff]  ;;  %v3685_v48 = vld [vmem:[#allocation13] sm:$0xff] }
 0x498   :  { %v644_v58 = vld [vmem:[%s643_s8] ss:$8 sm:$0x7]  ;;  %s656_s1 = scalar_lea.vmem [#allocation6], %s3938_s26  ;;  %s682_s7 = scalar_lea.vmem [#allocation6], %s3503_s18 }
 0x499   :  { %1511 = vrot.lane.b32.xlu1 %v1509_v28, %s3924_s28  ;;  %v657_v59 = vld [vmem:[%s656_s1] ss:$8 sm:$0x7]  ;;  %646 = vst.msk [vmem:[#allocation2 + $0x67] ss:$8 sm:$0x7] %vm3323_vm0, %v644_v58  ;;  %1263 = vmatmul.bf16.gmra.mxu2 %v989_v55 }
 0x49a   :  { %v670_v60 = vld [vmem:[%s669_s6] ss:$8 sm:$0x7]  ;;  %1205 = vmatmul.bf16.gmra.mxu0 %v987_v56  ;;  %659 = vst.msk [vmem:[#allocation2 + $0x78] ss:$8 sm:$0x7] %vm3323_vm0, %v657_v59  ;;  %1234 = vmatmul.bf16.gmra.mxu1 %v988_v57 }
 0x49b   :  { %v683_v61 = vld [vmem:[%s682_s7] ss:$8 sm:$0x7]  ;;  %672 = vst.msk [vmem:[#allocation2 + $0x79] ss:$8 sm:$0x7] %vm3323_vm0, %v670_v60 }
 0x49c   :  { %s695_s21 = scalar_lea.vmem [#allocation6], %s3505_s17  ;;  %685 = vst.msk [vmem:[#allocation2 + $0x7a] ss:$8 sm:$0x7] %vm3323_vm0, %v683_v61  ;;  %s717_s22 = sand.u32 7, %s3498_s15  ;;  %v3688_v49 = vld [vmem:[#allocation11] sm:$0xff] }
 0x49d   :  { %v696_v63 = vld [vmem:[%s695_s21] ss:$8 sm:$0x7]  ;;  %s708_s24 = scalar_lea.vmem [#allocation6], %s707_s2  ;;  %s2685_s20 = smul.u32 24, %s714_s19 }
 0x49e   :  { %698 = vst.msk [vmem:[#allocation2 + $0x7b] ss:$8 sm:$0x7] %vm3323_vm0, %v696_v63  ;;  %v709_v1 = vld [vmem:[%s708_s24] ss:$8 sm:$0x7] }
 0x49f   :  { %711 = vst.msk [vmem:[#allocation2 + $0x7c] ss:$8 sm:$0x7] %vm3323_vm0, %v709_v1  ;;  %s2686_s18 = sld [smem:[#allocation4 + $0x2e]]  ;;  %s720_s11 = sadd.s32 %s2685_s20, %s717_s22 }
 0x4a0   :  { %s2688_s17 = sld [smem:[#allocation4 + $0x2f]]  ;;  %s721_s14 = scalar_lea.vmem [#allocation6], %s720_s11  ;;  %v974_v6 = vld [vmem:[#allocation2 + $0x70] sm:$0xff]  ;;  %v972_v7 = vld [vmem:[#allocation2 + $0x60] sm:$0xff]  ;;  %v973_v9 = vld [vmem:[#allocation2 + $0x68] sm:$0xff] }
 0x4a1   :  { %s2690_s29 = sld [smem:[#allocation4 + $0x30]]  ;;  %v722_v3 = vld [vmem:[%s721_s14] ss:$8 sm:$0x7] }
 0x4a2   :  { %s3608_s3 = sld [smem:[#allocation4 + $0x31]]  ;;  %724 = vst.msk [vmem:[#allocation2 + $0x7d] ss:$8 sm:$0x7] %vm3323_vm0, %v722_v3 }
 0x4a3   :  { %s3610_s12 = sld [smem:[#allocation4 + $0x32]] }
 0x4a4   :  { %s3614_s5 = sld [smem:[#allocation4 + $0x33]] }
 0x4a5   :  { %s727_s25 = sshra.s32 %s2686_s18, 3  ;;  %s730_s15 = sand.u32 7, %s2686_s18 }
 0x4a6   :  { %s2687_s4 = smul.u32 24, %s727_s25  ;;  %s740_s19 = sshra.s32 %s2688_s17, 3 }
 0x4a7   :  { %s743_s27 = sand.u32 7, %s2688_s17  ;;  %s2689_s30 = smul.u32 24, %s740_s19 }
 0x4a8   :  { %s733_s16 = sadd.s32 %s2687_s4, %s730_s15  ;;  %s753_s0 = sshra.s32 %s2690_s29, 3 }
 0x4a9   :  { %s746_s10 = sadd.s32 %s2689_s30, %s743_s27  ;;  %s734_s23 = scalar_lea.vmem [#allocation6], %s733_s16 }
 0x4aa   :  { %v735_v4 = vld [vmem:[%s734_s23] ss:$8 sm:$0x7]  ;;  %s756_s26 = sand.u32 7, %s2690_s29  ;;  %s747_s9 = scalar_lea.vmem [#allocation6], %s746_s10 }
 0x4ab   :  { %737 = vst.msk [vmem:[#allocation2 + $0x7e] ss:$8 sm:$0x7] %vm3323_vm0, %v735_v4  ;;  %v748_v5 = vld [vmem:[%s747_s9] ss:$8 sm:$0x7] }
 0x4ac   :  { %750 = vst.msk [vmem:[#allocation2 + $0x7f] ss:$8 sm:$0x7] %vm3323_vm0, %v748_v5  ;;  %s2691_s13 = smul.u32 24, %s753_s0  ;;  %s766_s8 = sshra.s32 %s3608_s3, 3 }
 0x4ad   :  { %s769_s1 = sand.u32 7, %s3608_s3  ;;  %s2693_s6 = smul.u32 24, %s766_s8 }
 0x4ae   :  { %s759_s2 = sadd.s32 %s2691_s13, %s756_s26  ;;  %s779_s7 = sshra.s32 %s3610_s12, 3 }
 0x4af   :  { %s772_s21 = sadd.s32 %s2693_s6, %s769_s1  ;;  %s760_s22 = scalar_lea.vmem [#allocation6], %s759_s2 }
 0x4b0   :  { %v761_v10 = vld [vmem:[%s760_s22] ss:$8 sm:$0x7]  ;;  %s782_s24 = sand.u32 7, %s3610_s12  ;;  %s773_s20 = scalar_lea.vmem [#allocation6], %s772_s21 }
 0x4b1   :  { %763 = vst.msk [vmem:[#allocation2 + $0x90] ss:$8 sm:$0x7] %vm3323_vm0, %v761_v10  ;;  %v774_v12 = vld [vmem:[%s773_s20] ss:$8 sm:$0x7] }
 0x4b2   :  { %776 = vst.msk [vmem:[#allocation2 + $0x91] ss:$8 sm:$0x7] %vm3323_vm0, %v774_v12  ;;  %s2695_s18 = smul.u32 24, %s779_s7  ;;  %s792_s17 = sshra.s32 %s3614_s5, 3 }
 0x4b3   :  { %v975_v15 = vld [vmem:[#allocation2 + $0x78] sm:$0xff]  ;;  %v976_v16 = vld [vmem:[#allocation2 + $0x80] sm:$0xff]  ;;  %s795_s11 = sand.u32 7, %s3614_s5  ;;  %s2697_s29 = smul.u32 24, %s792_s17 }
 0x4b4   :  { %v990_v18 = vpack.c.bf16 %v975_v15, %v972_v7  ;;  %v991_v20 = vpack.c.bf16 %v976_v16, %v973_v9  ;;  %s785_s3 = sadd.s32 %s2695_s18, %s782_s24  ;;  %s2698_s14 = sld [smem:[#allocation4 + $0x34]] }
 0x4b5   :  { %s798_s12 = sadd.s32 %s2697_s29, %s795_s11  ;;  %s786_s25 = scalar_lea.vmem [#allocation6], %s785_s3 }
 0x4b6   :  { %1210 = vmatmul.bf16.gmra.mxu0 %v990_v18  ;;  %v787_v21 = vld [vmem:[%s786_s25] ss:$8 sm:$0x7]  ;;  %s2700_s15 = sld [smem:[#allocation4 + $0x35]]  ;;  %1239 = vmatmul.bf16.gmra.mxu1 %v991_v20  ;;  %s799_s4 = scalar_lea.vmem [#allocation6], %s798_s12 }
 0x4b7   :  { %789 = vst.msk [vmem:[#allocation2 + $0x92] ss:$8 sm:$0x7] %vm3323_vm0, %v787_v21  ;;  %v800_v23 = vld [vmem:[%s799_s4] ss:$8 sm:$0x7] }
 0x4b8   :  { %802 = vst.msk [vmem:[#allocation2 + $0x93] ss:$8 sm:$0x7] %vm3323_vm0, %v800_v23  ;;  %s2702_s5 = sld [smem:[#allocation4 + $0x36]] }
 0x4b9   :  { %s2704_s19 = sld [smem:[#allocation4 + $0x37]] }
 0x4ba   :  { %v1505_v62 = vpop.permute.xlu0 %1504  ;;  %s805_s27 = sshra.s32 %s2698_s14, 3  ;;  %s808_s30 = sand.u32 7, %s2698_s14 }
 0x4bb   :  { %v1507_v0 = vmul.f32 %v1505_v62, %v3426_v14  ;;  %v977_v14 = vld [vmem:[#allocation2 + $0x88] sm:$0xff]  ;;  %s2699_s16 = smul.u32 24, %s805_s27  ;;  %s3634_s0 = sld [smem:[#allocation4 + $0x38]] }
 0x4bc   :  { %v992_v17 = vpack.c.bf16 %v977_v14, %v974_v6  ;;  %s818_s10 = sshra.s32 %s2700_s15, 3  ;;  %s821_s23 = sand.u32 7, %s2700_s15 }
 0x4bd   :  { %v1508_v2 = vpack.c.bf16 %v1507_v0, %v1507_v0  ;;  %s811_s26 = sadd.s32 %s2699_s16, %s808_s30  ;;  %s2701_s9 = smul.u32 24, %s818_s10 }
 0x4be   :  { %1268 = vmatmul.bf16.gmra.mxu2 %v992_v17  ;;  %s831_s13 = sshra.s32 %s2702_s5, 3  ;;  %s812_s8 = scalar_lea.vmem [#allocation6], %s811_s26 }
 0x4bf   :  { %1530 = vrot.lane.b32.xlu2 %v1508_v2, %s3924_s28  ;;  %v813_v26 = vld [vmem:[%s812_s8] ss:$8 sm:$0x7]  ;;  %s824_s1 = sadd.s32 %s2701_s9, %s821_s23  ;;  %s834_s6 = sand.u32 7, %s2702_s5 }
 0x4c0   :  { %815 = vst.msk [vmem:[#allocation2 + $0x94] ss:$8 sm:$0x7] %vm3323_vm0, %v813_v26  ;;  %s2703_s2 = smul.u32 24, %s831_s13  ;;  %s825_s7 = scalar_lea.vmem [#allocation6], %s824_s1 }
 0x4c1   :  { %v826_v22 = vld [vmem:[%s825_s7] ss:$8 sm:$0x7]  ;;  %s844_s21 = sshra.s32 %s2704_s19, 3  ;;  %s847_s22 = sand.u32 7, %s2704_s19 }
 0x4c2   :  { %828 = vst.msk [vmem:[#allocation2 + $0x95] ss:$8 sm:$0x7] %vm3323_vm0, %v826_v22  ;;  %s837_s24 = sadd.s32 %s2703_s2, %s834_s6  ;;  %s2705_s20 = smul.u32 24, %s844_s21 }
 0x4c3   :  { %s857_s18 = sshra.s32 %s3634_s0, 3  ;;  %s838_s17 = scalar_lea.vmem [#allocation6], %s837_s24 }
 0x4c4   :  { %v839_v27 = vld [vmem:[%s838_s17] ss:$8 sm:$0x7]  ;;  %s850_s11 = sadd.s32 %s2705_s20, %s847_s22  ;;  %s860_s29 = sand.u32 7, %s3634_s0 }
 0x4c5   :  { %841 = vst.msk [vmem:[#allocation2 + $0x96] ss:$8 sm:$0x7] %vm3323_vm0, %v839_v27  ;;  %s2707_s3 = smul.u32 24, %s857_s18  ;;  %s851_s14 = scalar_lea.vmem [#allocation6], %s850_s11 }
 0x4c6   :  { %v852_v28 = vld [vmem:[%s851_s14] ss:$8 sm:$0x7]  ;;  %s2708_s12 = sld [smem:[#allocation4 + $0x39]] }
 0x4c7   :  { %854 = vst.msk [vmem:[#allocation2 + $0x97] ss:$8 sm:$0x7] %vm3323_vm0, %v852_v28  ;;  %s863_s25 = sadd.s32 %s2707_s3, %s860_s29  ;;  %s2710_s15 = sld [smem:[#allocation4 + $0x3a]] }
 0x4c8   :  { %s2712_s4 = sld [smem:[#allocation4 + $0x3b]]  ;;  %s864_s5 = scalar_lea.vmem [#allocation6], %s863_s25 }
 0x4c9   :  { %v865_v29 = vld [vmem:[%s864_s5] ss:$8 sm:$0x7]  ;;  %s2714_s19 = sld [smem:[#allocation4 + $0x3c]] }
 0x4ca   :  { %867 = vst.msk [vmem:[#allocation2 + $0xa8] ss:$8 sm:$0x7] %vm3323_vm0, %v865_v29  ;;  %s3648_s27 = sld [smem:[#allocation4 + $0x3d]] }
 0x4cb   :  { %s3650_s30 = sld [smem:[#allocation4 + $0x3e]] }
 0x4cc   :  { %s870_s16 = sshra.s32 %s2708_s12, 3  ;;  %s873_s0 = sand.u32 7, %s2708_s12 }
 0x4cd   :  { %s2709_s10 = smul.u32 24, %s870_s16  ;;  %s883_s23 = sshra.s32 %s2710_s15, 3 }
 0x4ce   :  { %s886_s26 = sand.u32 7, %s2710_s15  ;;  %s2711_s9 = smul.u32 24, %s883_s23  ;;  %v980_v34 = vld [vmem:[#allocation2 + $0xa0] sm:$0xff]  ;;  %v978_v35 = vld [vmem:[#allocation2 + $0x90] sm:$0xff]  ;;  %v979_v36 = vld [vmem:[#allocation2 + $0x98] sm:$0xff] }
 0x4cf   :  { %s876_s13 = sadd.s32 %s2709_s10, %s873_s0  ;;  %s896_s8 = sshra.s32 %s2712_s4, 3 }
 0x4d0   :  { %s889_s1 = sadd.s32 %s2711_s9, %s886_s26  ;;  %s877_s6 = scalar_lea.vmem [#allocation6], %s876_s13 }
 0x4d1   :  { %v878_v30 = vld [vmem:[%s877_s6] ss:$8 sm:$0x7]  ;;  %s899_s2 = sand.u32 7, %s2712_s4  ;;  %s890_s7 = scalar_lea.vmem [#allocation6], %s889_s1 }
 0x4d2   :  { %880 = vst.msk [vmem:[#allocation2 + $0xa9] ss:$8 sm:$0x7] %vm3323_vm0, %v878_v30  ;;  %v891_v31 = vld [vmem:[%s890_s7] ss:$8 sm:$0x7] }
 0x4d3   :  { %893 = vst.msk [vmem:[#allocation2 + $0xaa] ss:$8 sm:$0x7] %vm3323_vm0, %v891_v31  ;;  %s2713_s21 = smul.u32 24, %s896_s8  ;;  %s909_s22 = sshra.s32 %s2714_s19, 3 }
 0x4d4   :  { %s912_s24 = sand.u32 7, %s2714_s19  ;;  %s2715_s20 = smul.u32 24, %s909_s22 }
 0x4d5   :  { %s902_s18 = sadd.s32 %s2713_s21, %s899_s2  ;;  %s922_s17 = sshra.s32 %s3648_s27, 3 }
 0x4d6   :  { %s915_s11 = sadd.s32 %s2715_s20, %s912_s24  ;;  %s903_s29 = scalar_lea.vmem [#allocation6], %s902_s18 }
 0x4d7   :  { %v904_v32 = vld [vmem:[%s903_s29] ss:$8 sm:$0x7]  ;;  %s925_s3 = sand.u32 7, %s3648_s27  ;;  %s916_s14 = scalar_lea.vmem [#allocation6], %s915_s11 }
 0x4d8   :  { %906 = vst.msk [vmem:[#allocation2 + $0xab] ss:$8 sm:$0x7] %vm3323_vm0, %v904_v32  ;;  %v917_v33 = vld [vmem:[%s916_s14] ss:$8 sm:$0x7] }
 0x4d9   :  { %919 = vst.msk [vmem:[#allocation2 + $0xac] ss:$8 sm:$0x7] %vm3323_vm0, %v917_v33  ;;  %s2717_s12 = smul.u32 24, %s922_s17  ;;  %s935_s25 = sshra.s32 %s3650_s30, 3 }
 0x4da   :  { %s938_s15 = sand.u32 7, %s3650_s30  ;;  %s2719_s4 = smul.u32 24, %s935_s25 }
 0x4db   :  { %s928_s5 = sadd.s32 %s2717_s12, %s925_s3  ;;  %s2720_s19 = sld [smem:[#allocation4 + $0x3f]] }
 0x4dc   :  { %s941_s16 = sadd.s32 %s2719_s4, %s938_s15  ;;  %s929_s0 = scalar_lea.vmem [#allocation6], %s928_s5 }
 0x4dd   :  { %v930_v24 = vld [vmem:[%s929_s0] ss:$8 sm:$0x7]  ;;  %s942_s27 = scalar_lea.vmem [#allocation6], %s941_s16  ;;  %s3939_s1 = sld [smem:[#allocation32_spill]] }
 0x4de   :  { %932 = vst.msk [vmem:[#allocation2 + $0xad] ss:$8 sm:$0x7] %vm3323_vm0, %v930_v24  ;;  %v943_v8 = vld [vmem:[%s942_s27] ss:$8 sm:$0x7] }
 0x4df   :  { %945 = vst.msk [vmem:[#allocation2 + $0xae] ss:$8 sm:$0x7] %vm3323_vm0, %v943_v8  ;;  %s3940_s7 = sld [smem:[#allocation33_spill]]  ;;  %s3941_s21 = smov 64  }
 0x4e0   :  { %s3942_s17 = sld [smem:[#allocation34_spill]]  ;;  %s3217_s11 = smov 96  }
 0x4e1   :  { %s948_s10 = sshra.s32 %s2720_s19, 3  ;;  %s951_s23 = sand.u32 7, %s2720_s19 }
 0x4e2   :  { %s2721_s26 = smul.u32 24, %s948_s10  ;;  %s3943_s14 = sld [smem:[#allocation35_spill]] }
 0x4e3   :  { %v3700_v57 = vld [vmem:[%s3939_s1] ss:$0 sm:$0xff]  ;;  %s3944_s15 = sld [smem:[#allocation36_spill]] }
 0x4e4   :  { %s954_s9 = sadd.s32 %s2721_s26, %s951_s23 }
 0x4e5   :  { %s955_s13 = scalar_lea.vmem [#allocation6], %s954_s9  ;;  %v3717_v27 = vld [vmem:[%s3940_s7] ss:$0 sm:$0xff] }
 0x4e6   :  { %v956_v13 = vld [vmem:[%s955_s13] ss:$8 sm:$0x7] }
 0x4e7   :  { %958 = vst.msk [vmem:[#allocation2 + $0xaf] ss:$8 sm:$0x7] %vm3323_vm0, %v956_v13 }
 0x4ee   :  { %v983_v38 = vld [vmem:[#allocation2 + $0xb8] sm:$0xff]  ;;  %v981_v39 = vld [vmem:[#allocation2 + $0xa8] sm:$0xff]  ;;  %v982_v40 = vld [vmem:[#allocation2 + $0xb0] sm:$0xff] }
 0x4ef   :  { %v995_v41 = vpack.c.bf16 %v983_v38, %v980_v34  ;;  %v993_v42 = vpack.c.bf16 %v981_v39, %v978_v35  ;;  %v994_v43 = vpack.c.bf16 %v982_v40, %v979_v36 }
 0x4f1   :  { %1273 = vmatmul.bf16.gmra.mxu2 %v995_v41  ;;  %1215 = vmatmul.bf16.gmra.mxu0 %v993_v42 }
 0x4f2   :  { %1244 = vmatmul.bf16.gmra.mxu1 %v994_v43 }
 0x50b   :  { %v1512_v37 = vpop.permute.xlu1 %1511 }
 0x50c   :  { %2847 = vmatmul.msk.bf16.vlgmr.msra.gmra.mxu3 %vm1307_vm5, %v1512_v37 }
 0x50d   :  { %1721 = vmatpush.bf16.msra.mxu3 %v3671_v44 }
 0x511   :  { %1722 = vmatpush.bf16.msra.mxu3 %v3674_v11 }
 0x517   :  { %v1206_v50 = vpop.f32.mrf.mxu0  ;;  %v1235_v51 = vpop.f32.mrf.mxu1 }
 0x518   :  { %v1207_v14 = vadd.f32 %v3700_v57, %v1206_v50 }
 0x519   :  { %v1531_v45 = vpop.permute.xlu2 %1530 }
 0x51a   :  { %2850 = vmatmul.msk.bf16.vlgmr.msrb.gmra.mxu0 %vm1307_vm5, %v1531_v45  ;;  %v1236_v17 = vadd.f32 %v1235_v51, %v1207_v14 }
 0x51b   :  { %1928 = vmatpush.bf16.msrb.mxu0 %v3682_v47 }
 0x51c   :  { %2848 = vmatmul.msk.bf16.vlgmr.msrb.gmra.mxu3 %vm1307_vm5, %v1531_v45  ;;  %v1264_v52 = vpop.f32.mrf.mxu2 }
 0x51d   :  { %1909 = vmatpush.bf16.msrb.mxu3 %v3678_v46  ;;  %v1265_v20 = vadd.f32 %v1264_v52, %v1236_v17 }
 0x51f   :  { %1929 = vmatpush.bf16.msrb.mxu0 %v3688_v49  ;;  %v3691_v53 = vpop.f32.mrf.mxu0  ;;  %v3693_v54 = vpop.f32.mrf.mxu1 }
 0x521   :  { %1910 = vmatpush.bf16.msrb.mxu3 %v3685_v48 }
 0x524   :  { %v3695_v55 = vpop.f32.mrf.mxu2 }
 0x533   :  { %v1211_v56 = vpop.f32.mrf.mxu0  ;;  %v1240_v59 = vpop.f32.mrf.mxu1 }
 0x534   :  { %v1212_v58 = vadd.f32 %v3700_v57, %v1211_v56 }
 0x536   :  { %v1241_v60 = vadd.f32 %v1240_v59, %v1212_v58 }
 0x53b   :  { %v1213_v63 = vpop.f32.mrf.mxu0  ;;  %v1242_v1 = vpop.f32.mrf.mxu1 }
 0x53c   :  { %v1214_v0 = vadd.f32 %v3700_v57, %v1213_v63 }
 0x53e   :  { %v1243_v2 = vadd.f32 %v1242_v1, %v1214_v0 }
 0x541   :  { %v1269_v61 = vpop.f32.mrf.mxu2 }
 0x542   :  { %v3703_v62 = vadd.f32 %v1269_v61, %v1241_v60 }
 0x549   :  { %v1271_v3 = vpop.f32.mrf.mxu2 }
 0x54a   :  { %v3706_v4 = vadd.f32 %v1271_v3, %v1243_v2 }
 0x56e   :  { %v1216_v5 = vpop.f32.mrf.mxu0 }
 0x56f   :  { %v1217_v6 = vadd.f32 %v3700_v57, %v1216_v5  ;;  %v1245_v7 = vpop.f32.mrf.mxu1 }
 0x571   :  { %v1246_v9 = vadd.f32 %v1245_v7, %v1217_v6 }
 0x574   :  { %v1274_v12 = vpop.f32.mrf.mxu2 }
 0x575   :  { %v3710_v15 = vadd.f32 %v1274_v12, %v1246_v9 }
 0x576   :  { %v3712_v16 = vpop.f32.mrf.mxu0 }
 0x58f   :  { %v1525_v10 = vpop.f32.mrf.mxu3 }
 0x597   :  { %v1527_v18 = vpop.f32.mrf.mxu3  ;;  %v1595_v21 = vpop.f32.mrf.mxu0 }
 0x598   :  { %v1599_v23 = vadd.f32 %v1595_v21, %v1265_v20 }
 0x59a   :  { %2952 = vtanh.f32 %v1599_v23  ;;  %v2851_v33 = vmul.f32 -1.442695, %v1599_v23 }
 0x59f   :  { %v1544_v26 = vpop.f32.mrf.mxu3  ;;  %v1597_v29 = vpop.f32.mrf.mxu0 }
 0x5a0   :  { %v1545_v22 = vadd.f32 %v1544_v26, %v1525_v10  ;;  %v2953_v30 = vpop.eup %2952 }
 0x5a1   :  { %1622 = vrot.lane.b32.xlu0 %v2953_v30, %s3941_s21  ;;  %v1209_v30 = vadd.f32 %v3700_v57, %v3691_v53 }
 0x5a2   :  { %v1548_v28 = vadd.f32 %v3717_v27, %v1545_v22 }
 0x5a4   :  { %2954 = vtanh.f32 %v1548_v28  ;;  %v2849_v24 = vmul.f32 -1.442695, %v1548_v28 }
 0x5a5   :  { %2956 = vpow2.f32 %v2851_v33  ;;  %v1238_v33 = vadd.f32 %v3693_v54, %v1209_v30 }
 0x5a6   :  { %2958 = vpow2.f32 %v2849_v24 }
 0x5a7   :  { %v1546_v31 = vpop.f32.mrf.mxu3  ;;  %v1267_v24 = vadd.f32 %v3695_v55, %v1238_v33 }
 0x5a8   :  { %v3747_v31 = vpop.f32.mrf.mxu1 }
 0x5aa   :  { %v2955_v32 = vpop.eup %2954 }
 0x5ab   :  { %1571 = vrot.lane.b32.xlu1 %v2955_v32, %s3941_s21  ;;  %v2957_v8 = vpop.eup %2956  ;;  %v3749_v32 = vpop.f32.mrf.mxu2 }
 0x5ac   :  { %v1603_v13 = vadd.f32 1.0, %v2957_v8  ;;  %v2959_v34 = vpop.eup %2958 }
 0x5ad   :  { %v1552_v35 = vadd.f32 1.0, %v2959_v34 }
 0x5ae   :  { %2960 = vrcp.f32 %v1603_v13  ;;  %v1615_v45 = vand.u32 2147483648, %v1603_v13  ;;  %vm1609_vm15 = vweird.f32 %v1603_v13  ;;  %v1613_v51 = vand.u32 2147483647, %v1603_v13 }
 0x5af   :  { %2962 = vrcp.f32 %v1552_v35  ;;  %v1564_v59 = vand.u32 2147483648, %v1552_v35  ;;  %vm1558_vm3 = vweird.f32 %v1552_v35  ;;  %v1562_v63 = vand.u32 2147483647, %v1552_v35 }
 0x5b0   :  { %v1616_v56 = vor.u32 1.1754944e-38, %v1615_v45  ;;  %vm1614_vm2 = vcmp.eq.f32.partialorder %v1613_v51, 8.507059e+37 }
 0x5b1   :  { %v1565_v2 = vor.u32 1.1754944e-38, %v1564_v59  ;;  %vm1563_vm6 = vcmp.eq.f32.partialorder %v1562_v63, 8.507059e+37 }
 0x5b4   :  { %v2961_v36 = vpop.eup %2960 }
 0x5b5   :  { %v1605_v37 = vmul.f32 %v2961_v36, %v1603_v13  ;;  %v2963_v38 = vpop.eup %2962  ;;  %vm1610_vm14 = vweird.f32 %v2961_v36 }
 0x5b6   :  { %v1554_v40 = vmul.f32 %v2963_v38, %v1552_v35  ;;  %vm1611_vm0 = vmor %vm1609_vm15, %vm1610_vm14  ;;  %vm1559_vm1 = vweird.f32 %v2963_v38 }
 0x5b7   :  { %v1606_v39 = vsub.f32 1.0, %v1605_v37  ;;  %vm1560_vm4 = vmor %vm1558_vm3, %vm1559_vm1 }
 0x5b8   :  { %v1555_v42 = vsub.f32 1.0, %v1554_v40 }
 0x5b9   :  { %v1607_v41 = vmul.f32 %v2961_v36, %v1606_v39 }
 0x5ba   :  { %v1556_v50 = vmul.f32 %v2963_v38, %v1555_v42 }
 0x5bb   :  { %v1608_v43 = vadd.f32 %v2961_v36, %v1607_v41 }
 0x5bc   :  { %v1557_v58 = vadd.f32 %v2963_v38, %v1556_v50 }
 0x5bd   :  { %v1612_v52 = vsel %vm1611_vm0, %v2961_v36, %v1608_v43 }
 0x5be   :  { %v1617_v61 = vsel %vm1614_vm2, %v1616_v56, %v1612_v52  ;;  %v1561_v1 = vsel %vm1560_vm4, %v2963_v38, %v1557_v58 }
 0x5bf   :  { %v1566_v5 = vsel %vm1563_vm6, %v1565_v2, %v1561_v1  ;;  %v1620_v7 = vmul.f32 %v1617_v61, %v3437_v25 }
 0x5c0   :  { %v1569_v14 = vmul.f32 %v1566_v5, %v3431_v19 }
 0x613   :  { %v1623_v60 = vpop.permute.xlu0 %1622 }
 0x614   :  { %v1625_v0 = vmul.f32 %v1623_v60, %v1617_v61 }
 0x616   :  { %1627 = vrot.lane.b32.xlu2 %v1625_v0, %s3924_s28 }
 0x61d   :  { %v1572_v3 = vpop.permute.xlu1 %1571 }
 0x61e   :  { %v1574_v6 = vmul.f32 %v1572_v3, %v1566_v5 }
 0x620   :  { %1576 = vrot.lane.b32.xlu0 %v1574_v6, %s3924_s28 }
 0x670   :  { %v1628_v9 = vpop.permute.xlu2 %1627 }
 0x671   :  { %v3725_v10 = vadd.f32 %v1628_v9, %v1620_v7 }
 0x673   :  { %2964 = vtanh.f32 %v3725_v10 }
 0x679   :  { %v2965_v12 = vpop.eup %2964 }
 0x67a   :  { %1633 = vrot.lane.b32.xlu1 %v2965_v12, %s3941_s21 }
 0x692   :  { %v1577_v17 = vpop.permute.xlu0 %1576 }
 0x693   :  { %v3730_v18 = vadd.f32 %v1577_v17, %v1569_v14 }
 0x695   :  { %2966 = vtanh.f32 %v3730_v18 }
 0x69b   :  { %v2967_v20 = vpop.eup %2966 }
 0x69c   :  { %1582 = vrot.lane.b32.xlu2 %v2967_v20, %s3941_s21 }
 0x6ec   :  { %v1634_v21 = vpop.permute.xlu1 %1633 }
 0x6ed   :  { %v1636_v25 = vmul.f32 %v1634_v21, %v1617_v61 }
 0x6ef   :  { %v1637_v23 = vpack.c.bf16 %v1636_v25, %v1636_v25 }
 0x6f1   :  { %1659 = vrot.lane.b32.xlu0 %v1637_v23, %s3924_s28 }
 0x6f6   :  { %v1583_v26 = vpop.permute.xlu2 %1582 }
 0x6f7   :  { %v1585_v22 = vmul.f32 %v1583_v26, %v1566_v5 }
 0x6f9   :  { %v1638_v28 = vpack.c.bf16 %v1585_v22, %v1585_v22 }
 0x6fb   :  { %1640 = vrot.lane.b32.xlu1 %v1638_v28, %s3924_s28 }
 0x763   :  { %v1660_v29 = vpop.permute.xlu0 %1659 }
 0x764   :  { %2853 = vmatmul.msk.bf16.vlgmr.msrb.gmra.mxu2 %vm1307_vm5, %v1660_v29  ;;  %2855 = vmatmul.msk.bf16.vlgmr.msra.gmra.mxu3 %vm1307_vm5, %v1660_v29 }
 0x765   :  { %2057 = vmatpush.bf16.msra.mxu3 %v3682_v47  ;;  %2038 = vmatpush.bf16.msrb.mxu2 %v3678_v46 }
 0x769   :  { %2058 = vmatpush.bf16.msra.mxu3 %v3688_v49  ;;  %2039 = vmatpush.bf16.msrb.mxu2 %v3685_v48 }
 0x76d   :  { %v1641_v19 = vpop.permute.xlu1 %1640 }
 0x76e   :  { %2852 = vmatmul.msk.bf16.vlgmr.msrb.gmra.mxu1 %vm1307_vm5, %v1641_v19 }
 0x76f   :  { %1979 = vmatpush.bf16.msrb.mxu1 %v3671_v44 }
 0x773   :  { %1980 = vmatpush.bf16.msrb.mxu1 %v3674_v11 }
 0x7e7   :  { %v1673_v13 = vpop.f32.mrf.mxu2  ;;  %v1724_v34 = vpop.f32.mrf.mxu3 }
 0x7e8   :  { %v1728_v35 = vadd.f32 %v1724_v34, %v1267_v24 }
 0x7ea   :  { %2968 = vtanh.f32 %v1728_v35  ;;  %v2856_v43 = vmul.f32 -1.442695, %v1728_v35 }
 0x7eb   :  { %v1654_v8 = vpop.f32.mrf.mxu1 }
 0x7ec   :  { %v1674_v36 = vadd.f32 %v1673_v13, %v1654_v8 }
 0x7ee   :  { %v1677_v37 = vadd.f32 %v3717_v27, %v1674_v36 }
 0x7ef   :  { %v1675_v39 = vpop.f32.mrf.mxu2  ;;  %v1726_v53 = vpop.f32.mrf.mxu3 }
 0x7f0   :  { %2970 = vtanh.f32 %v1677_v37  ;;  %v2969_v40 = vpop.eup %2968  ;;  %v2854_v54 = vmul.f32 -1.442695, %v1677_v37 }
 0x7f1   :  { %1751 = vrot.lane.b32.xlu0 %v2969_v40, %s3941_s21 }
 0x7f2   :  { %2972 = vpow2.f32 %v2854_v54 }
 0x7f3   :  { %v1656_v38 = vpop.f32.mrf.mxu1 }
 0x7f6   :  { %v2971_v41 = vpop.eup %2970 }
 0x7f7   :  { %1700 = vrot.lane.b32.xlu2 %v2971_v41, %s3941_s21 }
 0x7f8   :  { %v2973_v55 = vpop.eup %2972 }
 0x7f9   :  { %v1681_v42 = vadd.f32 1.0, %v2973_v55 }
 0x7fb   :  { %2974 = vrcp.f32 %v1681_v42  ;;  %v1693_v60 = vand.u32 2147483648, %v1681_v42  ;;  %vm1687_vm8 = vweird.f32 %v1681_v42  ;;  %v1691_v61 = vand.u32 2147483647, %v1681_v42 }
 0x7fc   :  { %2976 = vpow2.f32 %v2856_v43 }
 0x7fd   :  { %v1694_v0 = vor.u32 1.1754944e-38, %v1693_v60  ;;  %vm1692_vm10 = vcmp.eq.f32.partialorder %v1691_v61, 8.507059e+37 }
 0x801   :  { %v2975_v45 = vpop.eup %2974 }
 0x802   :  { %v1683_v50 = vmul.f32 %v2975_v45, %v1681_v42  ;;  %v2977_v52 = vpop.eup %2976  ;;  %vm1688_vm7 = vweird.f32 %v2975_v45 }
 0x803   :  { %v1732_v56 = vadd.f32 1.0, %v2977_v52  ;;  %vm1689_vm9 = vmor %vm1687_vm8, %vm1688_vm7 }
 0x804   :  { %v1684_v51 = vsub.f32 1.0, %v1683_v50 }
 0x805   :  { %2978 = vrcp.f32 %v1732_v56  ;;  %v1744_v14 = vand.u32 2147483648, %v1732_v56  ;;  %vm1738_vm12 = vweird.f32 %v1732_v56  ;;  %v1742_v17 = vand.u32 2147483647, %v1732_v56 }
 0x806   :  { %v1685_v58 = vmul.f32 %v2975_v45, %v1684_v51 }
 0x807   :  { %v1745_v21 = vor.u32 1.1754944e-38, %v1744_v14  ;;  %vm1743_vm14 = vcmp.eq.f32.partialorder %v1742_v17, 8.507059e+37 }
 0x808   :  { %v1686_v59 = vadd.f32 %v2975_v45, %v1685_v58 }
 0x80a   :  { %v1690_v63 = vsel %vm1689_vm9, %v2975_v45, %v1686_v59 }
 0x80b   :  { %v2979_v1 = vpop.eup %2978  ;;  %v1695_v3 = vsel %vm1692_vm10, %v1694_v0, %v1690_v63 }
 0x80c   :  { %v1734_v6 = vmul.f32 %v2979_v1, %v1732_v56  ;;  %vm1739_vm11 = vweird.f32 %v2979_v1  ;;  %v1698_v19 = vmul.f32 %v1695_v3, %v3730_v18 }
 0x80d   :  { %vm1740_vm13 = vmor %vm1738_vm12, %vm1739_vm11 }
 0x80e   :  { %v1735_v7 = vsub.f32 1.0, %v1734_v6 }
 0x810   :  { %v1736_v9 = vmul.f32 %v2979_v1, %v1735_v7 }
 0x812   :  { %v1737_v12 = vadd.f32 %v2979_v1, %v1736_v9 }
 0x814   :  { %v1741_v20 = vsel %vm1740_vm13, %v2979_v1, %v1737_v12 }
 0x815   :  { %v1746_v23 = vsel %vm1743_vm14, %v1745_v21, %v1741_v20 }
 0x816   :  { %v1749_v22 = vmul.f32 %v1746_v23, %v3725_v10 }
 0x851   :  { %v1701_v2 = vpop.permute.xlu2 %1700 }
 0x852   :  { %v1703_v5 = vmul.f32 %v1701_v2, %v1695_v3 }
 0x854   :  { %1705 = vrot.lane.b32.xlu1 %v1703_v5, %s3924_s28 }
 0x863   :  { %v1752_v25 = vpop.permute.xlu0 %1751 }
 0x864   :  { %v1754_v26 = vmul.f32 %v1752_v25, %v1746_v23 }
 0x866   :  { %1756 = vrot.lane.b32.xlu2 %v1754_v26, %s3924_s28 }
 0x8c0   :  { %v1757_v28 = vpop.permute.xlu2 %1756 }
 0x8c1   :  { %v3759_v29 = vadd.f32 %v1757_v28, %v1749_v22 }
 0x8c3   :  { %2980 = vtanh.f32 %v3759_v29 }
 0x8c6   :  { %v1706_v30 = vpop.permute.xlu1 %1705 }
 0x8c7   :  { %v3763_v33 = vadd.f32 %v1706_v30, %v1698_v19 }
 0x8c9   :  { %2982 = vtanh.f32 %v3763_v33  ;;  %v2981_v24 = vpop.eup %2980 }
 0x8ca   :  { %1762 = vrot.lane.b32.xlu1 %v2981_v24, %s3941_s21 }
 0x8cf   :  { %v2983_v8 = vpop.eup %2982 }
 0x8d0   :  { %1711 = vrot.lane.b32.xlu0 %v2983_v8, %s3941_s21 }
 0x93c   :  { %v1763_v13 = vpop.permute.xlu1 %1762 }
 0x93d   :  { %v1765_v10 = vmul.f32 %v1763_v13, %v1746_v23 }
 0x93f   :  { %v1766_v34 = vpack.c.bf16 %v1765_v10, %v1765_v10 }
 0x941   :  { %1788 = vrot.lane.b32.xlu0 %v1766_v34, %s3924_s28 }
 0x942   :  { %v1712_v35 = vpop.permute.xlu0 %1711 }
 0x943   :  { %v1714_v36 = vmul.f32 %v1712_v35, %v1695_v3 }
 0x945   :  { %v1767_v18 = vpack.c.bf16 %v1714_v36, %v1714_v36 }
 0x947   :  { %1769 = vrot.lane.b32.xlu2 %v1767_v18, %s3924_s28 }
 0x9a1   :  { %v1770_v37 = vpop.permute.xlu2 %1769 }
 0x9a2   :  { %2857 = vmatmul.msk.bf16.vlgmr.msra.gmra.mxu0 %vm1307_vm5, %v1770_v37 }
 0x9a3   :  { %2108 = vmatpush.bf16.msra.mxu0 %v3671_v44 }
 0x9a7   :  { %2109 = vmatpush.bf16.msra.mxu0 %v3674_v11 }
 0x9b3   :  { %v1789_v38 = vpop.permute.xlu0 %1788 }
 0x9b4   :  { %2858 = vmatmul.msk.bf16.vlgmr.msra.gmra.mxu1 %vm1307_vm5, %v1789_v38  ;;  %2860 = vmatmul.msk.bf16.vlgmr.msra.gmra.mxu2 %vm1307_vm5, %v1789_v38 }
 0x9b5   :  { %2186 = vmatpush.bf16.msra.mxu2 %v3682_v47  ;;  %2167 = vmatpush.bf16.msra.mxu1 %v3678_v46 }
 0x9b9   :  { %2187 = vmatpush.bf16.msra.mxu2 %v3688_v49  ;;  %2168 = vmatpush.bf16.msra.mxu1 %v3685_v48 }
 0xa1f   :  { %v1783_v39 = vpop.f32.mrf.mxu0 }
 0xa27   :  { %v1785_v53 = vpop.f32.mrf.mxu0 }
 0xa31   :  { %v1802_v40 = vpop.f32.mrf.mxu1 }
 0xa32   :  { %v1803_v41 = vadd.f32 %v1802_v40, %v1783_v39 }
 0xa34   :  { %v1806_v54 = vadd.f32 %v3717_v27, %v1803_v41 }
 0xa36   :  { %2984 = vtanh.f32 %v1806_v54  ;;  %v2859_v59 = vmul.f32 -1.442695, %v1806_v54 }
 0xa37   :  { %v1853_v55 = vpop.f32.mrf.mxu2 }
 0xa38   :  { %v1857_v42 = vadd.f32 %v1853_v55, %v3703_v62 }
 0xa39   :  { %v1804_v43 = vpop.f32.mrf.mxu1 }
 0xa3a   :  { %2986 = vtanh.f32 %v1857_v42  ;;  %v2861_v52 = vmul.f32 -1.442695, %v1857_v42 }
 0xa3c   :  { %v2985_v45 = vpop.eup %2984  ;;  %2988 = vpow2.f32 %v2861_v52 }
 0xa3d   :  { %1829 = vrot.lane.b32.xlu1 %v2985_v45, %s3941_s21 }
 0xa3f   :  { %v1855_v50 = vpop.f32.mrf.mxu2 }
 0xa40   :  { %v2987_v51 = vpop.eup %2986 }
 0xa41   :  { %1880 = vrot.lane.b32.xlu2 %v2987_v51, %s3941_s21 }
 0xa42   :  { %v2989_v56 = vpop.eup %2988 }
 0xa43   :  { %v1861_v58 = vadd.f32 1.0, %v2989_v56 }
 0xa45   :  { %2990 = vrcp.f32 %v1861_v58  ;;  %v1873_v3 = vand.u32 2147483648, %v1861_v58  ;;  %vm1867_vm0 = vweird.f32 %v1861_v58  ;;  %v1871_v5 = vand.u32 2147483647, %v1861_v58 }
 0xa46   :  { %2992 = vpow2.f32 %v2859_v59 }
 0xa47   :  { %v1874_v9 = vor.u32 1.1754944e-38, %v1873_v3  ;;  %vm1872_vm2 = vcmp.eq.f32.partialorder %v1871_v5, 8.507059e+37 }
 0xa4b   :  { %v2991_v60 = vpop.eup %2990 }
 0xa4c   :  { %v1863_v61 = vmul.f32 %v2991_v60, %v1861_v58  ;;  %v2993_v63 = vpop.eup %2992  ;;  %vm1868_vm15 = vweird.f32 %v2991_v60 }
 0xa4d   :  { %v1810_v0 = vadd.f32 1.0, %v2993_v63  ;;  %vm1869_vm1 = vmor %vm1867_vm0, %vm1868_vm15 }
 0xa4e   :  { %v1864_v62 = vsub.f32 1.0, %v1863_v61 }
 0xa4f   :  { %2994 = vrcp.f32 %v1810_v0  ;;  %v1822_v26 = vand.u32 2147483648, %v1810_v0  ;;  %vm1816_vm4 = vweird.f32 %v1810_v0  ;;  %v1820_v22 = vand.u32 2147483647, %v1810_v0 }
 0xa50   :  { %v1865_v1 = vmul.f32 %v2991_v60, %v1864_v62 }
 0xa51   :  { %v1823_v19 = vor.u32 1.1754944e-38, %v1822_v26  ;;  %vm1821_vm7 = vcmp.eq.f32.partialorder %v1820_v22, 8.507059e+37 }
 0xa52   :  { %v1866_v2 = vadd.f32 %v2991_v60, %v1865_v1 }
 0xa54   :  { %v1870_v6 = vsel %vm1869_vm1, %v2991_v60, %v1866_v2 }
 0xa55   :  { %v2995_v7 = vpop.eup %2994  ;;  %v1875_v14 = vsel %vm1872_vm2, %v1874_v9, %v1870_v6 }
 0xa56   :  { %v1812_v20 = vmul.f32 %v2995_v7, %v1810_v0  ;;  %vm1817_vm3 = vweird.f32 %v2995_v7  ;;  %v1878_v13 = vmul.f32 %v1875_v14, %v3759_v29 }
 0xa57   :  { %vm1818_vm6 = vmor %vm1816_vm4, %vm1817_vm3 }
 0xa58   :  { %v1813_v21 = vsub.f32 1.0, %v1812_v20 }
 0xa5a   :  { %v1814_v25 = vmul.f32 %v2995_v7, %v1813_v21 }
 0xa5c   :  { %v1815_v23 = vadd.f32 %v2995_v7, %v1814_v25 }
 0xa5e   :  { %v1819_v28 = vsel %vm1818_vm6, %v2995_v7, %v1815_v23 }
 0xa5f   :  { %v1824_v24 = vsel %vm1821_vm7, %v1823_v19, %v1819_v28 }
 0xa60   :  { %v1827_v36 = vmul.f32 %v1824_v24, %v3763_v33 }
 0xa9b   :  { %v1881_v12 = vpop.permute.xlu2 %1880 }
 0xa9c   :  { %v1883_v17 = vmul.f32 %v1881_v12, %v1875_v14 }
 0xa9e   :  { %1885 = vrot.lane.b32.xlu1 %v1883_v17, %s3924_s28 }
 0xaaf   :  { %v1830_v30 = vpop.permute.xlu1 %1829 }
 0xab0   :  { %v1832_v8 = vmul.f32 %v1830_v30, %v1824_v24 }
 0xab2   :  { %1834 = vrot.lane.b32.xlu0 %v1832_v8, %s3924_s28 }
 0xb10   :  { %v1886_v10 = vpop.permute.xlu1 %1885 }
 0xb11   :  { %v3786_v34 = vadd.f32 %v1886_v10, %v1878_v13 }
 0xb13   :  { %2996 = vtanh.f32 %v3786_v34 }
 0xb19   :  { %v2997_v35 = vpop.eup %2996 }
 0xb1a   :  { %1891 = vrot.lane.b32.xlu0 %v2997_v35, %s3941_s21 }
 0xb24   :  { %v1835_v18 = vpop.permute.xlu0 %1834 }
 0xb25   :  { %v3791_v37 = vadd.f32 %v1835_v18, %v1827_v36 }
 0xb27   :  { %2998 = vtanh.f32 %v3791_v37 }
 0xb2d   :  { %v2999_v38 = vpop.eup %2998 }
 0xb2e   :  { %1840 = vrot.lane.b32.xlu2 %v2999_v38, %s3941_s21 }
 0xb88   :  { %v1841_v39 = vpop.permute.xlu2 %1840 }
 0xb89   :  { %v1843_v29 = vmul.f32 %v1841_v39, %v1824_v24 }
 0xb8b   :  { %v1896_v53 = vpack.c.bf16 %v1843_v29, %v1843_v29 }
 0xb8c   :  { %v1892_v40 = vpop.permute.xlu0 %1891 }
 0xb8d   :  { %v1894_v41 = vmul.f32 %v1892_v40, %v1875_v14  ;;  %1898 = vrot.lane.b32.xlu1 %v1896_v53, %s3924_s28 }
 0xb8f   :  { %v1895_v54 = vpack.c.bf16 %v1894_v41, %v1894_v41 }
 0xb91   :  { %1917 = vrot.lane.b32.xlu2 %v1895_v54, %s3924_s28 }
 0xbeb   :  { %v1918_v55 = vpop.permute.xlu2 %1917 }
 0xbec   :  { %2863 = vmatmul.msk.bf16.vlgmr.msrb.gmra.mxu0 %vm1307_vm5, %v1918_v55  ;;  %2865 = vmatmul.msk.bf16.vlgmr.msrb.gmra.mxu1 %vm1307_vm5, %v1918_v55 }
 0xbed   :  { %2315 = vmatpush.bf16.msrb.mxu1 %v3682_v47  ;;  %2296 = vmatpush.bf16.msrb.mxu0 %v3678_v46 }
 0xbf1   :  { %2316 = vmatpush.bf16.msrb.mxu1 %v3688_v49  ;;  %2297 = vmatpush.bf16.msrb.mxu0 %v3685_v48 }
 0xbff   :  { %v1899_v33 = vpop.permute.xlu1 %1898 }
 0xc00   :  { %2862 = vmatmul.msk.bf16.vlgmr.msrb.gmra.mxu3 %vm1307_vm5, %v1899_v33 }
 0xc01   :  { %2237 = vmatpush.bf16.msrb.mxu3 %v3671_v44 }
 0xc05   :  { %2238 = vmatpush.bf16.msrb.mxu3 %v3674_v11 }
 0xc69   :  { %v1931_v42 = vpop.f32.mrf.mxu0  ;;  %v1982_v43 = vpop.f32.mrf.mxu1 }
 0xc6a   :  { %v1986_v45 = vadd.f32 %v1982_v43, %v3706_v4 }
 0xc6c   :  { %3000 = vtanh.f32 %v1986_v45  ;;  %v2866_v44 = vmul.f32 -1.442695, %v1986_v45 }
 0xc71   :  { %v1933_v50 = vpop.f32.mrf.mxu0  ;;  %v1984_v47 = vpop.f32.mrf.mxu1 }
 0xc72   :  { %v3001_v51 = vpop.eup %3000 }
 0xc73   :  { %2009 = vrot.lane.b32.xlu1 %v3001_v51, %s3941_s21 }
 0xc83   :  { %v1912_v46 = vpop.f32.mrf.mxu3 }
 0xc84   :  { %v1932_v49 = vadd.f32 %v1931_v42, %v1912_v46 }
 0xc86   :  { %v1935_v48 = vadd.f32 %v3717_v27, %v1932_v49 }
 0xc88   :  { %3002 = vtanh.f32 %v1935_v48  ;;  %v2864_v60 = vmul.f32 -1.442695, %v1935_v48 }
 0xc89   :  { %3004 = vpow2.f32 %v2866_v44 }
 0xc8b   :  { %v1914_v52 = vpop.f32.mrf.mxu3 }
 0xc8e   :  { %v3003_v56 = vpop.eup %3002 }
 0xc8f   :  { %1958 = vrot.lane.b32.xlu0 %v3003_v56, %s3941_s21  ;;  %v3005_v11 = vpop.eup %3004 }
 0xc90   :  { %v1990_v58 = vadd.f32 1.0, %v3005_v11 }
 0xc92   :  { %3006 = vrcp.f32 %v1990_v58  ;;  %v2002_v1 = vand.u32 2147483648, %v1990_v58  ;;  %vm1996_vm9 = vweird.f32 %v1990_v58  ;;  %v2000_v2 = vand.u32 2147483647, %v1990_v58 }
 0xc93   :  { %3008 = vpow2.f32 %v2864_v60 }
 0xc94   :  { %v2003_v6 = vor.u32 1.1754944e-38, %v2002_v1  ;;  %vm2001_vm11 = vcmp.eq.f32.partialorder %v2000_v2, 8.507059e+37 }
 0xc98   :  { %v3007_v4 = vpop.eup %3006 }
 0xc99   :  { %v1992_v59 = vmul.f32 %v3007_v4, %v1990_v58  ;;  %v3009_v62 = vpop.eup %3008  ;;  %vm1997_vm8 = vweird.f32 %v3007_v4 }
 0xc9a   :  { %v1939_v3 = vadd.f32 1.0, %v3009_v62  ;;  %vm1998_vm10 = vmor %vm1996_vm9, %vm1997_vm8 }
 0xc9b   :  { %v1993_v61 = vsub.f32 1.0, %v1992_v59 }
 0xc9c   :  { %3010 = vrcp.f32 %v1939_v3  ;;  %v1951_v23 = vand.u32 2147483648, %v1939_v3  ;;  %vm1945_vm13 = vweird.f32 %v1939_v3  ;;  %v1949_v26 = vand.u32 2147483647, %v1939_v3 }
 0xc9d   :  { %v1994_v63 = vmul.f32 %v3007_v4, %v1993_v61 }
 0xc9e   :  { %v1952_v28 = vor.u32 1.1754944e-38, %v1951_v23  ;;  %vm1950_vm15 = vcmp.eq.f32.partialorder %v1949_v26, 8.507059e+37 }
 0xc9f   :  { %v1995_v0 = vadd.f32 %v3007_v4, %v1994_v63 }
 0xca1   :  { %v1999_v5 = vsel %vm1998_vm10, %v3007_v4, %v1995_v0 }
 0xca2   :  { %v2004_v9 = vsel %vm2001_vm11, %v2003_v6, %v1999_v5  ;;  %v3011_v14 = vpop.eup %3010 }
 0xca3   :  { %v1941_v17 = vmul.f32 %v3011_v14, %v1939_v3  ;;  %vm1946_vm12 = vweird.f32 %v3011_v14  ;;  %v2007_v8 = vmul.f32 %v2004_v9, %v3786_v34 }
 0xca4   :  { %vm1947_vm14 = vmor %vm1945_vm13, %vm1946_vm12 }
 0xca5   :  { %v1942_v20 = vsub.f32 1.0, %v1941_v17 }
 0xca7   :  { %v1943_v21 = vmul.f32 %v3011_v14, %v1942_v20 }
 0xca9   :  { %v1944_v25 = vadd.f32 %v3011_v14, %v1943_v21 }
 0xcab   :  { %v1948_v22 = vsel %vm1947_vm14, %v3011_v14, %v1944_v25 }
 0xcac   :  { %v1953_v30 = vsel %vm1950_vm15, %v1952_v28, %v1948_v22 }
 0xcad   :  { %v1956_v35 = vmul.f32 %v1953_v30, %v3791_v37 }
 0xce5   :  { %v2010_v7 = vpop.permute.xlu1 %2009 }
 0xce6   :  { %v2012_v12 = vmul.f32 %v2010_v7, %v2004_v9 }
 0xce8   :  { %2014 = vrot.lane.b32.xlu0 %v2012_v12, %s3924_s28 }
 0xd01   :  { %v1959_v19 = vpop.permute.xlu0 %1958 }
 0xd02   :  { %v1961_v24 = vmul.f32 %v1959_v19, %v1953_v30 }
 0xd04   :  { %1963 = vrot.lane.b32.xlu2 %v1961_v24, %s3924_s28 }
 0xd5a   :  { %v2015_v13 = vpop.permute.xlu0 %2014 }
 0xd5b   :  { %v3813_v10 = vadd.f32 %v2015_v13, %v2007_v8 }
 0xd5d   :  { %3012 = vtanh.f32 %v3813_v10 }
 0xd5e   :  { %v1964_v36 = vpop.permute.xlu2 %1963 }
 0xd5f   :  { %v3817_v18 = vadd.f32 %v1964_v36, %v1956_v35 }
 0xd61   :  { %3014 = vtanh.f32 %v3817_v18 }
 0xd63   :  { %v3013_v38 = vpop.eup %3012 }
 0xd64   :  { %2020 = vrot.lane.b32.xlu2 %v3013_v38, %s3941_s21 }
 0xd67   :  { %v3015_v39 = vpop.eup %3014 }
 0xd68   :  { %1969 = vrot.lane.b32.xlu1 %v3015_v39, %s3941_s21 }
 0xdbe   :  { %v2021_v29 = vpop.permute.xlu2 %2020 }
 0xdbf   :  { %v2023_v34 = vmul.f32 %v2021_v29, %v2004_v9 }
 0xdc1   :  { %v2024_v53 = vpack.c.bf16 %v2023_v34, %v2023_v34 }
 0xdc3   :  { %2046 = vrot.lane.b32.xlu1 %v2024_v53, %s3924_s28 }
 0xdda   :  { %v1970_v40 = vpop.permute.xlu1 %1969 }
 0xddb   :  { %v1972_v41 = vmul.f32 %v1970_v40, %v1953_v30 }
 0xddd   :  { %v2025_v54 = vpack.c.bf16 %v1972_v41, %v1972_v41 }
 0xddf   :  { %2027 = vrot.lane.b32.xlu0 %v2025_v54, %s3924_s28 }
 0xe35   :  { %v2047_v37 = vpop.permute.xlu1 %2046 }
 0xe36   :  { %2868 = vmatmul.msk.bf16.vlgmr.msra.gmra.mxu3 %vm1307_vm5, %v2047_v37  ;;  %2870 = vmatmul.msk.bf16.vlgmr.msra.gmra.mxu0 %vm1307_vm5, %v2047_v37  ;;  %v1219_v37 = vadd.f32 %v3700_v57, %v3712_v16 }
 0xe51   :  { %v2028_v55 = vpop.permute.xlu0 %2027 }
 0xe52   :  { %2867 = vmatmul.msk.bf16.vlgmr.msrb.gmra.mxu2 %vm1307_vm5, %v2028_v55  ;;  %v1248_v55 = vadd.f32 %v3747_v31, %v1219_v37  ;;  %v3064_v37 = vld [vmem:[%s3940_s7] ss:$0 sm:$0xff] }
 0xeb3   :  { %v2111_v33 = vpop.f32.mrf.mxu0 }
 0xeb4   :  { %v2115_v42 = vadd.f32 %v2111_v33, %v3710_v15  ;;  %v1277_v33 = vadd.f32 %v3749_v32, %v1248_v55 }
 0xeb6   :  { %3016 = vtanh.f32 %v2115_v42  ;;  %v2871_v56 = vmul.f32 -1.442695, %v2115_v42 }
 0xeb9   :  { %v2060_v43 = vpop.f32.mrf.mxu3 }
 0xebb   :  { %v2113_v45 = vpop.f32.mrf.mxu0 }
 0xebc   :  { %v3017_v50 = vpop.eup %3016 }
 0xebd   :  { %2138 = vrot.lane.b32.xlu2 %v3017_v50, %s3941_s21 }
 0xec1   :  { %v2062_v47 = vpop.f32.mrf.mxu3 }
 0xed5   :  { %v2041_v51 = vpop.f32.mrf.mxu2 }
 0xed6   :  { %v2061_v46 = vadd.f32 %v2060_v43, %v2041_v51 }
 0xed8   :  { %v2064_v49 = vadd.f32 %v3717_v27, %v2061_v46 }
 0xeda   :  { %3018 = vtanh.f32 %v2064_v49  ;;  %v2869_v5 = vmul.f32 -1.442695, %v2064_v49 }
 0xedb   :  { %3020 = vpow2.f32 %v2871_v56 }
 0xedd   :  { %v2043_v48 = vpop.f32.mrf.mxu2 }
 0xee0   :  { %v3019_v52 = vpop.eup %3018 }
 0xee1   :  { %2087 = vrot.lane.b32.xlu0 %v3019_v52, %s3941_s21  ;;  %v3021_v44 = vpop.eup %3020 }
 0xee2   :  { %v2119_v15 = vadd.f32 1.0, %v3021_v44 }
 0xee4   :  { %3022 = vrcp.f32 %v2119_v15  ;;  %v2131_v61 = vand.u32 2147483648, %v2119_v15  ;;  %vm2125_vm1 = vweird.f32 %v2119_v15  ;;  %v2129_v63 = vand.u32 2147483647, %v2119_v15 }
 0xee5   :  { %3024 = vpow2.f32 %v2869_v5 }
 0xee6   :  { %v2132_v0 = vor.u32 1.1754944e-38, %v2131_v61  ;;  %vm2130_vm3 = vcmp.eq.f32.partialorder %v2129_v63, 8.507059e+37 }
 0xeea   :  { %v3023_v11 = vpop.eup %3022 }
 0xeeb   :  { %v2121_v58 = vmul.f32 %v3023_v11, %v2119_v15  ;;  %vm2126_vm0 = vweird.f32 %v3023_v11  ;;  %v3025_v6 = vpop.eup %3024 }
 0xeec   :  { %vm2127_vm2 = vmor %vm2125_vm1, %vm2126_vm0  ;;  %v2068_v7 = vadd.f32 1.0, %v3025_v6 }
 0xeed   :  { %v2122_v4 = vsub.f32 1.0, %v2121_v58 }
 0xeee   :  { %3026 = vrcp.f32 %v2068_v7  ;;  %v2080_v21 = vand.u32 2147483648, %v2068_v7  ;;  %vm2074_vm6 = vweird.f32 %v2068_v7  ;;  %v2078_v25 = vand.u32 2147483647, %v2068_v7 }
 0xeef   :  { %v2123_v59 = vmul.f32 %v3023_v11, %v2122_v4 }
 0xef0   :  { %v2081_v26 = vor.u32 1.1754944e-38, %v2080_v21  ;;  %vm2079_vm8 = vcmp.eq.f32.partialorder %v2078_v25, 8.507059e+37 }
 0xef1   :  { %v2124_v60 = vadd.f32 %v3023_v11, %v2123_v59 }
 0xef3   :  { %v2128_v62 = vsel %vm2127_vm2, %v3023_v11, %v2124_v60 }
 0xef4   :  { %v2133_v2 = vsel %vm2130_vm3, %v2132_v0, %v2128_v62  ;;  %v3027_v9 = vpop.eup %3026 }
 0xef5   :  { %v2070_v12 = vmul.f32 %v3027_v9, %v2068_v7  ;;  %vm2075_vm4 = vweird.f32 %v3027_v9  ;;  %v2136_v30 = vmul.f32 %v2133_v2, %v3813_v10 }
 0xef6   :  { %vm2076_vm7 = vmor %vm2074_vm6, %vm2075_vm4  ;;  %vm2394_vm6 = vcmask 7168  }
 0xef7   :  { %v2071_v14 = vsub.f32 1.0, %v2070_v12 }
 0xef9   :  { %v2072_v17 = vmul.f32 %v3027_v9, %v2071_v14 }
 0xefb   :  { %v2073_v20 = vadd.f32 %v3027_v9, %v2072_v17 }
 0xefd   :  { %v2077_v23 = vsel %vm2076_vm7, %v3027_v9, %v2073_v20 }
 0xefe   :  { %v2082_v28 = vsel %vm2079_vm8, %v2081_v26, %v2077_v23 }
 0xeff   :  { %v2085_v35 = vmul.f32 %v2082_v28, %v3817_v18 }
 0xf17   :  { %v2139_v1 = vpop.permute.xlu2 %2138 }
 0xf18   :  { %v2141_v3 = vmul.f32 %v2139_v1, %v2133_v2 }
 0xf1a   :  { %2143 = vrot.lane.b32.xlu1 %v2141_v3, %s3924_s28 }
 0xf53   :  { %v2088_v22 = vpop.permute.xlu0 %2087 }
 0xf54   :  { %v2090_v19 = vmul.f32 %v2088_v22, %v2082_v28 }
 0xf56   :  { %2092 = vrot.lane.b32.xlu2 %v2090_v19, %s3924_s28 }
 0xf8c   :  { %v2144_v24 = vpop.permute.xlu1 %2143 }
 0xf8d   :  { %v3834_v8 = vadd.f32 %v2144_v24, %v2136_v30 }
 0xf8f   :  { %3028 = vtanh.f32 %v3834_v8 }
 0xf95   :  { %v3029_v13 = vpop.eup %3028 }
 0xf96   :  { %2149 = vrot.lane.b32.xlu0 %v3029_v13, %s3941_s21 }
 0xfb0   :  { %v2093_v36 = vpop.permute.xlu2 %2092 }
 0xfb1   :  { %v3839_v38 = vadd.f32 %v2093_v36, %v2085_v35 }
 0xfb3   :  { %3030 = vtanh.f32 %v3839_v38 }
 0xfb9   :  { %v3031_v39 = vpop.eup %3030 }
 0xfba   :  { %2098 = vrot.lane.b32.xlu1 %v3031_v39, %s3941_s21 }
0x1008   :  { %v2150_v29 = vpop.permute.xlu0 %2149 }
0x1009   :  { %v2152_v10 = vmul.f32 %v2150_v29, %v2133_v2 }
0x100b   :  { %v2153_v34 = vpack.c.bf16 %v2152_v10, %v2152_v10 }
0x100d   :  { %2175 = vrot.lane.b32.xlu2 %v2153_v34, %s3924_s28 }
0x102c   :  { %v2099_v53 = vpop.permute.xlu1 %2098 }
0x102d   :  { %v2101_v40 = vmul.f32 %v2099_v53, %v2082_v28 }
0x102f   :  { %v2154_v41 = vpack.c.bf16 %v2101_v40, %v2101_v40 }
0x1031   :  { %2156 = vrot.lane.b32.xlu0 %v2154_v41, %s3924_s28 }
0x1067   :  { %v2176_v54 = vpop.permute.xlu2 %2175 }
0x1068   :  { %2873 = vmatmul.msk.bf16.vlgmr.msra.gmra.mxu2 %vm1307_vm5, %v2176_v54  ;;  %2875 = vmatmul.msk.bf16.vlgmr.msrb.gmra.mxu3 %vm1307_vm5, %v2176_v54 }
0x10a3   :  { %v2157_v18 = vpop.permute.xlu0 %2156 }
0x10a4   :  { %2872 = vmatmul.msk.bf16.vlgmr.msra.gmra.mxu1 %vm1307_vm5, %v2157_v18 }
0x10eb   :  { %v2189_v42 = vpop.f32.mrf.mxu2  ;;  %v2240_v43 = vpop.f32.mrf.mxu3 }
0x10ec   :  { %v2244_v45 = vadd.f32 %v2240_v43, %v1277_v33  ;;  %v2925_v43 = vld [vmem:[%s3942_s17] ss:$0 sm:$0xff] }
0x10ee   :  { %3032 = vtanh.f32 %v2244_v45  ;;  %v2876_v46 = vmul.f32 -1.442695, %v2244_v45 }
0x10f0   :  { %3034 = vpow2.f32 %v2876_v46 }
0x10f3   :  { %v2191_v50 = vpop.f32.mrf.mxu2  ;;  %v2242_v47 = vpop.f32.mrf.mxu3 }
0x10f4   :  { %v3033_v51 = vpop.eup %3032 }
0x10f5   :  { %2267 = vrot.lane.b32.xlu2 %v3033_v51, %s3941_s21 }
0x10f6   :  { %v3035_v16 = vpop.eup %3034 }
0x10f7   :  { %v2248_v32 = vadd.f32 1.0, %v3035_v16 }
0x10f9   :  { %v2260_v4 = vand.u32 2147483648, %v2248_v32  ;;  %vm2254_vm10 = vweird.f32 %v2248_v32  ;;  %v2258_v59 = vand.u32 2147483647, %v2248_v32 }
0x10fb   :  { %v2261_v60 = vor.u32 1.1754944e-38, %v2260_v4  ;;  %vm2259_vm12 = vcmp.eq.f32.partialorder %v2258_v59, 8.507059e+37 }
0x1121   :  { %v2170_v49 = vpop.f32.mrf.mxu1 }
0x1122   :  { %v2190_v48 = vadd.f32 %v2189_v42, %v2170_v49 }
0x1124   :  { %v2193_v52 = vadd.f32 %v3717_v27, %v2190_v48 }
0x1126   :  { %3036 = vtanh.f32 %v2193_v52  ;;  %v2874_v0 = vmul.f32 -1.442695, %v2193_v52 }
0x1127   :  { %3038 = vrcp.f32 %v2248_v32 }
0x1128   :  { %3040 = vpow2.f32 %v2874_v0 }
0x1129   :  { %v2172_v57 = vpop.f32.mrf.mxu1 }
0x112c   :  { %v3037_v31 = vpop.eup %3036 }
0x112d   :  { %2216 = vrot.lane.b32.xlu1 %v3037_v31, %s3941_s21  ;;  %v3039_v56 = vpop.eup %3038 }
0x112e   :  { %v2250_v44 = vmul.f32 %v3039_v56, %v2248_v32  ;;  %vm2255_vm9 = vweird.f32 %v3039_v56  ;;  %v3041_v1 = vpop.eup %3040 }
0x112f   :  { %vm2256_vm11 = vmor %vm2254_vm10, %vm2255_vm9  ;;  %v2197_v2 = vadd.f32 1.0, %v3041_v1 }
0x1130   :  { %v2251_v15 = vsub.f32 1.0, %v2250_v44 }
0x1131   :  { %3042 = vrcp.f32 %v2197_v2  ;;  %v2209_v12 = vand.u32 2147483648, %v2197_v2  ;;  %vm2203_vm14 = vweird.f32 %v2197_v2  ;;  %v2207_v14 = vand.u32 2147483647, %v2197_v2 }
0x1132   :  { %v2252_v11 = vmul.f32 %v3039_v56, %v2251_v15 }
0x1133   :  { %v2210_v20 = vor.u32 1.1754944e-38, %v2209_v12  ;;  %vm2208_vm0 = vcmp.eq.f32.partialorder %v2207_v14, 8.507059e+37 }
0x1134   :  { %v2253_v58 = vadd.f32 %v3039_v56, %v2252_v11  ;;  %v2926_v11 = vld [vmem:[%s3943_s14] ss:$0 sm:$0xff] }
0x1136   :  { %v2257_v27 = vsel %vm2256_vm11, %v3039_v56, %v2253_v58 }
0x1137   :  { %v2262_v63 = vsel %vm2259_vm12, %v2261_v60, %v2257_v27  ;;  %v3043_v3 = vpop.eup %3042 }
0x1138   :  { %v2199_v5 = vmul.f32 %v3043_v3, %v2197_v2  ;;  %vm2204_vm13 = vweird.f32 %v3043_v3  ;;  %v2265_v26 = vmul.f32 %v2262_v63, %v3834_v8 }
0x1139   :  { %vm2205_vm15 = vmor %vm2203_vm14, %vm2204_vm13 }
0x113a   :  { %v2200_v6 = vsub.f32 1.0, %v2199_v5 }
0x113c   :  { %v2201_v7 = vmul.f32 %v3043_v3, %v2200_v6 }
0x113e   :  { %v2202_v9 = vadd.f32 %v3043_v3, %v2201_v7  ;;  %v2927_v7 = vld [vmem:[#allocation5] ss:$0 sm:$0xff] }
0x1140   :  { %v2206_v17 = vsel %vm2205_vm15, %v3043_v3, %v2202_v9 }
0x1141   :  { %v2211_v25 = vsel %vm2208_vm0, %v2210_v20, %v2206_v17 }
0x1142   :  { %v2214_v30 = vmul.f32 %v2211_v25, %v3839_v38 }
0x114f   :  { %v2268_v61 = vpop.permute.xlu2 %2267 }
0x1150   :  { %v2270_v62 = vmul.f32 %v2268_v61, %v2262_v63 }
0x1152   :  { %2272 = vrot.lane.b32.xlu1 %v2270_v62, %s3924_s28 }
0x119f   :  { %v2217_v21 = vpop.permute.xlu1 %2216 }
0x11a0   :  { %v2219_v23 = vmul.f32 %v2217_v21, %v2211_v25 }
0x11a2   :  { %2221 = vrot.lane.b32.xlu0 %v2219_v23, %s3924_s28 }
0x11c4   :  { %v2273_v22 = vpop.permute.xlu1 %2272 }
0x11c5   :  { %v2275_v28 = vadd.f32 %v2273_v22, %v2265_v26 }
0x11c7   :  { %3044 = vtanh.f32 %v2275_v28 }
0x11cd   :  { %v3045_v19 = vpop.eup %3044 }
0x11ce   :  { %2278 = vrot.lane.b32.xlu0 %v3045_v19, %s3941_s21 }
0x1214   :  { %v2222_v24 = vpop.permute.xlu0 %2221 }
0x1215   :  { %v2224_v13 = vadd.f32 %v2222_v24, %v2214_v30 }
0x1217   :  { %3046 = vtanh.f32 %v2224_v13 }
0x121d   :  { %v3047_v35 = vpop.eup %3046 }
0x121e   :  { %2227 = vrot.lane.b32.xlu2 %v3047_v35, %s3941_s21 }
0x1240   :  { %v2279_v36 = vpop.permute.xlu0 %2278 }
0x1241   :  { %v2281_v39 = vmul.f32 %v2279_v36, %v2262_v63 }
0x1243   :  { %v2282_v29 = vpack.c.bf16 %v2281_v39, %v2281_v39 }
0x1245   :  { %2304 = vrot.lane.b32.xlu2 %v2282_v29, %s3924_s28 }
0x1278   :  { %v2228_v8 = vpop.permute.xlu2 %2227 }
0x1279   :  { %v2230_v10 = vmul.f32 %v2228_v8, %v2211_v25 }
0x127b   :  { %v2283_v34 = vpack.c.bf16 %v2230_v10, %v2230_v10 }
0x127d   :  { %2285 = vrot.lane.b32.xlu1 %v2283_v34, %s3924_s28 }
0x129f   :  { %v2305_v53 = vpop.permute.xlu2 %2304 }
0x12a0   :  { %2878 = vmatmul.msk.bf16.vlgmr.msrb.gmra.mxu1 %vm1307_vm5, %v2305_v53 }
0x12ef   :  { %v2286_v38 = vpop.permute.xlu1 %2285 }
0x12f0   :  { %2877 = vmatmul.msk.bf16.vlgmr.msrb.gmra.mxu0 %vm1307_vm5, %v2286_v38 }
0x131d   :  { %v2318_v40 = vpop.f32.mrf.mxu1 }
0x1325   :  { %v2320_v41 = vpop.f32.mrf.mxu1 }
0x136d   :  { %v2299_v54 = vpop.f32.mrf.mxu0 }
0x136e   :  { %v2319_v18 = vadd.f32 %v2318_v40, %v2299_v54 }
0x1370   :  { %v2322_v55 = vadd.f32 %v3064_v37, %v2319_v18 }
0x1372   :  { %3048 = vtanh.f32 %v2322_v55  ;;  %v2879_v45 = vmul.f32 -1.442695, %v2322_v55 }
0x1374   :  { %3050 = vpow2.f32 %v2879_v45 }
0x1375   :  { %v2301_v33 = vpop.f32.mrf.mxu0 }
0x1378   :  { %v3049_v42 = vpop.eup %3048 }
0x1379   :  { %2345 = vrot.lane.b32.xlu0 %v3049_v42, %s3941_s21 }
0x137a   :  { %v3051_v50 = vpop.eup %3050 }
0x137b   :  { %v2326_v47 = vadd.f32 1.0, %v3051_v50 }
0x137d   :  { %3052 = vrcp.f32 %v2326_v47  ;;  %v2338_v57 = vand.u32 2147483648, %v2326_v47  ;;  %vm2332_vm2 = vweird.f32 %v2326_v47  ;;  %v2336_v16 = vand.u32 2147483647, %v2326_v47 }
0x137f   :  { %v2339_v32 = vor.u32 1.1754944e-38, %v2338_v57  ;;  %vm2337_vm4 = vcmp.eq.f32.partialorder %v2336_v16, 8.507059e+37 }
0x1381   :  { %2363 = vrot.lane.b32.xlu0 %v2925_v43, %s3217_s11 }
0x1383   :  { %v3053_v51 = vpop.eup %3052 }
0x1384   :  { %v2328_v46 = vmul.f32 %v3053_v51, %v2326_v47  ;;  %vm2333_vm1 = vweird.f32 %v3053_v51 }
0x1385   :  { %vm2334_vm3 = vmor %vm2332_vm2, %vm2333_vm1 }
0x1386   :  { %v2329_v49 = vsub.f32 1.0, %v2328_v46 }
0x1388   :  { %v2330_v48 = vmul.f32 %v3053_v51, %v2329_v49 }
0x138a   :  { %v2331_v52 = vadd.f32 %v3053_v51, %v2330_v48 }
0x138c   :  { %v2335_v31 = vsel %vm2334_vm3, %v3053_v51, %v2331_v52 }
0x138d   :  { %v2340_v44 = vsel %vm2337_vm4, %v2339_v32, %v2335_v31 }
0x138e   :  { %v2343_v58 = vmul.f32 %v2340_v44, %v2224_v13 }
0x13eb   :  { %v2346_v56 = vpop.permute.xlu0 %2345 }
0x13ec   :  { %v2348_v15 = vmul.f32 %v2346_v56, %v2340_v44 }
0x13ee   :  { %2350 = vrot.lane.b32.xlu1 %v2348_v15, %s3924_s28 }
0x13f3   :  { %v2364_v60 = vpop.permute.xlu0 %2363 }
0x13f4   :  { %v2366_v61 = vmul.f32 %v2364_v60, %v2281_v39 }
0x13f6   :  { %2377 = vrot.lane.b32.xlu1 %v2926_v11, %s3217_s11 }
0x1460   :  { %v2351_v4 = vpop.permute.xlu1 %2350 }
0x1461   :  { %v2353_v59 = vadd.f32 %v2351_v4, %v2343_v58 }
0x1463   :  { %3054 = vtanh.f32 %v2353_v59 }
0x1468   :  { %v2378_v62 = vpop.permute.xlu1 %2377 }
0x1469   :  { %v3055_v27 = vpop.eup %3054 }
0x146a   :  { %2356 = vrot.lane.b32.xlu2 %v3055_v27, %s3941_s21 }
0x1472   :  { %2368 = vrot.lane.b32.xlu2 %v2366_v61, %s3924_s28 }
0x14c4   :  { %v2357_v63 = vpop.permute.xlu2 %2356 }
0x14c5   :  { %v2359_v0 = vmul.f32 %v2357_v63, %v2340_v44 }
0x14c7   :  { %v2380_v1 = vmul.f32 %v2378_v62, %v2359_v0 }
0x14c9   :  { %2382 = vrot.lane.b32.xlu0 %v2380_v1, %s3924_s28 }
0x14cc   :  { %v2369_v2 = vpop.permute.xlu2 %2368 }
0x14cd   :  { %v2371_v3 = vsel %vm1307_vm5, %v2369_v2, 0.0 }
0x14ce   :  { %2372 = vadd.xlane.f32.xlu1 %v2371_v3 }
0x153b   :  { %v2383_v5 = vpop.permute.xlu0 %2382 }
0x153c   :  { %v2385_v6 = vsel %vm1307_vm5, %v2383_v5, 0.0 }
0x153d   :  { %2386 = vadd.xlane.f32.xlu2 %v2385_v6 }
0x1541   :  { %v2373_v9 = vpop.xlane.xlu1 %2372 }
0x15b0   :  { %v2387_v12 = vpop.xlane.xlu2 %2386 }
0x15b1   :  { %v2388_v14 = vadd.f32 %v2387_v12, %v2373_v9 }
0x15b3   :  { %v2393_v17 = vadd.f32 %v2927_v7, %v2388_v14 }
0x15b5   :  { %2395 = vst.msk [vmem:[%s3944_s15] sm:$0xff] %vm2394_vm6, %v2393_v17 }
0x15b6   :  { %2400 = vsyncpa [#allocation7], 1 }
0x15b7   :  { %2401 = vsyncpa [#allocation9], 1 }
0x15b8   :  { %2402 = vsyncpa [#allocation12], 1 }

</bundles_post_ra>
